<compile_context>
chip_gen: v7x
topology: tpu7x:2x2x1
jax: 0.10.0
libtpu: 0.0.40
codegen_flags: <defaults>
</compile_context>

<pallas_src>
import functools

import jax
import jax.numpy as jnp
from jax.experimental import pallas as pl
from jax.experimental.pallas import tpu as pltpu

# ----------------------------- config (synthetic, small) -----------------------------
INPUT_RES = 16            # config.input_res
PATCH = 8                 # patch size -> 2x2 = 4 patches per frame
NUM_PATCHES = (INPUT_RES // PATCH) ** 2
PATCH_DIM = 3 * PATCH * PATCH          # 192
S_VIS = 8                 # padded vision sequence: CLS + 4 patches + 3 pad rows
NUM_FRAMES = 4            # config.num_frames
BATCH = 2
SEQ_LEN = 8               # text context length
VOCAB = 64
WIDTH = 32                # tower hidden size
HEADS = 4
HEAD_DIM = WIDTH // HEADS
LAYERS = 2
MLP_DIM = 4 * WIDTH
PROJ_DIM = 32             # shared CLIP embedding dim
EPS = 1e-5
NEG_BIAS = -1e9


# ----------------------------- in-kernel helpers -----------------------------
def _ln(x, g, b):
    """Row-wise LayerNorm in f32.  g, b are (1, D)."""
    mu = jnp.mean(x, axis=-1, keepdims=True)
    xc = x - mu
    var = jnp.mean(xc * xc, axis=-1, keepdims=True)
    return xc * jax.lax.rsqrt(var + EPS) * g + b


# ----------------------------- Pallas kernels -----------------------------
def _vision_embed_kernel(patch_ref, w_ref, poscls_ref, g_ref, b_ref, o_ref):
    """Per-frame patch embedding: rows = [CLS, patch0..3, pad x3].

    patch_ref is pre-padded (S_VIS, PATCH_DIM) with zero rows at the CLS slot and
    padding slots, so a single matmul plus the (pos + CLS) additive table builds
    the whole embedded sequence.  Pre-LayerNorm applied here too.
    """
    emb = jnp.dot(patch_ref[...].astype(jnp.bfloat16), w_ref[...],
                  preferred_element_type=jnp.float32)          # (S_VIS, W) f32
    x = emb + poscls_ref[...]
    o_ref[...] = _ln(x, g_ref[...], b_ref[...])


def _tower_kernel(x_ref, kmask_ref, pool_ref,
                  ln1g_ref, ln1b_ref, wqkv_ref, bqkv_ref, wo_ref, bo_ref,
                  ln2g_ref, ln2b_ref, w1_ref, b1_ref, w2_ref, b2_ref,
                  lnfg_ref, lnfb_ref, proj_ref,
                  o_ref, *, causal, n_layers, heads, head_dim, scale):
    """Whole pre-LN CLIP tower for ONE sequence, fully resident in VMEM/vregs.

    x_ref:     (S, W) f32 embedded sequence
    kmask_ref: (1, S) f32 key-validity (1 = real token / patch, 0 = padding)
    pool_ref:  (1, S) f32 pooling one-hot (CLS row for vision, EOS row for text)
    stacked per-layer weights have a leading LAYERS dim; matmul weights are bf16.
    Output: (1, PROJ) L2-normalized feature.
    """
    S, W = x_ref.shape
    x = x_ref[...]                                             # f32 residual stream

    # Additive attention bias: key padding (+ causal for the text tower).
    bias = jnp.where(kmask_ref[...] > 0.5, 0.0, NEG_BIAS)      # (1, S)
    if causal:
        rows = jax.lax.broadcasted_iota(jnp.int32, (S, S), 0)
        cols = jax.lax.broadcasted_iota(jnp.int32, (S, S), 1)
        bias = bias + jnp.where(cols > rows, NEG_BIAS, 0.0)    # (S, S)

    for layer in range(n_layers):                              # unrolled (LAYERS=2)
        # ---------------- attention block ----------------
        h = _ln(x, ln1g_ref[layer], ln1b_ref[layer])
        qkv = jnp.dot(h.astype(jnp.bfloat16), wqkv_ref[layer],
                      preferred_element_type=jnp.float32) + bqkv_ref[layer]   # (S, 3W)
        q = qkv[:, 0 * W:1 * W]
        k = qkv[:, 1 * W:2 * W]
        v = qkv[:, 2 * W:3 * W]

        w_o = wo_ref[layer]                                    # (W, W) bf16
        attn = jnp.zeros_like(x)                               # f32 accumulator (S, W)
        for hd in range(heads):                                # unrolled, all in vregs
            lo = hd * head_dim
            qh = q[:, lo:lo + head_dim].astype(jnp.bfloat16)   # (S, Dh)
            kh = k[:, lo:lo + head_dim].astype(jnp.bfloat16)
            vh = v[:, lo:lo + head_dim].astype(jnp.bfloat16)
            # scores: contract head dims directly ("qd,kd->qk"), f32 accumulate
            s = jax.lax.dot_general(qh, kh, (((1,), (1,)), ((), ())),
                                    preferred_element_type=jnp.float32) * scale
            s = s + bias
            s = s - jnp.max(s, axis=-1, keepdims=True)
            p = jnp.exp(s)
            p = p * pl.reciprocal(jnp.sum(p, axis=-1, keepdims=True), approx=True)
            oh = jnp.dot(p.astype(jnp.bfloat16), vh,
                         preferred_element_type=jnp.float32)   # (S, Dh)
            # fold the output projection into the head loop:
            #   out_proj(concat_h(oh)) == sum_h oh @ Wo[h*Dh:(h+1)*Dh, :]
            attn = attn + jnp.dot(oh.astype(jnp.bfloat16), w_o[lo:lo + head_dim, :],
                                  preferred_element_type=jnp.float32)
        x = x + attn + bo_ref[layer]

        # ---------------- MLP block (QuickGELU, f32 elementwise) ----------------
        h2 = _ln(x, ln2g_ref[layer], ln2b_ref[layer])
        m = jnp.dot(h2.astype(jnp.bfloat16), w1_ref[layer],
                    preferred_element_type=jnp.float32) + b1_ref[layer]       # (S, MLP)
        m = m * jax.nn.sigmoid(1.702 * m)
        x = x + jnp.dot(m.astype(jnp.bfloat16), w2_ref[layer],
                        preferred_element_type=jnp.float32) + b2_ref[layer]

    # ---------------- pooling + final LN + projection + L2 norm ----------------
    pooled = jnp.dot(pool_ref[...], x, preferred_element_type=jnp.float32)    # (1, W)
    pooled = _ln(pooled, lnfg_ref[...], lnfb_ref[...])
    feat = jnp.dot(pooled.astype(jnp.bfloat16), proj_ref[...],
                   preferred_element_type=jnp.float32)                        # (1, PROJ)
    feat = feat * jax.lax.rsqrt(jnp.sum(feat * feat, axis=-1, keepdims=True) + 1e-12)
    o_ref[...] = feat


def _avg_pool_kernel(v_ref, o_ref):
    # BaselinePooling('avg'): mean over the frame axis (text features unused).
    o_ref[...] = jnp.mean(v_ref[...], axis=1)


# ----------------------------- kernel wrappers -----------------------------
def vision_embed(patches, patch_w, pos_cls, pre_g, pre_b):
    """patches: (N, S_VIS, PATCH_DIM) zero-padded -> (N, S_VIS, W) embedded + pre-LN."""
    N, S, PD = patches.shape
    W = patch_w.shape[1]
    return pl.pallas_call(
        _vision_embed_kernel,
        out_shape=jax.ShapeDtypeStruct((N, S, W), jnp.float32),
        grid=(N,),
        in_specs=[
            pl.BlockSpec((None, S, PD), lambda n: (n, 0, 0)),
            pl.BlockSpec(patch_w.shape, lambda n: (0, 0)),
            pl.BlockSpec(pos_cls.shape, lambda n: (0, 0)),
            pl.BlockSpec(pre_g.shape, lambda n: (0, 0)),
            pl.BlockSpec(pre_b.shape, lambda n: (0, 0)),
        ],
        out_specs=pl.BlockSpec((None, S, W), lambda n: (n, 0, 0)),
        compiler_params=pltpu.CompilerParams(dimension_semantics=("parallel",)),
    )(patches, patch_w, pos_cls, pre_g, pre_b)


def transformer_tower(x, kmask, pool_onehot, layers, final_g, final_b, proj, *, causal):
    """Fused CLIP tower.  Grid iterates over independent sequences ('parallel')."""
    NB, S, W = x.shape
    P = proj.shape[1]
    kernel = functools.partial(
        _tower_kernel, causal=causal, n_layers=LAYERS, heads=HEADS,
        head_dim=HEAD_DIM, scale=float(HEAD_DIM) ** -0.5)

    def rep3(a):    # full-array block, constant across the grid (DMA'd once)
        return pl.BlockSpec(a.shape, lambda b: (0, 0, 0))

    def rep2(a):
        return pl.BlockSpec(a.shape, lambda b: (0, 0))

    out = pl.pallas_call(
        kernel,
        out_shape=jax.ShapeDtypeStruct((NB, 1, P), jnp.float32),
        grid=(NB,),
        in_specs=[
            pl.BlockSpec((None, S, W), lambda b: (b, 0, 0)),    # one sequence / program
            pl.BlockSpec((None, 1, S), lambda b: (b, 0, 0)),    # key-validity mask
            pl.BlockSpec((None, 1, S), lambda b: (b, 0, 0)),    # pooling one-hot
            rep3(layers["ln1_g"]), rep3(layers["ln1_b"]),
            rep3(layers["wqkv"]), rep3(layers["bqkv"]),
            rep3(layers["wo"]), rep3(layers["bo"]),
            rep3(layers["ln2_g"]), rep3(layers["ln2_b"]),
            rep3(layers["w1"]), rep3(layers["b1"]),
            rep3(layers["w2"]), rep3(layers["b2"]),
            rep2(final_g), rep2(final_b), rep2(proj),
        ],
        out_specs=pl.BlockSpec((None, 1, P), lambda b: (b, 0, 0)),
        compiler_params=pltpu.CompilerParams(dimension_semantics=("parallel",)),
    )(x, kmask, pool_onehot,
      layers["ln1_g"], layers["ln1_b"], layers["wqkv"], layers["bqkv"],
      layers["wo"], layers["bo"], layers["ln2_g"], layers["ln2_b"],
      layers["w1"], layers["b1"], layers["w2"], layers["b2"],
      final_g, final_b, proj)
    return out.reshape(NB, P)


def pool_frames_avg(text_features, video_features):
    # Matches BaselinePooling(pooling_type='avg'): ignores text, mean over frames.
    del text_features
    B, F, D = video_features.shape
    return pl.pallas_call(
        _avg_pool_kernel,
        out_shape=jax.ShapeDtypeStruct((B, D), jnp.float32),
        grid=(1,),
        in_specs=[pl.BlockSpec((B, F, D), lambda i: (0, 0, 0))],
        out_specs=pl.BlockSpec((B, D), lambda i: (0, 0)),
    )(video_features)


# ----------------------------- forward pass -----------------------------
def clip_baseline_forward(params, input_ids, attention_mask, video, return_all_frames=False):
    """video: (B, F, 3, R, R).  Mirrors CLIPBaseline.forward."""
    B, F = video.shape[0], video.shape[1]
    N = B * F

    # ---------------- vision tower ----------------
    frames = video.reshape(N, 3, INPUT_RES, INPUT_RES)
    Hp = INPUT_RES // PATCH
    # strided conv == patch unfold (glue) + one Pallas matmul
    patches = frames.reshape(N, 3, Hp, PATCH, Hp, PATCH)
    patches = patches.transpose(0, 2, 4, 1, 3, 5).reshape(N, NUM_PATCHES, PATCH_DIM)
    # row 0 reserved for CLS, rows (NUM_PATCHES+1 .. S_VIS-1) are sublane padding
    patches_padded = jnp.pad(patches, ((0, 0), (1, S_VIS - 1 - NUM_PATCHES), (0, 0)))
    x_vis = vision_embed(patches_padded, params["v_patch_w"], params["v_pos_cls"],
                         params["v_pre_g"], params["v_pre_b"])           # (N, S_VIS, W)

    valid = (jnp.arange(S_VIS) < (NUM_PATCHES + 1)).astype(jnp.float32)
    kmask_v = jnp.broadcast_to(valid.reshape(1, 1, S_VIS), (N, 1, S_VIS))
    pool_v = jnp.broadcast_to(
        jax.nn.one_hot(0, S_VIS, dtype=jnp.float32).reshape(1, 1, S_VIS), (N, 1, S_VIS))
    video_features = transformer_tower(
        x_vis, kmask_v, pool_v, params["v_layers"],
        params["v_post_g"], params["v_post_b"], params["v_proj"],
        causal=False)                                                    # (N, PROJ), L2-normed

    # ---------------- text tower ----------------
    # TODO(synk): token-embedding gather stays in XLA; a Pallas gather kernel adds nothing here.
    x_txt = jnp.take(params["t_tok_emb"], input_ids, axis=0) + params["t_pos"][None]
    Bt, L = input_ids.shape
    kmask_t = attention_mask.astype(jnp.float32).reshape(Bt, 1, L)
    eos_idx = jnp.argmax(input_ids, axis=-1)                             # HF CLIP EOS pooling
    pool_t = jax.nn.one_hot(eos_idx, L, dtype=jnp.float32).reshape(Bt, 1, L)
    text_features = transformer_tower(
        x_txt, kmask_t, pool_t, params["t_layers"],
        params["t_final_g"], params["t_final_b"], params["t_proj"],
        causal=True)                                                     # (B, PROJ), L2-normed

    video_features = video_features.reshape(B, F, PROJ_DIM)
    video_features_pooled = pool_frames_avg(text_features, video_features)
    if return_all_frames:
        return text_features, video_features, video_features_pooled
    return text_features, video_features_pooled


# ----------------------------- deterministic params -----------------------------
def init_params(key):
    keys = iter(jax.random.split(key, 64))

    def nrm(shape, std=0.02, dtype=jnp.float32):
        return (jax.random.normal(next(keys), shape, jnp.float32) * std).astype(dtype)

    def tower_layer_stack():
        # per-layer weights stacked along a leading LAYERS dim; matmul weights bf16
        return dict(
            ln1_g=jnp.ones((LAYERS, 1, WIDTH), jnp.float32),
            ln1_b=jnp.zeros((LAYERS, 1, WIDTH), jnp.float32),
            wqkv=nrm((LAYERS, WIDTH, 3 * WIDTH), dtype=jnp.bfloat16),
            bqkv=jnp.zeros((LAYERS, 1, 3 * WIDTH), jnp.float32),
            wo=nrm((LAYERS, WIDTH, WIDTH), dtype=jnp.bfloat16),
            bo=jnp.zeros((LAYERS, 1, WIDTH), jnp.float32),
            ln2_g=jnp.ones((LAYERS, 1, WIDTH), jnp.float32),
            ln2_b=jnp.zeros((LAYERS, 1, WIDTH), jnp.float32),
            w1=nrm((LAYERS, WIDTH, MLP_DIM), dtype=jnp.bfloat16),
            b1=jnp.zeros((LAYERS, 1, MLP_DIM), jnp.float32),
            w2=nrm((LAYERS, MLP_DIM, WIDTH), dtype=jnp.bfloat16),
            b2=jnp.zeros((LAYERS, 1, WIDTH), jnp.float32),
        )

    # positional table padded to S_VIS with CLS embedding folded into row 0
    v_pos = nrm((NUM_PATCHES + 1, WIDTH))
    v_cls = nrm((1, WIDTH))
    v_pos_cls = jnp.zeros((S_VIS, WIDTH), jnp.float32)
    v_pos_cls = v_pos_cls.at[: NUM_PATCHES + 1].set(v_pos)
    v_pos_cls = v_pos_cls.at[0:1].add(v_cls)

    return dict(
        # vision tower
        v_patch_w=nrm((PATCH_DIM, WIDTH), dtype=jnp.bfloat16),
        v_pos_cls=v_pos_cls,
        v_pre_g=jnp.ones((1, WIDTH), jnp.float32),
        v_pre_b=jnp.zeros((1, WIDTH), jnp.float32),
        v_layers=tower_layer_stack(),
        v_post_g=jnp.ones((1, WIDTH), jnp.float32),
        v_post_b=jnp.zeros((1, WIDTH), jnp.float32),
        v_proj=nrm((WIDTH, PROJ_DIM), dtype=jnp.bfloat16),
        # text tower
        t_tok_emb=nrm((VOCAB, WIDTH)),
        t_pos=nrm((SEQ_LEN, WIDTH)),
        t_layers=tower_layer_stack(),
        t_final_g=jnp.ones((1, WIDTH), jnp.float32),
        t_final_b=jnp.zeros((1, WIDTH), jnp.float32),
        t_proj=nrm((WIDTH, PROJ_DIM), dtype=jnp.bfloat16),
    )


# ----------------------------- main -----------------------------
if __name__ == "__main__":
    key = jax.random.PRNGKey(0)
    kp, kv, kt = jax.random.split(key, 3)
    params = init_params(kp)

    video = jax.random.normal(kv, (BATCH, NUM_FRAMES, 3, INPUT_RES, INPUT_RES), jnp.float32)
    input_ids = jax.random.randint(kt, (BATCH, SEQ_LEN), 1, VOCAB - 1)
    input_ids = input_ids.at[:, -1].set(VOCAB - 1)   # EOS (max id) at last position
    attention_mask = jnp.ones((BATCH, SEQ_LEN), jnp.int32)

    fwd = jax.jit(clip_baseline_forward, static_argnames=("return_all_frames",))
    text_features, video_features_pooled = fwd(params, input_ids, attention_mask, video)
    jax.block_until_ready((text_features, video_features_pooled))

    assert text_features.shape == (BATCH, PROJ_DIM)
    assert video_features_pooled.shape == (BATCH, PROJ_DIM)
    assert bool(jnp.all(jnp.isfinite(text_features)))
    assert bool(jnp.all(jnp.isfinite(video_features_pooled)))
    print("KERNEL_OK")
</pallas_src>

<mosaic_0001>
module attributes {stable_mosaic.version = 11 : i64} {
  func.func @_vision_embed_kernel(%arg0: i32, %arg1: memref<1x8x192xf32, #tpu.memory_space<vmem>>, %arg2: memref<192x32xbf16, #tpu.memory_space<vmem>>, %arg3: memref<8x32xf32, #tpu.memory_space<vmem>>, %arg4: memref<1x32xf32, #tpu.memory_space<vmem>>, %arg5: memref<1x32xf32, #tpu.memory_space<vmem>>, %arg6: memref<1x8x32xf32, #tpu.memory_space<vmem>>) attributes {dimension_semantics = [#tpu.dimension_semantics<parallel>], iteration_bounds = array<i64: 8>, scalar_prefetch = 0 : i64, scratch_operands = 0 : i64, tpu.core_type = #tpu.core_type<tc>, window_params = [{transform_indices = @transform_0, window_bounds = array<i64: 1, 8, 192>}, {pipeline_mode = #tpu.pipeline_mode<synchronous>, transform_indices = @transform_1, window_bounds = array<i64: 192, 32>}, {pipeline_mode = #tpu.pipeline_mode<synchronous>, transform_indices = @transform_2, window_bounds = array<i64: 8, 32>}, {pipeline_mode = #tpu.pipeline_mode<synchronous>, transform_indices = @transform_3, window_bounds = array<i64: 1, 32>}, {pipeline_mode = #tpu.pipeline_mode<synchronous>, transform_indices = @transform_4, window_bounds = array<i64: 1, 32>}, {transform_indices = @transform_5, window_bounds = array<i64: 1, 8, 32>}]} {
    %c0 = arith.constant 0 : index
    %c0_0 = arith.constant 0 : index
    %c0_1 = arith.constant 0 : index
    %0 = vector.load %arg1[%c0, %c0_0, %c0_1] : memref<1x8x192xf32, #tpu.memory_space<vmem>>, vector<1x8x192xf32>
    %1 = vector.shape_cast %0 : vector<1x8x192xf32> to vector<8x192xf32>
    %2 = arith.truncf %1 : vector<8x192xf32> to vector<8x192xbf16>
    %c0_2 = arith.constant 0 : index
    %c0_3 = arith.constant 0 : index
    %3 = vector.load %arg2[%c0_2, %c0_3] : memref<192x32xbf16, #tpu.memory_space<vmem>>, vector<192x32xbf16>
    %cst = arith.constant dense<0.000000e+00> : vector<8x32xf32>
    %4 = tpu.matmul %2, %3, %cst {dimension_numbers = #tpu.dot_dimension_numbers<[1], [0], [0], [1], [0, 0, 1, 1], [], []>} : vector<8x192xbf16>, vector<192x32xbf16>, vector<8x32xf32> -> vector<8x32xf32>
    %c0_4 = arith.constant 0 : index
    %c0_5 = arith.constant 0 : index
    %5 = vector.load %arg3[%c0_4, %c0_5] : memref<8x32xf32, #tpu.memory_space<vmem>>, vector<8x32xf32>
    %6 = arith.addf %4, %5 : vector<8x32xf32>
    %c0_6 = arith.constant 0 : index
    %c0_7 = arith.constant 0 : index
    %7 = vector.load %arg4[%c0_6, %c0_7] : memref<1x32xf32, #tpu.memory_space<vmem>>, vector<1x32xf32>
    %c0_8 = arith.constant 0 : index
    %c0_9 = arith.constant 0 : index
    %8 = vector.load %arg5[%c0_8, %c0_9] : memref<1x32xf32, #tpu.memory_space<vmem>>, vector<1x32xf32>
    %cst_10 = arith.constant dense<0.000000e+00> : vector<8xf32>
    %9 = vector.multi_reduction <add>, %6, %cst_10 [1] : vector<8x32xf32> to vector<8xf32>
    %10 = vector.shape_cast %9 : vector<8xf32> to vector<8x1xf32>
    %cst_11 = arith.constant 3.200000e+01 : f32
    %11 = vector.broadcast %cst_11 : f32 to vector<8x1xf32>
    %12 = arith.divf %10, %11 : vector<8x1xf32>
    %13 = vector.broadcast %12 : vector<8x1xf32> to vector<8x32xf32>
    %14 = arith.subf %6, %13 : vector<8x32xf32>
    %15 = arith.mulf %14, %14 : vector<8x32xf32>
    %cst_12 = arith.constant dense<0.000000e+00> : vector<8xf32>
    %16 = vector.multi_reduction <add>, %15, %cst_12 [1] : vector<8x32xf32> to vector<8xf32>
    %17 = vector.shape_cast %16 : vector<8xf32> to vector<8x1xf32>
    %cst_13 = arith.constant 3.200000e+01 : f32
    %18 = vector.broadcast %cst_13 : f32 to vector<8x1xf32>
    %19 = arith.divf %17, %18 : vector<8x1xf32>
    %cst_14 = arith.constant 9.99999974E-6 : f32
    %20 = vector.broadcast %cst_14 : f32 to vector<8x1xf32>
    %21 = arith.addf %19, %20 : vector<8x1xf32>
    %22 = math.rsqrt %21 : vector<8x1xf32>
    %23 = vector.broadcast %22 : vector<8x1xf32> to vector<8x32xf32>
    %24 = arith.mulf %14, %23 : vector<8x32xf32>
    %25 = vector.broadcast %7 : vector<1x32xf32> to vector<8x32xf32>
    %26 = arith.mulf %24, %25 : vector<8x32xf32>
    %27 = vector.broadcast %8 : vector<1x32xf32> to vector<8x32xf32>
    %28 = arith.addf %26, %27 : vector<8x32xf32>
    %c0_15 = arith.constant 0 : index
    %c0_16 = arith.constant 0 : index
    %c0_17 = arith.constant 0 : index
    %29 = vector.load %arg6[%c0_15, %c0_16, %c0_17] : memref<1x8x32xf32, #tpu.memory_space<vmem>>, vector<1x8x32xf32>
    %30 = vector.shape_cast %29 : vector<1x8x32xf32> to vector<8x32xf32>
    %31 = vector.shape_cast %28 : vector<8x32xf32> to vector<1x8x32xf32>
    tpu.vector_store %arg6[%c0_15, %c0_16, %c0_17], %31 {strides = array<i32>} : memref<1x8x32xf32, #tpu.memory_space<vmem>>, vector<1x8x32xf32>,
    return
  }
  func.func @transform_0(%arg0: i32) -> (i32, i32, i32) {
    %c0_i32 = arith.constant 0 : i32
    %c0_i32_0 = arith.constant 0 : i32
    %c0_i32_1 = arith.constant 0 : i32
    return %arg0, %c0_i32, %c0_i32_0 : i32, i32, i32
  }
  func.func @transform_1(%arg0: i32) -> (i32, i32) {
    %c0_i32 = arith.constant 0 : i32
    %c0_i32_0 = arith.constant 0 : i32
    %c0_i32_1 = arith.constant 0 : i32
    return %c0_i32, %c0_i32_0 : i32, i32
  }
  func.func @transform_2(%arg0: i32) -> (i32, i32) {
    %c0_i32 = arith.constant 0 : i32
    %c0_i32_0 = arith.constant 0 : i32
    %c0_i32_1 = arith.constant 0 : i32
    return %c0_i32, %c0_i32_0 : i32, i32
  }
  func.func @transform_3(%arg0: i32) -> (i32, i32) {
    %c0_i32 = arith.constant 0 : i32
    %c0_i32_0 = arith.constant 0 : i32
    %c0_i32_1 = arith.constant 0 : i32
    return %c0_i32, %c0_i32_0 : i32, i32
  }
  func.func @transform_4(%arg0: i32) -> (i32, i32) {
    %c0_i32 = arith.constant 0 : i32
    %c0_i32_0 = arith.constant 0 : i32
    %c0_i32_1 = arith.constant 0 : i32
    return %c0_i32, %c0_i32_0 : i32, i32
  }
  func.func @transform_5(%arg0: i32) -> (i32, i32, i32) {
    %c0_i32 = arith.constant 0 : i32
    %c0_i32_0 = arith.constant 0 : i32
    %c0_i32_1 = arith.constant 0 : i32
    return %arg0, %c0_i32, %c0_i32_0 : i32, i32, i32
  }
}

module attributes {stable_mosaic.version = 11 : i64} {
  func.func @_avg_pool_kernel(%arg0: i32, %arg1: memref<2x4x32xf32, #tpu.memory_space<vmem>>, %arg2: memref<2x32xf32, #tpu.memory_space<vmem>>) attributes {dimension_semantics = [#tpu.dimension_semantics<arbitrary>], iteration_bounds = array<i64: 1>, scalar_prefetch = 0 : i64, scratch_operands = 0 : i64, tpu.core_type = #tpu.core_type<tc>, window_params = [{pipeline_mode = #tpu.pipeline_mode<synchronous>, transform_indices = @transform_0, window_bounds = array<i64: 2, 4, 32>}, {pipeline_mode = #tpu.pipeline_mode<synchronous>, transform_indices = @transform_1, window_bounds = array<i64: 2, 32>}]} {
    %c0 = arith.constant 0 : index
    %c0_0 = arith.constant 0 : index
    %c0_1 = arith.constant 0 : index
    %0 = vector.load %arg1[%c0, %c0_0, %c0_1] : memref<2x4x32xf32, #tpu.memory_space<vmem>>, vector<2x4x32xf32>
    %cst = arith.constant dense<0.000000e+00> : vector<2x32xf32>
    %1 = vector.multi_reduction <add>, %0, %cst [1] : vector<2x4x32xf32> to vector<2x32xf32>
    %cst_2 = arith.constant 4.000000e+00 : f32
    %2 = vector.broadcast %cst_2 : f32 to vector<2x32xf32>
    %3 = arith.divf %1, %2 : vector<2x32xf32>
    %c0_3 = arith.constant 0 : index
    %c0_4 = arith.constant 0 : index
    %4 = vector.load %arg2[%c0_3, %c0_4] : memref<2x32xf32, #tpu.memory_space<vmem>>, vector<2x32xf32>
    tpu.vector_store %arg2[%c0_3, %c0_4], %3 {strides = array<i32>} : memref<2x32xf32, #tpu.memory_space<vmem>>, vector<2x32xf32>,
    return
  }
  func.func @transform_0(%arg0: i32) -> (i32, i32, i32) {
    %c0_i32 = arith.constant 0 : i32
    %c0_i32_0 = arith.constant 0 : i32
    %c0_i32_1 = arith.constant 0 : i32
    %c0_i32_2 = arith.constant 0 : i32
    return %c0_i32, %c0_i32_0, %c0_i32_1 : i32, i32, i32
  }
  func.func @transform_1(%arg0: i32) -> (i32, i32) {
    %c0_i32 = arith.constant 0 : i32
    %c0_i32_0 = arith.constant 0 : i32
    %c0_i32_1 = arith.constant 0 : i32
    return %c0_i32, %c0_i32_0 : i32, i32
  }
}

module attributes {stable_mosaic.version = 11 : i64} {
  func.func @_tower_kernel(%arg0: i32, %arg1: memref<1x8x32xf32, #tpu.memory_space<vmem>>, %arg2: memref<1x1x8xf32, #tpu.memory_space<vmem>>, %arg3: memref<1x1x8xf32, #tpu.memory_space<vmem>>, %arg4: memref<2x1x32xf32, #tpu.memory_space<vmem>>, %arg5: memref<2x1x32xf32, #tpu.memory_space<vmem>>, %arg6: memref<2x32x96xbf16, #tpu.memory_space<vmem>>, %arg7: memref<2x1x96xf32, #tpu.memory_space<vmem>>, %arg8: memref<2x32x32xbf16, #tpu.memory_space<vmem>>, %arg9: memref<2x1x32xf32, #tpu.memory_space<vmem>>, %arg10: memref<2x1x32xf32, #tpu.memory_space<vmem>>, %arg11: memref<2x1x32xf32, #tpu.memory_space<vmem>>, %arg12: memref<2x32x128xbf16, #tpu.memory_space<vmem>>, %arg13: memref<2x1x128xf32, #tpu.memory_space<vmem>>, %arg14: memref<2x128x32xbf16, #tpu.memory_space<vmem>>, %arg15: memref<2x1x32xf32, #tpu.memory_space<vmem>>, %arg16: memref<1x32xf32, #tpu.memory_space<vmem>>, %arg17: memref<1x32xf32, #tpu.memory_space<vmem>>, %arg18: memref<32x32xbf16, #tpu.memory_space<vmem>>, %arg19: memref<1x1x32xf32, #tpu.memory_space<vmem>>) attributes {dimension_semantics = [#tpu.dimension_semantics<parallel>], iteration_bounds = array<i64: 8>, scalar_prefetch = 0 : i64, scratch_operands = 0 : i64, tpu.core_type = #tpu.core_type<tc>, window_params = [{transform_indices = @transform_0, window_bounds = array<i64: 1, 8, 32>}, {transform_indices = @transform_1, window_bounds = array<i64: 1, 1, 8>}, {transform_indices = @transform_2, window_bounds = array<i64: 1, 1, 8>}, {pipeline_mode = #tpu.pipeline_mode<synchronous>, transform_indices = @transform_3, window_bounds = array<i64: 2, 1, 32>}, {pipeline_mode = #tpu.pipeline_mode<synchronous>, transform_indices = @transform_4, window_bounds = array<i64: 2, 1, 32>}, {pipeline_mode = #tpu.pipeline_mode<synchronous>, transform_indices = @transform_5, window_bounds = array<i64: 2, 32, 96>}, {pipeline_mode = #tpu.pipeline_mode<synchronous>, transform_indices = @transform_6, window_bounds = array<i64: 2, 1, 96>}, {pipeline_mode = #tpu.pipeline_mode<synchronous>, transform_indices = @transform_7, window_bounds = array<i64: 2, 32, 32>}, {pipeline_mode = #tpu.pipeline_mode<synchronous>, transform_indices = @transform_8, window_bounds = array<i64: 2, 1, 32>}, {pipeline_mode = #tpu.pipeline_mode<synchronous>, transform_indices = @transform_9, window_bounds = array<i64: 2, 1, 32>}, {pipeline_mode = #tpu.pipeline_mode<synchronous>, transform_indices = @transform_10, window_bounds = array<i64: 2, 1, 32>}, {pipeline_mode = #tpu.pipeline_mode<synchronous>, transform_indices = @transform_11, window_bounds = array<i64: 2, 32, 128>}, {pipeline_mode = #tpu.pipeline_mode<synchronous>, transform_indices = @transform_12, window_bounds = array<i64: 2, 1, 128>}, {pipeline_mode = #tpu.pipeline_mode<synchronous>, transform_indices = @transform_13, window_bounds = array<i64: 2, 128, 32>}, {pipeline_mode = #tpu.pipeline_mode<synchronous>, transform_indices = @transform_14, window_bounds = array<i64: 2, 1, 32>}, {pipeline_mode = #tpu.pipeline_mode<synchronous>, transform_indices = @transform_15, window_bounds = array<i64: 1, 32>}, {pipeline_mode = #tpu.pipeline_mode<synchronous>, transform_indices = @transform_16, window_bounds = array<i64: 1, 32>}, {pipeline_mode = #tpu.pipeline_mode<synchronous>, transform_indices = @transform_17, window_bounds = array<i64: 32, 32>}, {transform_indices = @transform_18, window_bounds = array<i64: 1, 1, 32>}]} {
    %c0 = arith.constant 0 : index
    %c0_0 = arith.constant 0 : index
    %c0_1 = arith.constant 0 : index
    %0 = vector.load %arg1[%c0, %c0_0, %c0_1] : memref<1x8x32xf32, #tpu.memory_space<vmem>>, vector<1x8x32xf32>
    %1 = vector.shape_cast %0 : vector<1x8x32xf32> to vector<8x32xf32>
    %c0_2 = arith.constant 0 : index
    %c0_3 = arith.constant 0 : index
    %c0_4 = arith.constant 0 : index
    %2 = vector.load %arg2[%c0_2, %c0_3, %c0_4] : memref<1x1x8xf32, #tpu.memory_space<vmem>>, vector<1x1x8xf32>
    %3 = vector.shape_cast %2 : vector<1x1x8xf32> to vector<1x8xf32>
    %cst = arith.constant 5.000000e-01 : f32
    %4 = vector.broadcast %cst : f32 to vector<1x8xf32>
    %5 = arith.cmpf ogt, %3, %4 : vector<1x8xf32>
    %cst_5 = arith.constant 0.000000e+00 : f32
    %cst_6 = arith.constant -1.000000e+09 : f32
    %6 = vector.broadcast %cst_5 : f32 to vector<1x8xf32>
    %7 = vector.broadcast %cst_6 : f32 to vector<1x8xf32>
    %8 = arith.select %5, %6, %7 : vector<1x8xi1>, vector<1x8xf32>
    %c0_7 = arith.constant 0 : index
    %c0_8 = arith.constant 0 : index
    %c0_9 = arith.constant 0 : index
    %9 = vector.load %arg4[%c0_7, %c0_8, %c0_9] : memref<2x1x32xf32, #tpu.memory_space<vmem>>, vector<1x1x32xf32>
    %10 = vector.shape_cast %9 : vector<1x1x32xf32> to vector<1x32xf32>
    %c0_10 = arith.constant 0 : index
    %c0_11 = arith.constant 0 : index
    %c0_12 = arith.constant 0 : index
    %11 = vector.load %arg5[%c0_10, %c0_11, %c0_12] : memref<2x1x32xf32, #tpu.memory_space<vmem>>, vector<1x1x32xf32>
    %12 = vector.shape_cast %11 : vector<1x1x32xf32> to vector<1x32xf32>
    %cst_13 = arith.constant dense<0.000000e+00> : vector<8xf32>
    %13 = vector.multi_reduction <add>, %1, %cst_13 [1] : vector<8x32xf32> to vector<8xf32>
    %14 = vector.shape_cast %13 : vector<8xf32> to vector<8x1xf32>
    %cst_14 = arith.constant 3.200000e+01 : f32
    %15 = vector.broadcast %cst_14 : f32 to vector<8x1xf32>
    %16 = arith.divf %14, %15 : vector<8x1xf32>
    %17 = vector.broadcast %16 : vector<8x1xf32> to vector<8x32xf32>
    %18 = arith.subf %1, %17 : vector<8x32xf32>
    %19 = arith.mulf %18, %18 : vector<8x32xf32>
    %cst_15 = arith.constant dense<0.000000e+00> : vector<8xf32>
    %20 = vector.multi_reduction <add>, %19, %cst_15 [1] : vector<8x32xf32> to vector<8xf32>
    %21 = vector.shape_cast %20 : vector<8xf32> to vector<8x1xf32>
    %cst_16 = arith.constant 3.200000e+01 : f32
    %22 = vector.broadcast %cst_16 : f32 to vector<8x1xf32>
    %23 = arith.divf %21, %22 : vector<8x1xf32>
    %cst_17 = arith.constant 9.99999974E-6 : f32
    %24 = vector.broadcast %cst_17 : f32 to vector<8x1xf32>
    %25 = arith.addf %23, %24 : vector<8x1xf32>
    %26 = math.rsqrt %25 : vector<8x1xf32>
    %27 = vector.broadcast %26 : vector<8x1xf32> to vector<8x32xf32>
    %28 = arith.mulf %18, %27 : vector<8x32xf32>
    %29 = vector.broadcast %10 : vector<1x32xf32> to vector<8x32xf32>
    %30 = arith.mulf %28, %29 : vector<8x32xf32>
    %31 = vector.broadcast %12 : vector<1x32xf32> to vector<8x32xf32>
    %32 = arith.addf %30, %31 : vector<8x32xf32>
    %33 = arith.truncf %32 : vector<8x32xf32> to vector<8x32xbf16>
    %c0_18 = arith.constant 0 : index
    %c0_19 = arith.constant 0 : index
    %c0_20 = arith.constant 0 : index
    %34 = vector.load %arg6[%c0_18, %c0_19, %c0_20] : memref<2x32x96xbf16, #tpu.memory_space<vmem>>, vector<1x32x96xbf16>
    %35 = vector.shape_cast %34 : vector<1x32x96xbf16> to vector<32x96xbf16>
    %cst_21 = arith.constant dense<0.000000e+00> : vector<8x96xf32>
    %36 = tpu.matmul %33, %35, %cst_21 {dimension_numbers = #tpu.dot_dimension_numbers<[1], [0], [0], [1], [0, 0, 1, 1], [], []>} : vector<8x32xbf16>, vector<32x96xbf16>, vector<8x96xf32> -> vector<8x96xf32>
    %c0_22 = arith.constant 0 : index
    %c0_23 = arith.constant 0 : index
    %c0_24 = arith.constant 0 : index
    %37 = vector.load %arg7[%c0_22, %c0_23, %c0_24] : memref<2x1x96xf32, #tpu.memory_space<vmem>>, vector<1x1x96xf32>
    %38 = vector.shape_cast %37 : vector<1x1x96xf32> to vector<1x96xf32>
    %39 = vector.broadcast %38 : vector<1x96xf32> to vector<8x96xf32>
    %40 = arith.addf %36, %39 : vector<8x96xf32>
    %41 = vector.extract_strided_slice %40 {offsets = [0, 0], sizes = [8, 32], strides = [1, 1]} : vector<8x96xf32> to vector<8x32xf32>
    %42 = vector.extract_strided_slice %40 {offsets = [0, 32], sizes = [8, 32], strides = [1, 1]} : vector<8x96xf32> to vector<8x32xf32>
    %43 = vector.extract_strided_slice %40 {offsets = [0, 64], sizes = [8, 32], strides = [1, 1]} : vector<8x96xf32> to vector<8x32xf32>
    %c0_25 = arith.constant 0 : index
    %c0_26 = arith.constant 0 : index
    %c0_27 = arith.constant 0 : index
    %44 = vector.load %arg8[%c0_25, %c0_26, %c0_27] : memref<2x32x32xbf16, #tpu.memory_space<vmem>>, vector<1x32x32xbf16>
    %45 = vector.shape_cast %44 : vector<1x32x32xbf16> to vector<32x32xbf16>
    %cst_28 = arith.constant 0.000000e+00 : f32
    %46 = vector.broadcast %cst_28 : f32 to vector<8x32xf32>
    %47 = vector.extract_strided_slice %41 {offsets = [0, 0], sizes = [8, 8], strides = [1, 1]} : vector<8x32xf32> to vector<8x8xf32>
    %48 = arith.truncf %47 : vector<8x8xf32> to vector<8x8xbf16>
    %49 = vector.extract_strided_slice %42 {offsets = [0, 0], sizes = [8, 8], strides = [1, 1]} : vector<8x32xf32> to vector<8x8xf32>
    %50 = arith.truncf %49 : vector<8x8xf32> to vector<8x8xbf16>
    %51 = vector.extract_strided_slice %43 {offsets = [0, 0], sizes = [8, 8], strides = [1, 1]} : vector<8x32xf32> to vector<8x8xf32>
    %52 = arith.truncf %51 : vector<8x8xf32> to vector<8x8xbf16>
    %cst_29 = arith.constant dense<0.000000e+00> : vector<8x8xf32>
    %53 = tpu.matmul %48, %50, %cst_29 {dimension_numbers = #tpu.dot_dimension_numbers<[1], [1], [0], [0], [0, 0, 1, 0], [], []>} : vector<8x8xbf16>, vector<8x8xbf16>, vector<8x8xf32> -> vector<8x8xf32>
    %cst_30 = arith.constant 0.353553385 : f32
    %54 = vector.broadcast %cst_30 : f32 to vector<8x8xf32>
    %55 = arith.mulf %53, %54 : vector<8x8xf32>
    %56 = vector.broadcast %8 : vector<1x8xf32> to vector<8x8xf32>
    %57 = arith.addf %55, %56 : vector<8x8xf32>
    %cst_31 = arith.constant dense<0xFF800000> : vector<8xf32>
    %58 = vector.multi_reduction <maximumf>, %57, %cst_31 [1] : vector<8x8xf32> to vector<8xf32>
    %59 = vector.shape_cast %58 : vector<8xf32> to vector<8x1xf32>
    %60 = vector.broadcast %59 : vector<8x1xf32> to vector<8x8xf32>
    %61 = arith.subf %57, %60 : vector<8x8xf32>
    %62 = math.exp %61 : vector<8x8xf32>
    %cst_32 = arith.constant dense<0.000000e+00> : vector<8xf32>
    %63 = vector.multi_reduction <add>, %62, %cst_32 [1] : vector<8x8xf32> to vector<8xf32>
    %64 = vector.shape_cast %63 : vector<8xf32> to vector<8x1xf32>
    %65 = tpu.reciprocal %64 {approx = true} : vector<8x1xf32> -> vector<8x1xf32>
    %66 = vector.broadcast %65 : vector<8x1xf32> to vector<8x8xf32>
    %67 = arith.mulf %62, %66 : vector<8x8xf32>
    %68 = arith.truncf %67 : vector<8x8xf32> to vector<8x8xbf16>
    %cst_33 = arith.constant dense<0.000000e+00> : vector<8x8xf32>
    %69 = tpu.matmul %68, %52, %cst_33 {dimension_numbers = #tpu.dot_dimension_numbers<[1], [0], [0], [1], [0, 0, 1, 1], [], []>} : vector<8x8xbf16>, vector<8x8xbf16>, vector<8x8xf32> -> vector<8x8xf32>
    %70 = arith.truncf %69 : vector<8x8xf32> to vector<8x8xbf16>
    %71 = vector.extract_strided_slice %45 {offsets = [0, 0], sizes = [8, 32], strides = [1, 1]} : vector<32x32xbf16> to vector<8x32xbf16>
    %cst_34 = arith.constant dense<0.000000e+00> : vector<8x32xf32>
    %72 = tpu.matmul %70, %71, %cst_34 {dimension_numbers = #tpu.dot_dimension_numbers<[1], [0], [0], [1], [0, 0, 1, 1], [], []>} : vector<8x8xbf16>, vector<8x32xbf16>, vector<8x32xf32> -> vector<8x32xf32>
    %73 = arith.addf %46, %72 : vector<8x32xf32>
    %74 = vector.extract_strided_slice %41 {offsets = [0, 8], sizes = [8, 8], strides = [1, 1]} : vector<8x32xf32> to vector<8x8xf32>
    %75 = arith.truncf %74 : vector<8x8xf32> to vector<8x8xbf16>
    %76 = vector.extract_strided_slice %42 {offsets = [0, 8], sizes = [8, 8], strides = [1, 1]} : vector<8x32xf32> to vector<8x8xf32>
    %77 = arith.truncf %76 : vector<8x8xf32> to vector<8x8xbf16>
    %78 = vector.extract_strided_slice %43 {offsets = [0, 8], sizes = [8, 8], strides = [1, 1]} : vector<8x32xf32> to vector<8x8xf32>
    %79 = arith.truncf %78 : vector<8x8xf32> to vector<8x8xbf16>
    %cst_35 = arith.constant dense<0.000000e+00> : vector<8x8xf32>
    %80 = tpu.matmul %75, %77, %cst_35 {dimension_numbers = #tpu.dot_dimension_numbers<[1], [1], [0], [0], [0, 0, 1, 0], [], []>} : vector<8x8xbf16>, vector<8x8xbf16>, vector<8x8xf32> -> vector<8x8xf32>
    %cst_36 = arith.constant 0.353553385 : f32
    %81 = vector.broadcast %cst_36 : f32 to vector<8x8xf32>
    %82 = arith.mulf %80, %81 : vector<8x8xf32>
    %83 = vector.broadcast %8 : vector<1x8xf32> to vector<8x8xf32>
    %84 = arith.addf %82, %83 : vector<8x8xf32>
    %cst_37 = arith.constant dense<0xFF800000> : vector<8xf32>
    %85 = vector.multi_reduction <maximumf>, %84, %cst_37 [1] : vector<8x8xf32> to vector<8xf32>
    %86 = vector.shape_cast %85 : vector<8xf32> to vector<8x1xf32>
    %87 = vector.broadcast %86 : vector<8x1xf32> to vector<8x8xf32>
    %88 = arith.subf %84, %87 : vector<8x8xf32>
    %89 = math.exp %88 : vector<8x8xf32>
    %cst_38 = arith.constant dense<0.000000e+00> : vector<8xf32>
    %90 = vector.multi_reduction <add>, %89, %cst_38 [1] : vector<8x8xf32> to vector<8xf32>
    %91 = vector.shape_cast %90 : vector<8xf32> to vector<8x1xf32>
    %92 = tpu.reciprocal %91 {approx = true} : vector<8x1xf32> -> vector<8x1xf32>
    %93 = vector.broadcast %92 : vector<8x1xf32> to vector<8x8xf32>
    %94 = arith.mulf %89, %93 : vector<8x8xf32>
    %95 = arith.truncf %94 : vector<8x8xf32> to vector<8x8xbf16>
    %cst_39 = arith.constant dense<0.000000e+00> : vector<8x8xf32>
    %96 = tpu.matmul %95, %79, %cst_39 {dimension_numbers = #tpu.dot_dimension_numbers<[1], [0], [0], [1], [0, 0, 1, 1], [], []>} : vector<8x8xbf16>, vector<8x8xbf16>, vector<8x8xf32> -> vector<8x8xf32>
    %97 = arith.truncf %96 : vector<8x8xf32> to vector<8x8xbf16>
    %98 = vector.extract_strided_slice %45 {offsets = [8, 0], sizes = [8, 32], strides = [1, 1]} : vector<32x32xbf16> to vector<8x32xbf16>
    %cst_40 = arith.constant dense<0.000000e+00> : vector<8x32xf32>
    %99 = tpu.matmul %97, %98, %cst_40 {dimension_numbers = #tpu.dot_dimension_numbers<[1], [0], [0], [1], [0, 0, 1, 1], [], []>} : vector<8x8xbf16>, vector<8x32xbf16>, vector<8x32xf32> -> vector<8x32xf32>
    %100 = arith.addf %73, %99 : vector<8x32xf32>
    %101 = vector.extract_strided_slice %41 {offsets = [0, 16], sizes = [8, 8], strides = [1, 1]} : vector<8x32xf32> to vector<8x8xf32>
    %102 = arith.truncf %101 : vector<8x8xf32> to vector<8x8xbf16>
    %103 = vector.extract_strided_slice %42 {offsets = [0, 16], sizes = [8, 8], strides = [1, 1]} : vector<8x32xf32> to vector<8x8xf32>
    %104 = arith.truncf %103 : vector<8x8xf32> to vector<8x8xbf16>
    %105 = vector.extract_strided_slice %43 {offsets = [0, 16], sizes = [8, 8], strides = [1, 1]} : vector<8x32xf32> to vector<8x8xf32>
    %106 = arith.truncf %105 : vector<8x8xf32> to vector<8x8xbf16>
    %cst_41 = arith.constant dense<0.000000e+00> : vector<8x8xf32>
    %107 = tpu.matmul %102, %104, %cst_41 {dimension_numbers = #tpu.dot_dimension_numbers<[1], [1], [0], [0], [0, 0, 1, 0], [], []>} : vector<8x8xbf16>, vector<8x8xbf16>, vector<8x8xf32> -> vector<8x8xf32>
    %cst_42 = arith.constant 0.353553385 : f32
    %108 = vector.broadcast %cst_42 : f32 to vector<8x8xf32>
    %109 = arith.mulf %107, %108 : vector<8x8xf32>
    %110 = vector.broadcast %8 : vector<1x8xf32> to vector<8x8xf32>
    %111 = arith.addf %109, %110 : vector<8x8xf32>
    %cst_43 = arith.constant dense<0xFF800000> : vector<8xf32>
    %112 = vector.multi_reduction <maximumf>, %111, %cst_43 [1] : vector<8x8xf32> to vector<8xf32>
    %113 = vector.shape_cast %112 : vector<8xf32> to vector<8x1xf32>
    %114 = vector.broadcast %113 : vector<8x1xf32> to vector<8x8xf32>
    %115 = arith.subf %111, %114 : vector<8x8xf32>
    %116 = math.exp %115 : vector<8x8xf32>
    %cst_44 = arith.constant dense<0.000000e+00> : vector<8xf32>
    %117 = vector.multi_reduction <add>, %116, %cst_44 [1] : vector<8x8xf32> to vector<8xf32>
    %118 = vector.shape_cast %117 : vector<8xf32> to vector<8x1xf32>
    %119 = tpu.reciprocal %118 {approx = true} : vector<8x1xf32> -> vector<8x1xf32>
    %120 = vector.broadcast %119 : vector<8x1xf32> to vector<8x8xf32>
    %121 = arith.mulf %116, %120 : vector<8x8xf32>
    %122 = arith.truncf %121 : vector<8x8xf32> to vector<8x8xbf16>
    %cst_45 = arith.constant dense<0.000000e+00> : vector<8x8xf32>
    %123 = tpu.matmul %122, %106, %cst_45 {dimension_numbers = #tpu.dot_dimension_numbers<[1], [0], [0], [1], [0, 0, 1, 1], [], []>} : vector<8x8xbf16>, vector<8x8xbf16>, vector<8x8xf32> -> vector<8x8xf32>
    %124 = arith.truncf %123 : vector<8x8xf32> to vector<8x8xbf16>
    %125 = vector.extract_strided_slice %45 {offsets = [16, 0], sizes = [8, 32], strides = [1, 1]} : vector<32x32xbf16> to vector<8x32xbf16>
    %cst_46 = arith.constant dense<0.000000e+00> : vector<8x32xf32>
    %126 = tpu.matmul %124, %125, %cst_46 {dimension_numbers = #tpu.dot_dimension_numbers<[1], [0], [0], [1], [0, 0, 1, 1], [], []>} : vector<8x8xbf16>, vector<8x32xbf16>, vector<8x32xf32> -> vector<8x32xf32>
    %127 = arith.addf %100, %126 : vector<8x32xf32>
    %128 = vector.extract_strided_slice %41 {offsets = [0, 24], sizes = [8, 8], strides = [1, 1]} : vector<8x32xf32> to vector<8x8xf32>
    %129 = arith.truncf %128 : vector<8x8xf32> to vector<8x8xbf16>
    %130 = vector.extract_strided_slice %42 {offsets = [0, 24], sizes = [8, 8], strides = [1, 1]} : vector<8x32xf32> to vector<8x8xf32>
    %131 = arith.truncf %130 : vector<8x8xf32> to vector<8x8xbf16>
    %132 = vector.extract_strided_slice %43 {offsets = [0, 24], sizes = [8, 8], strides = [1, 1]} : vector<8x32xf32> to vector<8x8xf32>
    %133 = arith.truncf %132 : vector<8x8xf32> to vector<8x8xbf16>
    %cst_47 = arith.constant dense<0.000000e+00> : vector<8x8xf32>
    %134 = tpu.matmul %129, %131, %cst_47 {dimension_numbers = #tpu.dot_dimension_numbers<[1], [1], [0], [0], [0, 0, 1, 0], [], []>} : vector<8x8xbf16>, vector<8x8xbf16>, vector<8x8xf32> -> vector<8x8xf32>
    %cst_48 = arith.constant 0.353553385 : f32
    %135 = vector.broadcast %cst_48 : f32 to vector<8x8xf32>
    %136 = arith.mulf %134, %135 : vector<8x8xf32>
    %137 = vector.broadcast %8 : vector<1x8xf32> to vector<8x8xf32>
    %138 = arith.addf %136, %137 : vector<8x8xf32>
    %cst_49 = arith.constant dense<0xFF800000> : vector<8xf32>
    %139 = vector.multi_reduction <maximumf>, %138, %cst_49 [1] : vector<8x8xf32> to vector<8xf32>
    %140 = vector.shape_cast %139 : vector<8xf32> to vector<8x1xf32>
    %141 = vector.broadcast %140 : vector<8x1xf32> to vector<8x8xf32>
    %142 = arith.subf %138, %141 : vector<8x8xf32>
    %143 = math.exp %142 : vector<8x8xf32>
    %cst_50 = arith.constant dense<0.000000e+00> : vector<8xf32>
    %144 = vector.multi_reduction <add>, %143, %cst_50 [1] : vector<8x8xf32> to vector<8xf32>
    %145 = vector.shape_cast %144 : vector<8xf32> to vector<8x1xf32>
    %146 = tpu.reciprocal %145 {approx = true} : vector<8x1xf32> -> vector<8x1xf32>
    %147 = vector.broadcast %146 : vector<8x1xf32> to vector<8x8xf32>
    %148 = arith.mulf %143, %147 : vector<8x8xf32>
    %149 = arith.truncf %148 : vector<8x8xf32> to vector<8x8xbf16>
    %cst_51 = arith.constant dense<0.000000e+00> : vector<8x8xf32>
    %150 = tpu.matmul %149, %133, %cst_51 {dimension_numbers = #tpu.dot_dimension_numbers<[1], [0], [0], [1], [0, 0, 1, 1], [], []>} : vector<8x8xbf16>, vector<8x8xbf16>, vector<8x8xf32> -> vector<8x8xf32>
    %151 = arith.truncf %150 : vector<8x8xf32> to vector<8x8xbf16>
    %152 = vector.extract_strided_slice %45 {offsets = [24, 0], sizes = [8, 32], strides = [1, 1]} : vector<32x32xbf16> to vector<8x32xbf16>
    %cst_52 = arith.constant dense<0.000000e+00> : vector<8x32xf32>
    %153 = tpu.matmul %151, %152, %cst_52 {dimension_numbers = #tpu.dot_dimension_numbers<[1], [0], [0], [1], [0, 0, 1, 1], [], []>} : vector<8x8xbf16>, vector<8x32xbf16>, vector<8x32xf32> -> vector<8x32xf32>
    %154 = arith.addf %127, %153 : vector<8x32xf32>
    %155 = arith.addf %1, %154 : vector<8x32xf32>
    %c0_53 = arith.constant 0 : index
    %c0_54 = arith.constant 0 : index
    %c0_55 = arith.constant 0 : index
    %156 = vector.load %arg9[%c0_53, %c0_54, %c0_55] : memref<2x1x32xf32, #tpu.memory_space<vmem>>, vector<1x1x32xf32>
    %157 = vector.shape_cast %156 : vector<1x1x32xf32> to vector<1x32xf32>
    %158 = vector.broadcast %157 : vector<1x32xf32> to vector<8x32xf32>
    %159 = arith.addf %155, %158 : vector<8x32xf32>
    %c0_56 = arith.constant 0 : index
    %c0_57 = arith.constant 0 : index
    %c0_58 = arith.constant 0 : index
    %160 = vector.load %arg10[%c0_56, %c0_57, %c0_58] : memref<2x1x32xf32, #tpu.memory_space<vmem>>, vector<1x1x32xf32>
    %161 = vector.shape_cast %160 : vector<1x1x32xf32> to vector<1x32xf32>
    %c0_59 = arith.constant 0 : index
    %c0_60 = arith.constant 0 : index
    %c0_61 = arith.constant 0 : index
    %162 = vector.load %arg11[%c0_59, %c0_60, %c0_61] : memref<2x1x32xf32, #tpu.memory_space<vmem>>, vector<1x1x32xf32>
    %163 = vector.shape_cast %162 : vector<1x1x32xf32> to vector<1x32xf32>
    %cst_62 = arith.constant dense<0.000000e+00> : vector<8xf32>
    %164 = vector.multi_reduction <add>, %159, %cst_62 [1] : vector<8x32xf32> to vector<8xf32>
    %165 = vector.shape_cast %164 : vector<8xf32> to vector<8x1xf32>
    %cst_63 = arith.constant 3.200000e+01 : f32
    %166 = vector.broadcast %cst_63 : f32 to vector<8x1xf32>
    %167 = arith.divf %165, %166 : vector<8x1xf32>
    %168 = vector.broadcast %167 : vector<8x1xf32> to vector<8x32xf32>
    %169 = arith.subf %159, %168 : vector<8x32xf32>
    %170 = arith.mulf %169, %169 : vector<8x32xf32>
    %cst_64 = arith.constant dense<0.000000e+00> : vector<8xf32>
    %171 = vector.multi_reduction <add>, %170, %cst_64 [1] : vector<8x32xf32> to vector<8xf32>
    %172 = vector.shape_cast %171 : vector<8xf32> to vector<8x1xf32>
    %cst_65 = arith.constant 3.200000e+01 : f32
    %173 = vector.broadcast %cst_65 : f32 to vector<8x1xf32>
    %174 = arith.divf %172, %173 : vector<8x1xf32>
    %cst_66 = arith.constant 9.99999974E-6 : f32
    %175 = vector.broadcast %cst_66 : f32 to vector<8x1xf32>
    %176 = arith.addf %174, %175 : vector<8x1xf32>
    %177 = math.rsqrt %176 : vector<8x1xf32>
    %178 = vector.broadcast %177 : vector<8x1xf32> to vector<8x32xf32>
    %179 = arith.mulf %169, %178 : vector<8x32xf32>
    %180 = vector.broadcast %161 : vector<1x32xf32> to vector<8x32xf32>
    %181 = arith.mulf %179, %180 : vector<8x32xf32>
    %182 = vector.broadcast %163 : vector<1x32xf32> to vector<8x32xf32>
    %183 = arith.addf %181, %182 : vector<8x32xf32>
    %184 = arith.truncf %183 : vector<8x32xf32> to vector<8x32xbf16>
    %c0_67 = arith.constant 0 : index
    %c0_68 = arith.constant 0 : index
    %c0_69 = arith.constant 0 : index
    %185 = vector.load %arg12[%c0_67, %c0_68, %c0_69] : memref<2x32x128xbf16, #tpu.memory_space<vmem>>, vector<1x32x128xbf16>
    %186 = vector.shape_cast %185 : vector<1x32x128xbf16> to vector<32x128xbf16>
    %cst_70 = arith.constant dense<0.000000e+00> : vector<8x128xf32>
    %187 = tpu.matmul %184, %186, %cst_70 {dimension_numbers = #tpu.dot_dimension_numbers<[1], [0], [0], [1], [0, 0, 1, 1], [], []>} : vector<8x32xbf16>, vector<32x128xbf16>, vector<8x128xf32> -> vector<8x128xf32>
    %c0_71 = arith.constant 0 : index
    %c0_72 = arith.constant 0 : index
    %c0_73 = arith.constant 0 : index
    %188 = vector.load %arg13[%c0_71, %c0_72, %c0_73] : memref<2x1x128xf32, #tpu.memory_space<vmem>>, vector<1x1x128xf32>
    %189 = vector.shape_cast %188 : vector<1x1x128xf32> to vector<1x128xf32>
    %190 = vector.broadcast %189 : vector<1x128xf32> to vector<8x128xf32>
    %191 = arith.addf %187, %190 : vector<8x128xf32>
    %cst_74 = arith.constant 1.702000e+00 : f32
    %192 = vector.broadcast %cst_74 : f32 to vector<8x128xf32>
    %193 = arith.mulf %192, %191 : vector<8x128xf32>
    %194 = arith.negf %193 : vector<8x128xf32>
    %195 = math.exp %194 : vector<8x128xf32>
    %cst_75 = arith.constant 1.000000e+00 : f32
    %196 = vector.broadcast %cst_75 : f32 to vector<8x128xf32>
    %197 = arith.addf %196, %195 : vector<8x128xf32>
    %198 = arith.divf %196, %197 : vector<8x128xf32>
    %199 = arith.mulf %191, %198 : vector<8x128xf32>
    %200 = arith.truncf %199 : vector<8x128xf32> to vector<8x128xbf16>
    %c0_76 = arith.constant 0 : index
    %c0_77 = arith.constant 0 : index
    %c0_78 = arith.constant 0 : index
    %201 = vector.load %arg14[%c0_76, %c0_77, %c0_78] : memref<2x128x32xbf16, #tpu.memory_space<vmem>>, vector<1x128x32xbf16>
    %202 = vector.shape_cast %201 : vector<1x128x32xbf16> to vector<128x32xbf16>
    %cst_79 = arith.constant dense<0.000000e+00> : vector<8x32xf32>
    %203 = tpu.matmul %200, %202, %cst_79 {dimension_numbers = #tpu.dot_dimension_numbers<[1], [0], [0], [1], [0, 0, 1, 1], [], []>} : vector<8x128xbf16>, vector<128x32xbf16>, vector<8x32xf32> -> vector<8x32xf32>
    %204 = arith.addf %159, %203 : vector<8x32xf32>
    %c0_80 = arith.constant 0 : index
    %c0_81 = arith.constant 0 : index
    %c0_82 = arith.constant 0 : index
    %205 = vector.load %arg15[%c0_80, %c0_81, %c0_82] : memref<2x1x32xf32, #tpu.memory_space<vmem>>, vector<1x1x32xf32>
    %206 = vector.shape_cast %205 : vector<1x1x32xf32> to vector<1x32xf32>
    %207 = vector.broadcast %206 : vector<1x32xf32> to vector<8x32xf32>
    %208 = arith.addf %204, %207 : vector<8x32xf32>
    %c1 = arith.constant 1 : index
    %c0_83 = arith.constant 0 : index
    %c0_84 = arith.constant 0 : index
    %209 = vector.load %arg4[%c1, %c0_83, %c0_84] : memref<2x1x32xf32, #tpu.memory_space<vmem>>, vector<1x1x32xf32>
    %210 = vector.shape_cast %209 : vector<1x1x32xf32> to vector<1x32xf32>
    %c1_85 = arith.constant 1 : index
    %c0_86 = arith.constant 0 : index
    %c0_87 = arith.constant 0 : index
    %211 = vector.load %arg5[%c1_85, %c0_86, %c0_87] : memref<2x1x32xf32, #tpu.memory_space<vmem>>, vector<1x1x32xf32>
    %212 = vector.shape_cast %211 : vector<1x1x32xf32> to vector<1x32xf32>
    %cst_88 = arith.constant dense<0.000000e+00> : vector<8xf32>
    %213 = vector.multi_reduction <add>, %208, %cst_88 [1] : vector<8x32xf32> to vector<8xf32>
    %214 = vector.shape_cast %213 : vector<8xf32> to vector<8x1xf32>
    %cst_89 = arith.constant 3.200000e+01 : f32
    %215 = vector.broadcast %cst_89 : f32 to vector<8x1xf32>
    %216 = arith.divf %214, %215 : vector<8x1xf32>
    %217 = vector.broadcast %216 : vector<8x1xf32> to vector<8x32xf32>
    %218 = arith.subf %208, %217 : vector<8x32xf32>
    %219 = arith.mulf %218, %218 : vector<8x32xf32>
    %cst_90 = arith.constant dense<0.000000e+00> : vector<8xf32>
    %220 = vector.multi_reduction <add>, %219, %cst_90 [1] : vector<8x32xf32> to vector<8xf32>
    %221 = vector.shape_cast %220 : vector<8xf32> to vector<8x1xf32>
    %cst_91 = arith.constant 3.200000e+01 : f32
    %222 = vector.broadcast %cst_91 : f32 to vector<8x1xf32>
    %223 = arith.divf %221, %222 : vector<8x1xf32>
    %cst_92 = arith.constant 9.99999974E-6 : f32
    %224 = vector.broadcast %cst_92 : f32 to vector<8x1xf32>
    %225 = arith.addf %223, %224 : vector<8x1xf32>
    %226 = math.rsqrt %225 : vector<8x1xf32>
    %227 = vector.broadcast %226 : vector<8x1xf32> to vector<8x32xf32>
    %228 = arith.mulf %218, %227 : vector<8x32xf32>
    %229 = vector.broadcast %210 : vector<1x32xf32> to vector<8x32xf32>
    %230 = arith.mulf %228, %229 : vector<8x32xf32>
    %231 = vector.broadcast %212 : vector<1x32xf32> to vector<8x32xf32>
    %232 = arith.addf %230, %231 : vector<8x32xf32>
    %233 = arith.truncf %232 : vector<8x32xf32> to vector<8x32xbf16>
    %c1_93 = arith.constant 1 : index
    %c0_94 = arith.constant 0 : index
    %c0_95 = arith.constant 0 : index
    %234 = vector.load %arg6[%c1_93, %c0_94, %c0_95] : memref<2x32x96xbf16, #tpu.memory_space<vmem>>, vector<1x32x96xbf16>
    %235 = vector.shape_cast %234 : vector<1x32x96xbf16> to vector<32x96xbf16>
    %cst_96 = arith.constant dense<0.000000e+00> : vector<8x96xf32>
    %236 = tpu.matmul %233, %235, %cst_96 {dimension_numbers = #tpu.dot_dimension_numbers<[1], [0], [0], [1], [0, 0, 1, 1], [], []>} : vector<8x32xbf16>, vector<32x96xbf16>, vector<8x96xf32> -> vector<8x96xf32>
    %c1_97 = arith.constant 1 : index
    %c0_98 = arith.constant 0 : index
    %c0_99 = arith.constant 0 : index
    %237 = vector.load %arg7[%c1_97, %c0_98, %c0_99] : memref<2x1x96xf32, #tpu.memory_space<vmem>>, vector<1x1x96xf32>
    %238 = vector.shape_cast %237 : vector<1x1x96xf32> to vector<1x96xf32>
    %239 = vector.broadcast %238 : vector<1x96xf32> to vector<8x96xf32>
    %240 = arith.addf %236, %239 : vector<8x96xf32>
    %241 = vector.extract_strided_slice %240 {offsets = [0, 0], sizes = [8, 32], strides = [1, 1]} : vector<8x96xf32> to vector<8x32xf32>
    %242 = vector.extract_strided_slice %240 {offsets = [0, 32], sizes = [8, 32], strides = [1, 1]} : vector<8x96xf32> to vector<8x32xf32>
    %243 = vector.extract_strided_slice %240 {offsets = [0, 64], sizes = [8, 32], strides = [1, 1]} : vector<8x96xf32> to vector<8x32xf32>
    %c1_100 = arith.constant 1 : index
    %c0_101 = arith.constant 0 : index
    %c0_102 = arith.constant 0 : index
    %244 = vector.load %arg8[%c1_100, %c0_101, %c0_102] : memref<2x32x32xbf16, #tpu.memory_space<vmem>>, vector<1x32x32xbf16>
    %245 = vector.shape_cast %244 : vector<1x32x32xbf16> to vector<32x32xbf16>
    %cst_103 = arith.constant 0.000000e+00 : f32
    %246 = vector.broadcast %cst_103 : f32 to vector<8x32xf32>
    %247 = vector.extract_strided_slice %241 {offsets = [0, 0], sizes = [8, 8], strides = [1, 1]} : vector<8x32xf32> to vector<8x8xf32>
    %248 = arith.truncf %247 : vector<8x8xf32> to vector<8x8xbf16>
    %249 = vector.extract_strided_slice %242 {offsets = [0, 0], sizes = [8, 8], strides = [1, 1]} : vector<8x32xf32> to vector<8x8xf32>
    %250 = arith.truncf %249 : vector<8x8xf32> to vector<8x8xbf16>
    %251 = vector.extract_strided_slice %243 {offsets = [0, 0], sizes = [8, 8], strides = [1, 1]} : vector<8x32xf32> to vector<8x8xf32>
    %252 = arith.truncf %251 : vector<8x8xf32> to vector<8x8xbf16>
    %cst_104 = arith.constant dense<0.000000e+00> : vector<8x8xf32>
    %253 = tpu.matmul %248, %250, %cst_104 {dimension_numbers = #tpu.dot_dimension_numbers<[1], [1], [0], [0], [0, 0, 1, 0], [], []>} : vector<8x8xbf16>, vector<8x8xbf16>, vector<8x8xf32> -> vector<8x8xf32>
    %cst_105 = arith.constant 0.353553385 : f32
    %254 = vector.broadcast %cst_105 : f32 to vector<8x8xf32>
    %255 = arith.mulf %253, %254 : vector<8x8xf32>
    %256 = vector.broadcast %8 : vector<1x8xf32> to vector<8x8xf32>
    %257 = arith.addf %255, %256 : vector<8x8xf32>
    %cst_106 = arith.constant dense<0xFF800000> : vector<8xf32>
    %258 = vector.multi_reduction <maximumf>, %257, %cst_106 [1] : vector<8x8xf32> to vector<8xf32>
    %259 = vector.shape_cast %258 : vector<8xf32> to vector<8x1xf32>
    %260 = vector.broadcast %259 : vector<8x1xf32> to vector<8x8xf32>
    %261 = arith.subf %257, %260 : vector<8x8xf32>
    %262 = math.exp %261 : vector<8x8xf32>
    %cst_107 = arith.constant dense<0.000000e+00> : vector<8xf32>
    %263 = vector.multi_reduction <add>, %262, %cst_107 [1] : vector<8x8xf32> to vector<8xf32>
    %264 = vector.shape_cast %263 : vector<8xf32> to vector<8x1xf32>
    %265 = tpu.reciprocal %264 {approx = true} : vector<8x1xf32> -> vector<8x1xf32>
    %266 = vector.broadcast %265 : vector<8x1xf32> to vector<8x8xf32>
    %267 = arith.mulf %262, %266 : vector<8x8xf32>
    %268 = arith.truncf %267 : vector<8x8xf32> to vector<8x8xbf16>
    %cst_108 = arith.constant dense<0.000000e+00> : vector<8x8xf32>
    %269 = tpu.matmul %268, %252, %cst_108 {dimension_numbers = #tpu.dot_dimension_numbers<[1], [0], [0], [1], [0, 0, 1, 1], [], []>} : vector<8x8xbf16>, vector<8x8xbf16>, vector<8x8xf32> -> vector<8x8xf32>
    %270 = arith.truncf %269 : vector<8x8xf32> to vector<8x8xbf16>
    %271 = vector.extract_strided_slice %245 {offsets = [0, 0], sizes = [8, 32], strides = [1, 1]} : vector<32x32xbf16> to vector<8x32xbf16>
    %cst_109 = arith.constant dense<0.000000e+00> : vector<8x32xf32>
    %272 = tpu.matmul %270, %271, %cst_109 {dimension_numbers = #tpu.dot_dimension_numbers<[1], [0], [0], [1], [0, 0, 1, 1], [], []>} : vector<8x8xbf16>, vector<8x32xbf16>, vector<8x32xf32> -> vector<8x32xf32>
    %273 = arith.addf %246, %272 : vector<8x32xf32>
    %274 = vector.extract_strided_slice %241 {offsets = [0, 8], sizes = [8, 8], strides = [1, 1]} : vector<8x32xf32> to vector<8x8xf32>
    %275 = arith.truncf %274 : vector<8x8xf32> to vector<8x8xbf16>
    %276 = vector.extract_strided_slice %242 {offsets = [0, 8], sizes = [8, 8], strides = [1, 1]} : vector<8x32xf32> to vector<8x8xf32>
    %277 = arith.truncf %276 : vector<8x8xf32> to vector<8x8xbf16>
    %278 = vector.extract_strided_slice %243 {offsets = [0, 8], sizes = [8, 8], strides = [1, 1]} : vector<8x32xf32> to vector<8x8xf32>
    %279 = arith.truncf %278 : vector<8x8xf32> to vector<8x8xbf16>
    %cst_110 = arith.constant dense<0.000000e+00> : vector<8x8xf32>
    %280 = tpu.matmul %275, %277, %cst_110 {dimension_numbers = #tpu.dot_dimension_numbers<[1], [1], [0], [0], [0, 0, 1, 0], [], []>} : vector<8x8xbf16>, vector<8x8xbf16>, vector<8x8xf32> -> vector<8x8xf32>
    %cst_111 = arith.constant 0.353553385 : f32
    %281 = vector.broadcast %cst_111 : f32 to vector<8x8xf32>
    %282 = arith.mulf %280, %281 : vector<8x8xf32>
    %283 = vector.broadcast %8 : vector<1x8xf32> to vector<8x8xf32>
    %284 = arith.addf %282, %283 : vector<8x8xf32>
    %cst_112 = arith.constant dense<0xFF800000> : vector<8xf32>
    %285 = vector.multi_reduction <maximumf>, %284, %cst_112 [1] : vector<8x8xf32> to vector<8xf32>
    %286 = vector.shape_cast %285 : vector<8xf32> to vector<8x1xf32>
    %287 = vector.broadcast %286 : vector<8x1xf32> to vector<8x8xf32>
    %288 = arith.subf %284, %287 : vector<8x8xf32>
    %289 = math.exp %288 : vector<8x8xf32>
    %cst_113 = arith.constant dense<0.000000e+00> : vector<8xf32>
    %290 = vector.multi_reduction <add>, %289, %cst_113 [1] : vector<8x8xf32> to vector<8xf32>
    %291 = vector.shape_cast %290 : vector<8xf32> to vector<8x1xf32>
    %292 = tpu.reciprocal %291 {approx = true} : vector<8x1xf32> -> vector<8x1xf32>
    %293 = vector.broadcast %292 : vector<8x1xf32> to vector<8x8xf32>
    %294 = arith.mulf %289, %293 : vector<8x8xf32>
    %295 = arith.truncf %294 : vector<8x8xf32> to vector<8x8xbf16>
    %cst_114 = arith.constant dense<0.000000e+00> : vector<8x8xf32>
    %296 = tpu.matmul %295, %279, %cst_114 {dimension_numbers = #tpu.dot_dimension_numbers<[1], [0], [0], [1], [0, 0, 1, 1], [], []>} : vector<8x8xbf16>, vector<8x8xbf16>, vector<8x8xf32> -> vector<8x8xf32>
    %297 = arith.truncf %296 : vector<8x8xf32> to vector<8x8xbf16>
    %298 = vector.extract_strided_slice %245 {offsets = [8, 0], sizes = [8, 32], strides = [1, 1]} : vector<32x32xbf16> to vector<8x32xbf16>
    %cst_115 = arith.constant dense<0.000000e+00> : vector<8x32xf32>
    %299 = tpu.matmul %297, %298, %cst_115 {dimension_numbers = #tpu.dot_dimension_numbers<[1], [0], [0], [1], [0, 0, 1, 1], [], []>} : vector<8x8xbf16>, vector<8x32xbf16>, vector<8x32xf32> -> vector<8x32xf32>
    %300 = arith.addf %273, %299 : vector<8x32xf32>
    %301 = vector.extract_strided_slice %241 {offsets = [0, 16], sizes = [8, 8], strides = [1, 1]} : vector<8x32xf32> to vector<8x8xf32>
    %302 = arith.truncf %301 : vector<8x8xf32> to vector<8x8xbf16>
    %303 = vector.extract_strided_slice %242 {offsets = [0, 16], sizes = [8, 8], strides = [1, 1]} : vector<8x32xf32> to vector<8x8xf32>
    %304 = arith.truncf %303 : vector<8x8xf32> to vector<8x8xbf16>
    %305 = vector.extract_strided_slice %243 {offsets = [0, 16], sizes = [8, 8], strides = [1, 1]} : vector<8x32xf32> to vector<8x8xf32>
    %306 = arith.truncf %305 : vector<8x8xf32> to vector<8x8xbf16>
    %cst_116 = arith.constant dense<0.000000e+00> : vector<8x8xf32>
    %307 = tpu.matmul %302, %304, %cst_116 {dimension_numbers = #tpu.dot_dimension_numbers<[1], [1], [0], [0], [0, 0, 1, 0], [], []>} : vector<8x8xbf16>, vector<8x8xbf16>, vector<8x8xf32> -> vector<8x8xf32>
    %cst_117 = arith.constant 0.353553385 : f32
    %308 = vector.broadcast %cst_117 : f32 to vector<8x8xf32>
    %309 = arith.mulf %307, %308 : vector<8x8xf32>
    %310 = vector.broadcast %8 : vector<1x8xf32> to vector<8x8xf32>
    %311 = arith.addf %309, %310 : vector<8x8xf32>
    %cst_118 = arith.constant dense<0xFF800000> : vector<8xf32>
    %312 = vector.multi_reduction <maximumf>, %311, %cst_118 [1] : vector<8x8xf32> to vector<8xf32>
    %313 = vector.shape_cast %312 : vector<8xf32> to vector<8x1xf32>
    %314 = vector.broadcast %313 : vector<8x1xf32> to vector<8x8xf32>
    %315 = arith.subf %311, %314 : vector<8x8xf32>
    %316 = math.exp %315 : vector<8x8xf32>
    %cst_119 = arith.constant dense<0.000000e+00> : vector<8xf32>
    %317 = vector.multi_reduction <add>, %316, %cst_119 [1] : vector<8x8xf32> to vector<8xf32>
    %318 = vector.shape_cast %317 : vector<8xf32> to vector<8x1xf32>
    %319 = tpu.reciprocal %318 {approx = true} : vector<8x1xf32> -> vector<8x1xf32>
    %320 = vector.broadcast %319 : vector<8x1xf32> to vector<8x8xf32>
    %321 = arith.mulf %316, %320 : vector<8x8xf32>
    %322 = arith.truncf %321 : vector<8x8xf32> to vector<8x8xbf16>
    %cst_120 = arith.constant dense<0.000000e+00> : vector<8x8xf32>
    %323 = tpu.matmul %322, %306, %cst_120 {dimension_numbers = #tpu.dot_dimension_numbers<[1], [0], [0], [1], [0, 0, 1, 1], [], []>} : vector<8x8xbf16>, vector<8x8xbf16>, vector<8x8xf32> -> vector<8x8xf32>
    %324 = arith.truncf %323 : vector<8x8xf32> to vector<8x8xbf16>
    %325 = vector.extract_strided_slice %245 {offsets = [16, 0], sizes = [8, 32], strides = [1, 1]} : vector<32x32xbf16> to vector<8x32xbf16>
    %cst_121 = arith.constant dense<0.000000e+00> : vector<8x32xf32>
    %326 = tpu.matmul %324, %325, %cst_121 {dimension_numbers = #tpu.dot_dimension_numbers<[1], [0], [0], [1], [0, 0, 1, 1], [], []>} : vector<8x8xbf16>, vector<8x32xbf16>, vector<8x32xf32> -> vector<8x32xf32>
    %327 = arith.addf %300, %326 : vector<8x32xf32>
    %328 = vector.extract_strided_slice %241 {offsets = [0, 24], sizes = [8, 8], strides = [1, 1]} : vector<8x32xf32> to vector<8x8xf32>
    %329 = arith.truncf %328 : vector<8x8xf32> to vector<8x8xbf16>
    %330 = vector.extract_strided_slice %242 {offsets = [0, 24], sizes = [8, 8], strides = [1, 1]} : vector<8x32xf32> to vector<8x8xf32>
    %331 = arith.truncf %330 : vector<8x8xf32> to vector<8x8xbf16>
    %332 = vector.extract_strided_slice %243 {offsets = [0, 24], sizes = [8, 8], strides = [1, 1]} : vector<8x32xf32> to vector<8x8xf32>
    %333 = arith.truncf %332 : vector<8x8xf32> to vector<8x8xbf16>
    %cst_122 = arith.constant dense<0.000000e+00> : vector<8x8xf32>
    %334 = tpu.matmul %329, %331, %cst_122 {dimension_numbers = #tpu.dot_dimension_numbers<[1], [1], [0], [0], [0, 0, 1, 0], [], []>} : vector<8x8xbf16>, vector<8x8xbf16>, vector<8x8xf32> -> vector<8x8xf32>
    %cst_123 = arith.constant 0.353553385 : f32
    %335 = vector.broadcast %cst_123 : f32 to vector<8x8xf32>
    %336 = arith.mulf %334, %335 : vector<8x8xf32>
    %337 = vector.broadcast %8 : vector<1x8xf32> to vector<8x8xf32>
    %338 = arith.addf %336, %337 : vector<8x8xf32>
    %cst_124 = arith.constant dense<0xFF800000> : vector<8xf32>
    %339 = vector.multi_reduction <maximumf>, %338, %cst_124 [1] : vector<8x8xf32> to vector<8xf32>
    %340 = vector.shape_cast %339 : vector<8xf32> to vector<8x1xf32>
    %341 = vector.broadcast %340 : vector<8x1xf32> to vector<8x8xf32>
    %342 = arith.subf %338, %341 : vector<8x8xf32>
    %343 = math.exp %342 : vector<8x8xf32>
    %cst_125 = arith.constant dense<0.000000e+00> : vector<8xf32>
    %344 = vector.multi_reduction <add>, %343, %cst_125 [1] : vector<8x8xf32> to vector<8xf32>
    %345 = vector.shape_cast %344 : vector<8xf32> to vector<8x1xf32>
    %346 = tpu.reciprocal %345 {approx = true} : vector<8x1xf32> -> vector<8x1xf32>
    %347 = vector.broadcast %346 : vector<8x1xf32> to vector<8x8xf32>
    %348 = arith.mulf %343, %347 : vector<8x8xf32>
    %349 = arith.truncf %348 : vector<8x8xf32> to vector<8x8xbf16>
    %cst_126 = arith.constant dense<0.000000e+00> : vector<8x8xf32>
    %350 = tpu.matmul %349, %333, %cst_126 {dimension_numbers = #tpu.dot_dimension_numbers<[1], [0], [0], [1], [0, 0, 1, 1], [], []>} : vector<8x8xbf16>, vector<8x8xbf16>, vector<8x8xf32> -> vector<8x8xf32>
    %351 = arith.truncf %350 : vector<8x8xf32> to vector<8x8xbf16>
    %352 = vector.extract_strided_slice %245 {offsets = [24, 0], sizes = [8, 32], strides = [1, 1]} : vector<32x32xbf16> to vector<8x32xbf16>
    %cst_127 = arith.constant dense<0.000000e+00> : vector<8x32xf32>
    %353 = tpu.matmul %351, %352, %cst_127 {dimension_numbers = #tpu.dot_dimension_numbers<[1], [0], [0], [1], [0, 0, 1, 1], [], []>} : vector<8x8xbf16>, vector<8x32xbf16>, vector<8x32xf32> -> vector<8x32xf32>
    %354 = arith.addf %327, %353 : vector<8x32xf32>
    %355 = arith.addf %208, %354 : vector<8x32xf32>
    %c1_128 = arith.constant 1 : index
    %c0_129 = arith.constant 0 : index
    %c0_130 = arith.constant 0 : index
    %356 = vector.load %arg9[%c1_128, %c0_129, %c0_130] : memref<2x1x32xf32, #tpu.memory_space<vmem>>, vector<1x1x32xf32>
    %357 = vector.shape_cast %356 : vector<1x1x32xf32> to vector<1x32xf32>
    %358 = vector.broadcast %357 : vector<1x32xf32> to vector<8x32xf32>
    %359 = arith.addf %355, %358 : vector<8x32xf32>
    %c1_131 = arith.constant 1 : index
    %c0_132 = arith.constant 0 : index
    %c0_133 = arith.constant 0 : index
    %360 = vector.load %arg10[%c1_131, %c0_132, %c0_133] : memref<2x1x32xf32, #tpu.memory_space<vmem>>, vector<1x1x32xf32>
    %361 = vector.shape_cast %360 : vector<1x1x32xf32> to vector<1x32xf32>
    %c1_134 = arith.constant 1 : index
    %c0_135 = arith.constant 0 : index
    %c0_136 = arith.constant 0 : index
    %362 = vector.load %arg11[%c1_134, %c0_135, %c0_136] : memref<2x1x32xf32, #tpu.memory_space<vmem>>, vector<1x1x32xf32>
    %363 = vector.shape_cast %362 : vector<1x1x32xf32> to vector<1x32xf32>
    %cst_137 = arith.constant dense<0.000000e+00> : vector<8xf32>
    %364 = vector.multi_reduction <add>, %359, %cst_137 [1] : vector<8x32xf32> to vector<8xf32>
    %365 = vector.shape_cast %364 : vector<8xf32> to vector<8x1xf32>
    %cst_138 = arith.constant 3.200000e+01 : f32
    %366 = vector.broadcast %cst_138 : f32 to vector<8x1xf32>
    %367 = arith.divf %365, %366 : vector<8x1xf32>
    %368 = vector.broadcast %367 : vector<8x1xf32> to vector<8x32xf32>
    %369 = arith.subf %359, %368 : vector<8x32xf32>
    %370 = arith.mulf %369, %369 : vector<8x32xf32>
    %cst_139 = arith.constant dense<0.000000e+00> : vector<8xf32>
    %371 = vector.multi_reduction <add>, %370, %cst_139 [1] : vector<8x32xf32> to vector<8xf32>
    %372 = vector.shape_cast %371 : vector<8xf32> to vector<8x1xf32>
    %cst_140 = arith.constant 3.200000e+01 : f32
    %373 = vector.broadcast %cst_140 : f32 to vector<8x1xf32>
    %374 = arith.divf %372, %373 : vector<8x1xf32>
    %cst_141 = arith.constant 9.99999974E-6 : f32
    %375 = vector.broadcast %cst_141 : f32 to vector<8x1xf32>
    %376 = arith.addf %374, %375 : vector<8x1xf32>
    %377 = math.rsqrt %376 : vector<8x1xf32>
    %378 = vector.broadcast %377 : vector<8x1xf32> to vector<8x32xf32>
    %379 = arith.mulf %369, %378 : vector<8x32xf32>
    %380 = vector.broadcast %361 : vector<1x32xf32> to vector<8x32xf32>
    %381 = arith.mulf %379, %380 : vector<8x32xf32>
    %382 = vector.broadcast %363 : vector<1x32xf32> to vector<8x32xf32>
    %383 = arith.addf %381, %382 : vector<8x32xf32>
    %384 = arith.truncf %383 : vector<8x32xf32> to vector<8x32xbf16>
    %c1_142 = arith.constant 1 : index
    %c0_143 = arith.constant 0 : index
    %c0_144 = arith.constant 0 : index
    %385 = vector.load %arg12[%c1_142, %c0_143, %c0_144] : memref<2x32x128xbf16, #tpu.memory_space<vmem>>, vector<1x32x128xbf16>
    %386 = vector.shape_cast %385 : vector<1x32x128xbf16> to vector<32x128xbf16>
    %cst_145 = arith.constant dense<0.000000e+00> : vector<8x128xf32>
    %387 = tpu.matmul %384, %386, %cst_145 {dimension_numbers = #tpu.dot_dimension_numbers<[1], [0], [0], [1], [0, 0, 1, 1], [], []>} : vector<8x32xbf16>, vector<32x128xbf16>, vector<8x128xf32> -> vector<8x128xf32>
    %c1_146 = arith.constant 1 : index
    %c0_147 = arith.constant 0 : index
    %c0_148 = arith.constant 0 : index
    %388 = vector.load %arg13[%c1_146, %c0_147, %c0_148] : memref<2x1x128xf32, #tpu.memory_space<vmem>>, vector<1x1x128xf32>
    %389 = vector.shape_cast %388 : vector<1x1x128xf32> to vector<1x128xf32>
    %390 = vector.broadcast %389 : vector<1x128xf32> to vector<8x128xf32>
    %391 = arith.addf %387, %390 : vector<8x128xf32>
    %cst_149 = arith.constant 1.702000e+00 : f32
    %392 = vector.broadcast %cst_149 : f32 to vector<8x128xf32>
    %393 = arith.mulf %392, %391 : vector<8x128xf32>
    %394 = arith.negf %393 : vector<8x128xf32>
    %395 = math.exp %394 : vector<8x128xf32>
    %cst_150 = arith.constant 1.000000e+00 : f32
    %396 = vector.broadcast %cst_150 : f32 to vector<8x128xf32>
    %397 = arith.addf %396, %395 : vector<8x128xf32>
    %398 = arith.divf %396, %397 : vector<8x128xf32>
    %399 = arith.mulf %391, %398 : vector<8x128xf32>
    %400 = arith.truncf %399 : vector<8x128xf32> to vector<8x128xbf16>
    %c1_151 = arith.constant 1 : index
    %c0_152 = arith.constant 0 : index
    %c0_153 = arith.constant 0 : index
    %401 = vector.load %arg14[%c1_151, %c0_152, %c0_153] : memref<2x128x32xbf16, #tpu.memory_space<vmem>>, vector<1x128x32xbf16>
    %402 = vector.shape_cast %401 : vector<1x128x32xbf16> to vector<128x32xbf16>
    %cst_154 = arith.constant dense<0.000000e+00> : vector<8x32xf32>
    %403 = tpu.matmul %400, %402, %cst_154 {dimension_numbers = #tpu.dot_dimension_numbers<[1], [0], [0], [1], [0, 0, 1, 1], [], []>} : vector<8x128xbf16>, vector<128x32xbf16>, vector<8x32xf32> -> vector<8x32xf32>
    %404 = arith.addf %359, %403 : vector<8x32xf32>
    %c1_155 = arith.constant 1 : index
    %c0_156 = arith.constant 0 : index
    %c0_157 = arith.constant 0 : index
    %405 = vector.load %arg15[%c1_155, %c0_156, %c0_157] : memref<2x1x32xf32, #tpu.memory_space<vmem>>, vector<1x1x32xf32>
    %406 = vector.shape_cast %405 : vector<1x1x32xf32> to vector<1x32xf32>
    %407 = vector.broadcast %406 : vector<1x32xf32> to vector<8x32xf32>
    %408 = arith.addf %404, %407 : vector<8x32xf32>
    %c0_158 = arith.constant 0 : index
    %c0_159 = arith.constant 0 : index
    %c0_160 = arith.constant 0 : index
    %409 = vector.load %arg3[%c0_158, %c0_159, %c0_160] : memref<1x1x8xf32, #tpu.memory_space<vmem>>, vector<1x1x8xf32>
    %410 = vector.shape_cast %409 : vector<1x1x8xf32> to vector<1x8xf32>
    %cst_161 = arith.constant dense<0.000000e+00> : vector<1x32xf32>
    %411 = tpu.matmul %410, %408, %cst_161 {dimension_numbers = #tpu.dot_dimension_numbers<[1], [0], [0], [1], [0, 0, 1, 1], [], []>} : vector<1x8xf32>, vector<8x32xf32>, vector<1x32xf32> -> vector<1x32xf32>
    %c0_162 = arith.constant 0 : index
    %c0_163 = arith.constant 0 : index
    %412 = vector.load %arg16[%c0_162, %c0_163] : memref<1x32xf32, #tpu.memory_space<vmem>>, vector<1x32xf32>
    %c0_164 = arith.constant 0 : index
    %c0_165 = arith.constant 0 : index
    %413 = vector.load %arg17[%c0_164, %c0_165] : memref<1x32xf32, #tpu.memory_space<vmem>>, vector<1x32xf32>
    %cst_166 = arith.constant dense<0.000000e+00> : vector<1xf32>
    %414 = vector.multi_reduction <add>, %411, %cst_166 [1] : vector<1x32xf32> to vector<1xf32>
    %415 = vector.shape_cast %414 : vector<1xf32> to vector<1x1xf32>
    %cst_167 = arith.constant 3.200000e+01 : f32
    %416 = vector.broadcast %cst_167 : f32 to vector<1x1xf32>
    %417 = arith.divf %415, %416 : vector<1x1xf32>
    %418 = vector.broadcast %417 : vector<1x1xf32> to vector<1x32xf32>
    %419 = arith.subf %411, %418 : vector<1x32xf32>
    %420 = arith.mulf %419, %419 : vector<1x32xf32>
    %cst_168 = arith.constant dense<0.000000e+00> : vector<1xf32>
    %421 = vector.multi_reduction <add>, %420, %cst_168 [1] : vector<1x32xf32> to vector<1xf32>
    %422 = vector.shape_cast %421 : vector<1xf32> to vector<1x1xf32>
    %cst_169 = arith.constant 3.200000e+01 : f32
    %423 = vector.broadcast %cst_169 : f32 to vector<1x1xf32>
    %424 = arith.divf %422, %423 : vector<1x1xf32>
    %cst_170 = arith.constant 9.99999974E-6 : f32
    %425 = vector.broadcast %cst_170 : f32 to vector<1x1xf32>
    %426 = arith.addf %424, %425 : vector<1x1xf32>
    %427 = math.rsqrt %426 : vector<1x1xf32>
    %428 = vector.broadcast %427 : vector<1x1xf32> to vector<1x32xf32>
    %429 = arith.mulf %419, %428 : vector<1x32xf32>
    %430 = arith.mulf %429, %412 : vector<1x32xf32>
    %431 = arith.addf %430, %413 : vector<1x32xf32>
    %432 = arith.truncf %431 : vector<1x32xf32> to vector<1x32xbf16>
    %c0_171 = arith.constant 0 : index
    %c0_172 = arith.constant 0 : index
    %433 = vector.load %arg18[%c0_171, %c0_172] : memref<32x32xbf16, #tpu.memory_space<vmem>>, vector<32x32xbf16>
    %cst_173 = arith.constant dense<0.000000e+00> : vector<1x32xf32>
    %434 = tpu.matmul %432, %433, %cst_173 {dimension_numbers = #tpu.dot_dimension_numbers<[1], [0], [0], [1], [0, 0, 1, 1], [], []>} : vector<1x32xbf16>, vector<32x32xbf16>, vector<1x32xf32> -> vector<1x32xf32>
    %435 = arith.mulf %434, %434 : vector<1x32xf32>
    %cst_174 = arith.constant dense<0.000000e+00> : vector<1xf32>
    %436 = vector.multi_reduction <add>, %435, %cst_174 [1] : vector<1x32xf32> to vector<1xf32>
    %437 = vector.shape_cast %436 : vector<1xf32> to vector<1x1xf32>
    %cst_175 = arith.constant 9.99999996E-13 : f32
    %438 = vector.broadcast %cst_175 : f32 to vector<1x1xf32>
    %439 = arith.addf %437, %438 : vector<1x1xf32>
    %440 = math.rsqrt %439 : vector<1x1xf32>
    %441 = vector.broadcast %440 : vector<1x1xf32> to vector<1x32xf32>
    %442 = arith.mulf %434, %441 : vector<1x32xf32>
    %c0_176 = arith.constant 0 : index
    %c0_177 = arith.constant 0 : index
    %c0_178 = arith.constant 0 : index
    %443 = vector.load %arg19[%c0_176, %c0_177, %c0_178] : memref<1x1x32xf32, #tpu.memory_space<vmem>>, vector<1x1x32xf32>
    %444 = vector.shape_cast %443 : vector<1x1x32xf32> to vector<1x32xf32>
    %445 = vector.shape_cast %442 : vector<1x32xf32> to vector<1x1x32xf32>
    tpu.vector_store %arg19[%c0_176, %c0_177, %c0_178], %445 {strides = array<i32>} : memref<1x1x32xf32, #tpu.memory_space<vmem>>, vector<1x1x32xf32>,
    return
  }
  func.func @transform_0(%arg0: i32) -> (i32, i32, i32) {
    %c0_i32 = arith.constant 0 : i32
    %c0_i32_0 = arith.constant 0 : i32
    %c0_i32_1 = arith.constant 0 : i32
    return %arg0, %c0_i32, %c0_i32_0 : i32, i32, i32
  }
  func.func @transform_1(%arg0: i32) -> (i32, i32, i32) {
    %c0_i32 = arith.constant 0 : i32
    %c0_i32_0 = arith.constant 0 : i32
    %c0_i32_1 = arith.constant 0 : i32
    return %arg0, %c0_i32, %c0_i32_0 : i32, i32, i32
  }
  func.func @transform_2(%arg0: i32) -> (i32, i32, i32) {
    %c0_i32 = arith.constant 0 : i32
    %c0_i32_0 = arith.constant 0 : i32
    %c0_i32_1 = arith.constant 0 : i32
    return %arg0, %c0_i32, %c0_i32_0 : i32, i32, i32
  }
  func.func @transform_3(%arg0: i32) -> (i32, i32, i32) {
    %c0_i32 = arith.constant 0 : i32
    %c0_i32_0 = arith.constant 0 : i32
    %c0_i32_1 = arith.constant 0 : i32
    %c0_i32_2 = arith.constant 0 : i32
    return %c0_i32, %c0_i32_0, %c0_i32_1 : i32, i32, i32
  }
  func.func @transform_4(%arg0: i32) -> (i32, i32, i32) {
    %c0_i32 = arith.constant 0 : i32
    %c0_i32_0 = arith.constant 0 : i32
    %c0_i32_1 = arith.constant 0 : i32
    %c0_i32_2 = arith.constant 0 : i32
    return %c0_i32, %c0_i32_0, %c0_i32_1 : i32, i32, i32
  }
  func.func @transform_5(%arg0: i32) -> (i32, i32, i32) {
    %c0_i32 = arith.constant 0 : i32
    %c0_i32_0 = arith.constant 0 : i32
    %c0_i32_1 = arith.constant 0 : i32
    %c0_i32_2 = arith.constant 0 : i32
    return %c0_i32, %c0_i32_0, %c0_i32_1 : i32, i32, i32
  }
  func.func @transform_6(%arg0: i32) -> (i32, i32, i32) {
    %c0_i32 = arith.constant 0 : i32
    %c0_i32_0 = arith.constant 0 : i32
    %c0_i32_1 = arith.constant 0 : i32
    %c0_i32_2 = arith.constant 0 : i32
    return %c0_i32, %c0_i32_0, %c0_i32_1 : i32, i32, i32
  }
  func.func @transform_7(%arg0: i32) -> (i32, i32, i32) {
    %c0_i32 = arith.constant 0 : i32
    %c0_i32_0 = arith.constant 0 : i32
    %c0_i32_1 = arith.constant 0 : i32
    %c0_i32_2 = arith.constant 0 : i32
    return %c0_i32, %c0_i32_0, %c0_i32_1 : i32, i32, i32
  }
  func.func @transform_8(%arg0: i32) -> (i32, i32, i32) {
    %c0_i32 = arith.constant 0 : i32
    %c0_i32_0 = arith.constant 0 : i32
    %c0_i32_1 = arith.constant 0 : i32
    %c0_i32_2 = arith.constant 0 : i32
    return %c0_i32, %c0_i32_0, %c0_i32_1 : i32, i32, i32
  }
  func.func @transform_9(%arg0: i32) -> (i32, i32, i32) {
    %c0_i32 = arith.constant 0 : i32
    %c0_i32_0 = arith.constant 0 : i32
    %c0_i32_1 = arith.constant 0 : i32
    %c0_i32_2 = arith.constant 0 : i32
    return %c0_i32, %c0_i32_0, %c0_i32_1 : i32, i32, i32
  }
  func.func @transform_10(%arg0: i32) -> (i32, i32, i32) {
    %c0_i32 = arith.constant 0 : i32
    %c0_i32_0 = arith.constant 0 : i32
    %c0_i32_1 = arith.constant 0 : i32
    %c0_i32_2 = arith.constant 0 : i32
    return %c0_i32, %c0_i32_0, %c0_i32_1 : i32, i32, i32
  }
  func.func @transform_11(%arg0: i32) -> (i32, i32, i32) {
    %c0_i32 = arith.constant 0 : i32
    %c0_i32_0 = arith.constant 0 : i32
    %c0_i32_1 = arith.constant 0 : i32
    %c0_i32_2 = arith.constant 0 : i32
    return %c0_i32, %c0_i32_0, %c0_i32_1 : i32, i32, i32
  }
  func.func @transform_12(%arg0: i32) -> (i32, i32, i32) {
    %c0_i32 = arith.constant 0 : i32
    %c0_i32_0 = arith.constant 0 : i32
    %c0_i32_1 = arith.constant 0 : i32
    %c0_i32_2 = arith.constant 0 : i32
    return %c0_i32, %c0_i32_0, %c0_i32_1 : i32, i32, i32
  }
  func.func @transform_13(%arg0: i32) -> (i32, i32, i32) {
    %c0_i32 = arith.constant 0 : i32
    %c0_i32_0 = arith.constant 0 : i32
    %c0_i32_1 = arith.constant 0 : i32
    %c0_i32_2 = arith.constant 0 : i32
    return %c0_i32, %c0_i32_0, %c0_i32_1 : i32, i32, i32
  }
  func.func @transform_14(%arg0: i32) -> (i32, i32, i32) {
    %c0_i32 = arith.constant 0 : i32
    %c0_i32_0 = arith.constant 0 : i32
    %c0_i32_1 = arith.constant 0 : i32
    %c0_i32_2 = arith.constant 0 : i32
    return %c0_i32, %c0_i32_0, %c0_i32_1 : i32, i32, i32
  }
  func.func @transform_15(%arg0: i32) -> (i32, i32) {
    %c0_i32 = arith.constant 0 : i32
    %c0_i32_0 = arith.constant 0 : i32
    %c0_i32_1 = arith.constant 0 : i32
    return %c0_i32, %c0_i32_0 : i32, i32
  }
  func.func @transform_16(%arg0: i32) -> (i32, i32) {
    %c0_i32 = arith.constant 0 : i32
    %c0_i32_0 = arith.constant 0 : i32
    %c0_i32_1 = arith.constant 0 : i32
    return %c0_i32, %c0_i32_0 : i32, i32
  }
  func.func @transform_17(%arg0: i32) -> (i32, i32) {
    %c0_i32 = arith.constant 0 : i32
    %c0_i32_0 = arith.constant 0 : i32
    %c0_i32_1 = arith.constant 0 : i32
    return %c0_i32, %c0_i32_0 : i32, i32
  }
  func.func @transform_18(%arg0: i32) -> (i32, i32, i32) {
    %c0_i32 = arith.constant 0 : i32
    %c0_i32_0 = arith.constant 0 : i32
    %c0_i32_1 = arith.constant 0 : i32
    return %arg0, %c0_i32, %c0_i32_0 : i32, i32, i32
  }
}

module attributes {stable_mosaic.version = 11 : i64} {
  func.func @_tower_kernel(%arg0: i32, %arg1: memref<1x8x32xf32, #tpu.memory_space<vmem>>, %arg2: memref<1x1x8xf32, #tpu.memory_space<vmem>>, %arg3: memref<1x1x8xf32, #tpu.memory_space<vmem>>, %arg4: memref<2x1x32xf32, #tpu.memory_space<vmem>>, %arg5: memref<2x1x32xf32, #tpu.memory_space<vmem>>, %arg6: memref<2x32x96xbf16, #tpu.memory_space<vmem>>, %arg7: memref<2x1x96xf32, #tpu.memory_space<vmem>>, %arg8: memref<2x32x32xbf16, #tpu.memory_space<vmem>>, %arg9: memref<2x1x32xf32, #tpu.memory_space<vmem>>, %arg10: memref<2x1x32xf32, #tpu.memory_space<vmem>>, %arg11: memref<2x1x32xf32, #tpu.memory_space<vmem>>, %arg12: memref<2x32x128xbf16, #tpu.memory_space<vmem>>, %arg13: memref<2x1x128xf32, #tpu.memory_space<vmem>>, %arg14: memref<2x128x32xbf16, #tpu.memory_space<vmem>>, %arg15: memref<2x1x32xf32, #tpu.memory_space<vmem>>, %arg16: memref<1x32xf32, #tpu.memory_space<vmem>>, %arg17: memref<1x32xf32, #tpu.memory_space<vmem>>, %arg18: memref<32x32xbf16, #tpu.memory_space<vmem>>, %arg19: memref<1x1x32xf32, #tpu.memory_space<vmem>>) attributes {dimension_semantics = [#tpu.dimension_semantics<parallel>], iteration_bounds = array<i64: 2>, scalar_prefetch = 0 : i64, scratch_operands = 0 : i64, tpu.core_type = #tpu.core_type<tc>, window_params = [{transform_indices = @transform_0, window_bounds = array<i64: 1, 8, 32>}, {transform_indices = @transform_1, window_bounds = array<i64: 1, 1, 8>}, {transform_indices = @transform_2, window_bounds = array<i64: 1, 1, 8>}, {pipeline_mode = #tpu.pipeline_mode<synchronous>, transform_indices = @transform_3, window_bounds = array<i64: 2, 1, 32>}, {pipeline_mode = #tpu.pipeline_mode<synchronous>, transform_indices = @transform_4, window_bounds = array<i64: 2, 1, 32>}, {pipeline_mode = #tpu.pipeline_mode<synchronous>, transform_indices = @transform_5, window_bounds = array<i64: 2, 32, 96>}, {pipeline_mode = #tpu.pipeline_mode<synchronous>, transform_indices = @transform_6, window_bounds = array<i64: 2, 1, 96>}, {pipeline_mode = #tpu.pipeline_mode<synchronous>, transform_indices = @transform_7, window_bounds = array<i64: 2, 32, 32>}, {pipeline_mode = #tpu.pipeline_mode<synchronous>, transform_indices = @transform_8, window_bounds = array<i64: 2, 1, 32>}, {pipeline_mode = #tpu.pipeline_mode<synchronous>, transform_indices = @transform_9, window_bounds = array<i64: 2, 1, 32>}, {pipeline_mode = #tpu.pipeline_mode<synchronous>, transform_indices = @transform_10, window_bounds = array<i64: 2, 1, 32>}, {pipeline_mode = #tpu.pipeline_mode<synchronous>, transform_indices = @transform_11, window_bounds = array<i64: 2, 32, 128>}, {pipeline_mode = #tpu.pipeline_mode<synchronous>, transform_indices = @transform_12, window_bounds = array<i64: 2, 1, 128>}, {pipeline_mode = #tpu.pipeline_mode<synchronous>, transform_indices = @transform_13, window_bounds = array<i64: 2, 128, 32>}, {pipeline_mode = #tpu.pipeline_mode<synchronous>, transform_indices = @transform_14, window_bounds = array<i64: 2, 1, 32>}, {pipeline_mode = #tpu.pipeline_mode<synchronous>, transform_indices = @transform_15, window_bounds = array<i64: 1, 32>}, {pipeline_mode = #tpu.pipeline_mode<synchronous>, transform_indices = @transform_16, window_bounds = array<i64: 1, 32>}, {pipeline_mode = #tpu.pipeline_mode<synchronous>, transform_indices = @transform_17, window_bounds = array<i64: 32, 32>}, {transform_indices = @transform_18, window_bounds = array<i64: 1, 1, 32>}]} {
    %c0 = arith.constant 0 : index
    %c0_0 = arith.constant 0 : index
    %c0_1 = arith.constant 0 : index
    %0 = vector.load %arg1[%c0, %c0_0, %c0_1] : memref<1x8x32xf32, #tpu.memory_space<vmem>>, vector<1x8x32xf32>
    %1 = vector.shape_cast %0 : vector<1x8x32xf32> to vector<8x32xf32>
    %c0_2 = arith.constant 0 : index
    %c0_3 = arith.constant 0 : index
    %c0_4 = arith.constant 0 : index
    %2 = vector.load %arg2[%c0_2, %c0_3, %c0_4] : memref<1x1x8xf32, #tpu.memory_space<vmem>>, vector<1x1x8xf32>
    %3 = vector.shape_cast %2 : vector<1x1x8xf32> to vector<1x8xf32>
    %cst = arith.constant 5.000000e-01 : f32
    %4 = vector.broadcast %cst : f32 to vector<1x8xf32>
    %5 = arith.cmpf ogt, %3, %4 : vector<1x8xf32>
    %cst_5 = arith.constant 0.000000e+00 : f32
    %cst_6 = arith.constant -1.000000e+09 : f32
    %6 = vector.broadcast %cst_5 : f32 to vector<1x8xf32>
    %7 = vector.broadcast %cst_6 : f32 to vector<1x8xf32>
    %8 = arith.select %5, %6, %7 : vector<1x8xi1>, vector<1x8xf32>
    %9 = tpu.iota {dimensions = array<i32: 0>} : vector<8x8xi32>
    %10 = tpu.iota {dimensions = array<i32: 1>} : vector<8x8xi32>
    %11 = arith.cmpi sgt, %10, %9 : vector<8x8xi32>
    %cst_7 = arith.constant -1.000000e+09 : f32
    %cst_8 = arith.constant 0.000000e+00 : f32
    %12 = vector.broadcast %cst_7 : f32 to vector<8x8xf32>
    %13 = vector.broadcast %cst_8 : f32 to vector<8x8xf32>
    %14 = arith.select %11, %12, %13 : vector<8x8xi1>, vector<8x8xf32>
    %15 = vector.broadcast %8 : vector<1x8xf32> to vector<8x8xf32>
    %16 = arith.addf %15, %14 : vector<8x8xf32>
    %c0_9 = arith.constant 0 : index
    %c0_10 = arith.constant 0 : index
    %c0_11 = arith.constant 0 : index
    %17 = vector.load %arg4[%c0_9, %c0_10, %c0_11] : memref<2x1x32xf32, #tpu.memory_space<vmem>>, vector<1x1x32xf32>
    %18 = vector.shape_cast %17 : vector<1x1x32xf32> to vector<1x32xf32>
    %c0_12 = arith.constant 0 : index
    %c0_13 = arith.constant 0 : index
    %c0_14 = arith.constant 0 : index
    %19 = vector.load %arg5[%c0_12, %c0_13, %c0_14] : memref<2x1x32xf32, #tpu.memory_space<vmem>>, vector<1x1x32xf32>
    %20 = vector.shape_cast %19 : vector<1x1x32xf32> to vector<1x32xf32>
    %cst_15 = arith.constant dense<0.000000e+00> : vector<8xf32>
    %21 = vector.multi_reduction <add>, %1, %cst_15 [1] : vector<8x32xf32> to vector<8xf32>
    %22 = vector.shape_cast %21 : vector<8xf32> to vector<8x1xf32>
    %cst_16 = arith.constant 3.200000e+01 : f32
    %23 = vector.broadcast %cst_16 : f32 to vector<8x1xf32>
    %24 = arith.divf %22, %23 : vector<8x1xf32>
    %25 = vector.broadcast %24 : vector<8x1xf32> to vector<8x32xf32>
    %26 = arith.subf %1, %25 : vector<8x32xf32>
    %27 = arith.mulf %26, %26 : vector<8x32xf32>
    %cst_17 = arith.constant dense<0.000000e+00> : vector<8xf32>
    %28 = vector.multi_reduction <add>, %27, %cst_17 [1] : vector<8x32xf32> to vector<8xf32>
    %29 = vector.shape_cast %28 : vector<8xf32> to vector<8x1xf32>
    %cst_18 = arith.constant 3.200000e+01 : f32
    %30 = vector.broadcast %cst_18 : f32 to vector<8x1xf32>
    %31 = arith.divf %29, %30 : vector<8x1xf32>
    %cst_19 = arith.constant 9.99999974E-6 : f32
    %32 = vector.broadcast %cst_19 : f32 to vector<8x1xf32>
    %33 = arith.addf %31, %32 : vector<8x1xf32>
    %34 = math.rsqrt %33 : vector<8x1xf32>
    %35 = vector.broadcast %34 : vector<8x1xf32> to vector<8x32xf32>
    %36 = arith.mulf %26, %35 : vector<8x32xf32>
    %37 = vector.broadcast %18 : vector<1x32xf32> to vector<8x32xf32>
    %38 = arith.mulf %36, %37 : vector<8x32xf32>
    %39 = vector.broadcast %20 : vector<1x32xf32> to vector<8x32xf32>
    %40 = arith.addf %38, %39 : vector<8x32xf32>
    %41 = arith.truncf %40 : vector<8x32xf32> to vector<8x32xbf16>
    %c0_20 = arith.constant 0 : index
    %c0_21 = arith.constant 0 : index
    %c0_22 = arith.constant 0 : index
    %42 = vector.load %arg6[%c0_20, %c0_21, %c0_22] : memref<2x32x96xbf16, #tpu.memory_space<vmem>>, vector<1x32x96xbf16>
    %43 = vector.shape_cast %42 : vector<1x32x96xbf16> to vector<32x96xbf16>
    %cst_23 = arith.constant dense<0.000000e+00> : vector<8x96xf32>
    %44 = tpu.matmul %41, %43, %cst_23 {dimension_numbers = #tpu.dot_dimension_numbers<[1], [0], [0], [1], [0, 0, 1, 1], [], []>} : vector<8x32xbf16>, vector<32x96xbf16>, vector<8x96xf32> -> vector<8x96xf32>
    %c0_24 = arith.constant 0 : index
    %c0_25 = arith.constant 0 : index
    %c0_26 = arith.constant 0 : index
    %45 = vector.load %arg7[%c0_24, %c0_25, %c0_26] : memref<2x1x96xf32, #tpu.memory_space<vmem>>, vector<1x1x96xf32>
    %46 = vector.shape_cast %45 : vector<1x1x96xf32> to vector<1x96xf32>
    %47 = vector.broadcast %46 : vector<1x96xf32> to vector<8x96xf32>
    %48 = arith.addf %44, %47 : vector<8x96xf32>
    %49 = vector.extract_strided_slice %48 {offsets = [0, 0], sizes = [8, 32], strides = [1, 1]} : vector<8x96xf32> to vector<8x32xf32>
    %50 = vector.extract_strided_slice %48 {offsets = [0, 32], sizes = [8, 32], strides = [1, 1]} : vector<8x96xf32> to vector<8x32xf32>
    %51 = vector.extract_strided_slice %48 {offsets = [0, 64], sizes = [8, 32], strides = [1, 1]} : vector<8x96xf32> to vector<8x32xf32>
    %c0_27 = arith.constant 0 : index
    %c0_28 = arith.constant 0 : index
    %c0_29 = arith.constant 0 : index
    %52 = vector.load %arg8[%c0_27, %c0_28, %c0_29] : memref<2x32x32xbf16, #tpu.memory_space<vmem>>, vector<1x32x32xbf16>
    %53 = vector.shape_cast %52 : vector<1x32x32xbf16> to vector<32x32xbf16>
    %cst_30 = arith.constant 0.000000e+00 : f32
    %54 = vector.broadcast %cst_30 : f32 to vector<8x32xf32>
    %55 = vector.extract_strided_slice %49 {offsets = [0, 0], sizes = [8, 8], strides = [1, 1]} : vector<8x32xf32> to vector<8x8xf32>
    %56 = arith.truncf %55 : vector<8x8xf32> to vector<8x8xbf16>
    %57 = vector.extract_strided_slice %50 {offsets = [0, 0], sizes = [8, 8], strides = [1, 1]} : vector<8x32xf32> to vector<8x8xf32>
    %58 = arith.truncf %57 : vector<8x8xf32> to vector<8x8xbf16>
    %59 = vector.extract_strided_slice %51 {offsets = [0, 0], sizes = [8, 8], strides = [1, 1]} : vector<8x32xf32> to vector<8x8xf32>
    %60 = arith.truncf %59 : vector<8x8xf32> to vector<8x8xbf16>
    %cst_31 = arith.constant dense<0.000000e+00> : vector<8x8xf32>
    %61 = tpu.matmul %56, %58, %cst_31 {dimension_numbers = #tpu.dot_dimension_numbers<[1], [1], [0], [0], [0, 0, 1, 0], [], []>} : vector<8x8xbf16>, vector<8x8xbf16>, vector<8x8xf32> -> vector<8x8xf32>
    %cst_32 = arith.constant 0.353553385 : f32
    %62 = vector.broadcast %cst_32 : f32 to vector<8x8xf32>
    %63 = arith.mulf %61, %62 : vector<8x8xf32>
    %64 = arith.addf %63, %16 : vector<8x8xf32>
    %cst_33 = arith.constant dense<0xFF800000> : vector<8xf32>
    %65 = vector.multi_reduction <maximumf>, %64, %cst_33 [1] : vector<8x8xf32> to vector<8xf32>
    %66 = vector.shape_cast %65 : vector<8xf32> to vector<8x1xf32>
    %67 = vector.broadcast %66 : vector<8x1xf32> to vector<8x8xf32>
    %68 = arith.subf %64, %67 : vector<8x8xf32>
    %69 = math.exp %68 : vector<8x8xf32>
    %cst_34 = arith.constant dense<0.000000e+00> : vector<8xf32>
    %70 = vector.multi_reduction <add>, %69, %cst_34 [1] : vector<8x8xf32> to vector<8xf32>
    %71 = vector.shape_cast %70 : vector<8xf32> to vector<8x1xf32>
    %72 = tpu.reciprocal %71 {approx = true} : vector<8x1xf32> -> vector<8x1xf32>
    %73 = vector.broadcast %72 : vector<8x1xf32> to vector<8x8xf32>
    %74 = arith.mulf %69, %73 : vector<8x8xf32>
    %75 = arith.truncf %74 : vector<8x8xf32> to vector<8x8xbf16>
    %cst_35 = arith.constant dense<0.000000e+00> : vector<8x8xf32>
    %76 = tpu.matmul %75, %60, %cst_35 {dimension_numbers = #tpu.dot_dimension_numbers<[1], [0], [0], [1], [0, 0, 1, 1], [], []>} : vector<8x8xbf16>, vector<8x8xbf16>, vector<8x8xf32> -> vector<8x8xf32>
    %77 = arith.truncf %76 : vector<8x8xf32> to vector<8x8xbf16>
    %78 = vector.extract_strided_slice %53 {offsets = [0, 0], sizes = [8, 32], strides = [1, 1]} : vector<32x32xbf16> to vector<8x32xbf16>
    %cst_36 = arith.constant dense<0.000000e+00> : vector<8x32xf32>
    %79 = tpu.matmul %77, %78, %cst_36 {dimension_numbers = #tpu.dot_dimension_numbers<[1], [0], [0], [1], [0, 0, 1, 1], [], []>} : vector<8x8xbf16>, vector<8x32xbf16>, vector<8x32xf32> -> vector<8x32xf32>
    %80 = arith.addf %54, %79 : vector<8x32xf32>
    %81 = vector.extract_strided_slice %49 {offsets = [0, 8], sizes = [8, 8], strides = [1, 1]} : vector<8x32xf32> to vector<8x8xf32>
    %82 = arith.truncf %81 : vector<8x8xf32> to vector<8x8xbf16>
    %83 = vector.extract_strided_slice %50 {offsets = [0, 8], sizes = [8, 8], strides = [1, 1]} : vector<8x32xf32> to vector<8x8xf32>
    %84 = arith.truncf %83 : vector<8x8xf32> to vector<8x8xbf16>
    %85 = vector.extract_strided_slice %51 {offsets = [0, 8], sizes = [8, 8], strides = [1, 1]} : vector<8x32xf32> to vector<8x8xf32>
    %86 = arith.truncf %85 : vector<8x8xf32> to vector<8x8xbf16>
    %cst_37 = arith.constant dense<0.000000e+00> : vector<8x8xf32>
    %87 = tpu.matmul %82, %84, %cst_37 {dimension_numbers = #tpu.dot_dimension_numbers<[1], [1], [0], [0], [0, 0, 1, 0], [], []>} : vector<8x8xbf16>, vector<8x8xbf16>, vector<8x8xf32> -> vector<8x8xf32>
    %cst_38 = arith.constant 0.353553385 : f32
    %88 = vector.broadcast %cst_38 : f32 to vector<8x8xf32>
    %89 = arith.mulf %87, %88 : vector<8x8xf32>
    %90 = arith.addf %89, %16 : vector<8x8xf32>
    %cst_39 = arith.constant dense<0xFF800000> : vector<8xf32>
    %91 = vector.multi_reduction <maximumf>, %90, %cst_39 [1] : vector<8x8xf32> to vector<8xf32>
    %92 = vector.shape_cast %91 : vector<8xf32> to vector<8x1xf32>
    %93 = vector.broadcast %92 : vector<8x1xf32> to vector<8x8xf32>
    %94 = arith.subf %90, %93 : vector<8x8xf32>
    %95 = math.exp %94 : vector<8x8xf32>
    %cst_40 = arith.constant dense<0.000000e+00> : vector<8xf32>
    %96 = vector.multi_reduction <add>, %95, %cst_40 [1] : vector<8x8xf32> to vector<8xf32>
    %97 = vector.shape_cast %96 : vector<8xf32> to vector<8x1xf32>
    %98 = tpu.reciprocal %97 {approx = true} : vector<8x1xf32> -> vector<8x1xf32>
    %99 = vector.broadcast %98 : vector<8x1xf32> to vector<8x8xf32>
    %100 = arith.mulf %95, %99 : vector<8x8xf32>
    %101 = arith.truncf %100 : vector<8x8xf32> to vector<8x8xbf16>
    %cst_41 = arith.constant dense<0.000000e+00> : vector<8x8xf32>
    %102 = tpu.matmul %101, %86, %cst_41 {dimension_numbers = #tpu.dot_dimension_numbers<[1], [0], [0], [1], [0, 0, 1, 1], [], []>} : vector<8x8xbf16>, vector<8x8xbf16>, vector<8x8xf32> -> vector<8x8xf32>
    %103 = arith.truncf %102 : vector<8x8xf32> to vector<8x8xbf16>
    %104 = vector.extract_strided_slice %53 {offsets = [8, 0], sizes = [8, 32], strides = [1, 1]} : vector<32x32xbf16> to vector<8x32xbf16>
    %cst_42 = arith.constant dense<0.000000e+00> : vector<8x32xf32>
    %105 = tpu.matmul %103, %104, %cst_42 {dimension_numbers = #tpu.dot_dimension_numbers<[1], [0], [0], [1], [0, 0, 1, 1], [], []>} : vector<8x8xbf16>, vector<8x32xbf16>, vector<8x32xf32> -> vector<8x32xf32>
    %106 = arith.addf %80, %105 : vector<8x32xf32>
    %107 = vector.extract_strided_slice %49 {offsets = [0, 16], sizes = [8, 8], strides = [1, 1]} : vector<8x32xf32> to vector<8x8xf32>
    %108 = arith.truncf %107 : vector<8x8xf32> to vector<8x8xbf16>
    %109 = vector.extract_strided_slice %50 {offsets = [0, 16], sizes = [8, 8], strides = [1, 1]} : vector<8x32xf32> to vector<8x8xf32>
    %110 = arith.truncf %109 : vector<8x8xf32> to vector<8x8xbf16>
    %111 = vector.extract_strided_slice %51 {offsets = [0, 16], sizes = [8, 8], strides = [1, 1]} : vector<8x32xf32> to vector<8x8xf32>
    %112 = arith.truncf %111 : vector<8x8xf32> to vector<8x8xbf16>
    %cst_43 = arith.constant dense<0.000000e+00> : vector<8x8xf32>
    %113 = tpu.matmul %108, %110, %cst_43 {dimension_numbers = #tpu.dot_dimension_numbers<[1], [1], [0], [0], [0, 0, 1, 0], [], []>} : vector<8x8xbf16>, vector<8x8xbf16>, vector<8x8xf32> -> vector<8x8xf32>
    %cst_44 = arith.constant 0.353553385 : f32
    %114 = vector.broadcast %cst_44 : f32 to vector<8x8xf32>
    %115 = arith.mulf %113, %114 : vector<8x8xf32>
    %116 = arith.addf %115, %16 : vector<8x8xf32>
    %cst_45 = arith.constant dense<0xFF800000> : vector<8xf32>
    %117 = vector.multi_reduction <maximumf>, %116, %cst_45 [1] : vector<8x8xf32> to vector<8xf32>
    %118 = vector.shape_cast %117 : vector<8xf32> to vector<8x1xf32>
    %119 = vector.broadcast %118 : vector<8x1xf32> to vector<8x8xf32>
    %120 = arith.subf %116, %119 : vector<8x8xf32>
    %121 = math.exp %120 : vector<8x8xf32>
    %cst_46 = arith.constant dense<0.000000e+00> : vector<8xf32>
    %122 = vector.multi_reduction <add>, %121, %cst_46 [1] : vector<8x8xf32> to vector<8xf32>
    %123 = vector.shape_cast %122 : vector<8xf32> to vector<8x1xf32>
    %124 = tpu.reciprocal %123 {approx = true} : vector<8x1xf32> -> vector<8x1xf32>
    %125 = vector.broadcast %124 : vector<8x1xf32> to vector<8x8xf32>
    %126 = arith.mulf %121, %125 : vector<8x8xf32>
    %127 = arith.truncf %126 : vector<8x8xf32> to vector<8x8xbf16>
    %cst_47 = arith.constant dense<0.000000e+00> : vector<8x8xf32>
    %128 = tpu.matmul %127, %112, %cst_47 {dimension_numbers = #tpu.dot_dimension_numbers<[1], [0], [0], [1], [0, 0, 1, 1], [], []>} : vector<8x8xbf16>, vector<8x8xbf16>, vector<8x8xf32> -> vector<8x8xf32>
    %129 = arith.truncf %128 : vector<8x8xf32> to vector<8x8xbf16>
    %130 = vector.extract_strided_slice %53 {offsets = [16, 0], sizes = [8, 32], strides = [1, 1]} : vector<32x32xbf16> to vector<8x32xbf16>
    %cst_48 = arith.constant dense<0.000000e+00> : vector<8x32xf32>
    %131 = tpu.matmul %129, %130, %cst_48 {dimension_numbers = #tpu.dot_dimension_numbers<[1], [0], [0], [1], [0, 0, 1, 1], [], []>} : vector<8x8xbf16>, vector<8x32xbf16>, vector<8x32xf32> -> vector<8x32xf32>
    %132 = arith.addf %106, %131 : vector<8x32xf32>
    %133 = vector.extract_strided_slice %49 {offsets = [0, 24], sizes = [8, 8], strides = [1, 1]} : vector<8x32xf32> to vector<8x8xf32>
    %134 = arith.truncf %133 : vector<8x8xf32> to vector<8x8xbf16>
    %135 = vector.extract_strided_slice %50 {offsets = [0, 24], sizes = [8, 8], strides = [1, 1]} : vector<8x32xf32> to vector<8x8xf32>
    %136 = arith.truncf %135 : vector<8x8xf32> to vector<8x8xbf16>
    %137 = vector.extract_strided_slice %51 {offsets = [0, 24], sizes = [8, 8], strides = [1, 1]} : vector<8x32xf32> to vector<8x8xf32>
    %138 = arith.truncf %137 : vector<8x8xf32> to vector<8x8xbf16>
    %cst_49 = arith.constant dense<0.000000e+00> : vector<8x8xf32>
    %139 = tpu.matmul %134, %136, %cst_49 {dimension_numbers = #tpu.dot_dimension_numbers<[1], [1], [0], [0], [0, 0, 1, 0], [], []>} : vector<8x8xbf16>, vector<8x8xbf16>, vector<8x8xf32> -> vector<8x8xf32>
    %cst_50 = arith.constant 0.353553385 : f32
    %140 = vector.broadcast %cst_50 : f32 to vector<8x8xf32>
    %141 = arith.mulf %139, %140 : vector<8x8xf32>
    %142 = arith.addf %141, %16 : vector<8x8xf32>
    %cst_51 = arith.constant dense<0xFF800000> : vector<8xf32>
    %143 = vector.multi_reduction <maximumf>, %142, %cst_51 [1] : vector<8x8xf32> to vector<8xf32>
    %144 = vector.shape_cast %143 : vector<8xf32> to vector<8x1xf32>
    %145 = vector.broadcast %144 : vector<8x1xf32> to vector<8x8xf32>
    %146 = arith.subf %142, %145 : vector<8x8xf32>
    %147 = math.exp %146 : vector<8x8xf32>
    %cst_52 = arith.constant dense<0.000000e+00> : vector<8xf32>
    %148 = vector.multi_reduction <add>, %147, %cst_52 [1] : vector<8x8xf32> to vector<8xf32>
    %149 = vector.shape_cast %148 : vector<8xf32> to vector<8x1xf32>
    %150 = tpu.reciprocal %149 {approx = true} : vector<8x1xf32> -> vector<8x1xf32>
    %151 = vector.broadcast %150 : vector<8x1xf32> to vector<8x8xf32>
    %152 = arith.mulf %147, %151 : vector<8x8xf32>
    %153 = arith.truncf %152 : vector<8x8xf32> to vector<8x8xbf16>
    %cst_53 = arith.constant dense<0.000000e+00> : vector<8x8xf32>
    %154 = tpu.matmul %153, %138, %cst_53 {dimension_numbers = #tpu.dot_dimension_numbers<[1], [0], [0], [1], [0, 0, 1, 1], [], []>} : vector<8x8xbf16>, vector<8x8xbf16>, vector<8x8xf32> -> vector<8x8xf32>
    %155 = arith.truncf %154 : vector<8x8xf32> to vector<8x8xbf16>
    %156 = vector.extract_strided_slice %53 {offsets = [24, 0], sizes = [8, 32], strides = [1, 1]} : vector<32x32xbf16> to vector<8x32xbf16>
    %cst_54 = arith.constant dense<0.000000e+00> : vector<8x32xf32>
    %157 = tpu.matmul %155, %156, %cst_54 {dimension_numbers = #tpu.dot_dimension_numbers<[1], [0], [0], [1], [0, 0, 1, 1], [], []>} : vector<8x8xbf16>, vector<8x32xbf16>, vector<8x32xf32> -> vector<8x32xf32>
    %158 = arith.addf %132, %157 : vector<8x32xf32>
    %159 = arith.addf %1, %158 : vector<8x32xf32>
    %c0_55 = arith.constant 0 : index
    %c0_56 = arith.constant 0 : index
    %c0_57 = arith.constant 0 : index
    %160 = vector.load %arg9[%c0_55, %c0_56, %c0_57] : memref<2x1x32xf32, #tpu.memory_space<vmem>>, vector<1x1x32xf32>
    %161 = vector.shape_cast %160 : vector<1x1x32xf32> to vector<1x32xf32>
    %162 = vector.broadcast %161 : vector<1x32xf32> to vector<8x32xf32>
    %163 = arith.addf %159, %162 : vector<8x32xf32>
    %c0_58 = arith.constant 0 : index
    %c0_59 = arith.constant 0 : index
    %c0_60 = arith.constant 0 : index
    %164 = vector.load %arg10[%c0_58, %c0_59, %c0_60] : memref<2x1x32xf32, #tpu.memory_space<vmem>>, vector<1x1x32xf32>
    %165 = vector.shape_cast %164 : vector<1x1x32xf32> to vector<1x32xf32>
    %c0_61 = arith.constant 0 : index
    %c0_62 = arith.constant 0 : index
    %c0_63 = arith.constant 0 : index
    %166 = vector.load %arg11[%c0_61, %c0_62, %c0_63] : memref<2x1x32xf32, #tpu.memory_space<vmem>>, vector<1x1x32xf32>
    %167 = vector.shape_cast %166 : vector<1x1x32xf32> to vector<1x32xf32>
    %cst_64 = arith.constant dense<0.000000e+00> : vector<8xf32>
    %168 = vector.multi_reduction <add>, %163, %cst_64 [1] : vector<8x32xf32> to vector<8xf32>
    %169 = vector.shape_cast %168 : vector<8xf32> to vector<8x1xf32>
    %cst_65 = arith.constant 3.200000e+01 : f32
    %170 = vector.broadcast %cst_65 : f32 to vector<8x1xf32>
    %171 = arith.divf %169, %170 : vector<8x1xf32>
    %172 = vector.broadcast %171 : vector<8x1xf32> to vector<8x32xf32>
    %173 = arith.subf %163, %172 : vector<8x32xf32>
    %174 = arith.mulf %173, %173 : vector<8x32xf32>
    %cst_66 = arith.constant dense<0.000000e+00> : vector<8xf32>
    %175 = vector.multi_reduction <add>, %174, %cst_66 [1] : vector<8x32xf32> to vector<8xf32>
    %176 = vector.shape_cast %175 : vector<8xf32> to vector<8x1xf32>
    %cst_67 = arith.constant 3.200000e+01 : f32
    %177 = vector.broadcast %cst_67 : f32 to vector<8x1xf32>
    %178 = arith.divf %176, %177 : vector<8x1xf32>
    %cst_68 = arith.constant 9.99999974E-6 : f32
    %179 = vector.broadcast %cst_68 : f32 to vector<8x1xf32>
    %180 = arith.addf %178, %179 : vector<8x1xf32>
    %181 = math.rsqrt %180 : vector<8x1xf32>
    %182 = vector.broadcast %181 : vector<8x1xf32> to vector<8x32xf32>
    %183 = arith.mulf %173, %182 : vector<8x32xf32>
    %184 = vector.broadcast %165 : vector<1x32xf32> to vector<8x32xf32>
    %185 = arith.mulf %183, %184 : vector<8x32xf32>
    %186 = vector.broadcast %167 : vector<1x32xf32> to vector<8x32xf32>
    %187 = arith.addf %185, %186 : vector<8x32xf32>
    %188 = arith.truncf %187 : vector<8x32xf32> to vector<8x32xbf16>
    %c0_69 = arith.constant 0 : index
    %c0_70 = arith.constant 0 : index
    %c0_71 = arith.constant 0 : index
    %189 = vector.load %arg12[%c0_69, %c0_70, %c0_71] : memref<2x32x128xbf16, #tpu.memory_space<vmem>>, vector<1x32x128xbf16>
    %190 = vector.shape_cast %189 : vector<1x32x128xbf16> to vector<32x128xbf16>
    %cst_72 = arith.constant dense<0.000000e+00> : vector<8x128xf32>
    %191 = tpu.matmul %188, %190, %cst_72 {dimension_numbers = #tpu.dot_dimension_numbers<[1], [0], [0], [1], [0, 0, 1, 1], [], []>} : vector<8x32xbf16>, vector<32x128xbf16>, vector<8x128xf32> -> vector<8x128xf32>
    %c0_73 = arith.constant 0 : index
    %c0_74 = arith.constant 0 : index
    %c0_75 = arith.constant 0 : index
    %192 = vector.load %arg13[%c0_73, %c0_74, %c0_75] : memref<2x1x128xf32, #tpu.memory_space<vmem>>, vector<1x1x128xf32>
    %193 = vector.shape_cast %192 : vector<1x1x128xf32> to vector<1x128xf32>
    %194 = vector.broadcast %193 : vector<1x128xf32> to vector<8x128xf32>
    %195 = arith.addf %191, %194 : vector<8x128xf32>
    %cst_76 = arith.constant 1.702000e+00 : f32
    %196 = vector.broadcast %cst_76 : f32 to vector<8x128xf32>
    %197 = arith.mulf %196, %195 : vector<8x128xf32>
    %198 = arith.negf %197 : vector<8x128xf32>
    %199 = math.exp %198 : vector<8x128xf32>
    %cst_77 = arith.constant 1.000000e+00 : f32
    %200 = vector.broadcast %cst_77 : f32 to vector<8x128xf32>
    %201 = arith.addf %200, %199 : vector<8x128xf32>
    %202 = arith.divf %200, %201 : vector<8x128xf32>
    %203 = arith.mulf %195, %202 : vector<8x128xf32>
    %204 = arith.truncf %203 : vector<8x128xf32> to vector<8x128xbf16>
    %c0_78 = arith.constant 0 : index
    %c0_79 = arith.constant 0 : index
    %c0_80 = arith.constant 0 : index
    %205 = vector.load %arg14[%c0_78, %c0_79, %c0_80] : memref<2x128x32xbf16, #tpu.memory_space<vmem>>, vector<1x128x32xbf16>
    %206 = vector.shape_cast %205 : vector<1x128x32xbf16> to vector<128x32xbf16>
    %cst_81 = arith.constant dense<0.000000e+00> : vector<8x32xf32>
    %207 = tpu.matmul %204, %206, %cst_81 {dimension_numbers = #tpu.dot_dimension_numbers<[1], [0], [0], [1], [0, 0, 1, 1], [], []>} : vector<8x128xbf16>, vector<128x32xbf16>, vector<8x32xf32> -> vector<8x32xf32>
    %208 = arith.addf %163, %207 : vector<8x32xf32>
    %c0_82 = arith.constant 0 : index
    %c0_83 = arith.constant 0 : index
    %c0_84 = arith.constant 0 : index
    %209 = vector.load %arg15[%c0_82, %c0_83, %c0_84] : memref<2x1x32xf32, #tpu.memory_space<vmem>>, vector<1x1x32xf32>
    %210 = vector.shape_cast %209 : vector<1x1x32xf32> to vector<1x32xf32>
    %211 = vector.broadcast %210 : vector<1x32xf32> to vector<8x32xf32>
    %212 = arith.addf %208, %211 : vector<8x32xf32>
    %c1 = arith.constant 1 : index
    %c0_85 = arith.constant 0 : index
    %c0_86 = arith.constant 0 : index
    %213 = vector.load %arg4[%c1, %c0_85, %c0_86] : memref<2x1x32xf32, #tpu.memory_space<vmem>>, vector<1x1x32xf32>
    %214 = vector.shape_cast %213 : vector<1x1x32xf32> to vector<1x32xf32>
    %c1_87 = arith.constant 1 : index
    %c0_88 = arith.constant 0 : index
    %c0_89 = arith.constant 0 : index
    %215 = vector.load %arg5[%c1_87, %c0_88, %c0_89] : memref<2x1x32xf32, #tpu.memory_space<vmem>>, vector<1x1x32xf32>
    %216 = vector.shape_cast %215 : vector<1x1x32xf32> to vector<1x32xf32>
    %cst_90 = arith.constant dense<0.000000e+00> : vector<8xf32>
    %217 = vector.multi_reduction <add>, %212, %cst_90 [1] : vector<8x32xf32> to vector<8xf32>
    %218 = vector.shape_cast %217 : vector<8xf32> to vector<8x1xf32>
    %cst_91 = arith.constant 3.200000e+01 : f32
    %219 = vector.broadcast %cst_91 : f32 to vector<8x1xf32>
    %220 = arith.divf %218, %219 : vector<8x1xf32>
    %221 = vector.broadcast %220 : vector<8x1xf32> to vector<8x32xf32>
    %222 = arith.subf %212, %221 : vector<8x32xf32>
    %223 = arith.mulf %222, %222 : vector<8x32xf32>
    %cst_92 = arith.constant dense<0.000000e+00> : vector<8xf32>
    %224 = vector.multi_reduction <add>, %223, %cst_92 [1] : vector<8x32xf32> to vector<8xf32>
    %225 = vector.shape_cast %224 : vector<8xf32> to vector<8x1xf32>
    %cst_93 = arith.constant 3.200000e+01 : f32
    %226 = vector.broadcast %cst_93 : f32 to vector<8x1xf32>
    %227 = arith.divf %225, %226 : vector<8x1xf32>
    %cst_94 = arith.constant 9.99999974E-6 : f32
    %228 = vector.broadcast %cst_94 : f32 to vector<8x1xf32>
    %229 = arith.addf %227, %228 : vector<8x1xf32>
    %230 = math.rsqrt %229 : vector<8x1xf32>
    %231 = vector.broadcast %230 : vector<8x1xf32> to vector<8x32xf32>
    %232 = arith.mulf %222, %231 : vector<8x32xf32>
    %233 = vector.broadcast %214 : vector<1x32xf32> to vector<8x32xf32>
    %234 = arith.mulf %232, %233 : vector<8x32xf32>
    %235 = vector.broadcast %216 : vector<1x32xf32> to vector<8x32xf32>
    %236 = arith.addf %234, %235 : vector<8x32xf32>
    %237 = arith.truncf %236 : vector<8x32xf32> to vector<8x32xbf16>
    %c1_95 = arith.constant 1 : index
    %c0_96 = arith.constant 0 : index
    %c0_97 = arith.constant 0 : index
    %238 = vector.load %arg6[%c1_95, %c0_96, %c0_97] : memref<2x32x96xbf16, #tpu.memory_space<vmem>>, vector<1x32x96xbf16>
    %239 = vector.shape_cast %238 : vector<1x32x96xbf16> to vector<32x96xbf16>
    %cst_98 = arith.constant dense<0.000000e+00> : vector<8x96xf32>
    %240 = tpu.matmul %237, %239, %cst_98 {dimension_numbers = #tpu.dot_dimension_numbers<[1], [0], [0], [1], [0, 0, 1, 1], [], []>} : vector<8x32xbf16>, vector<32x96xbf16>, vector<8x96xf32> -> vector<8x96xf32>
    %c1_99 = arith.constant 1 : index
    %c0_100 = arith.constant 0 : index
    %c0_101 = arith.constant 0 : index
    %241 = vector.load %arg7[%c1_99, %c0_100, %c0_101] : memref<2x1x96xf32, #tpu.memory_space<vmem>>, vector<1x1x96xf32>
    %242 = vector.shape_cast %241 : vector<1x1x96xf32> to vector<1x96xf32>
    %243 = vector.broadcast %242 : vector<1x96xf32> to vector<8x96xf32>
    %244 = arith.addf %240, %243 : vector<8x96xf32>
    %245 = vector.extract_strided_slice %244 {offsets = [0, 0], sizes = [8, 32], strides = [1, 1]} : vector<8x96xf32> to vector<8x32xf32>
    %246 = vector.extract_strided_slice %244 {offsets = [0, 32], sizes = [8, 32], strides = [1, 1]} : vector<8x96xf32> to vector<8x32xf32>
    %247 = vector.extract_strided_slice %244 {offsets = [0, 64], sizes = [8, 32], strides = [1, 1]} : vector<8x96xf32> to vector<8x32xf32>
    %c1_102 = arith.constant 1 : index
    %c0_103 = arith.constant 0 : index
    %c0_104 = arith.constant 0 : index
    %248 = vector.load %arg8[%c1_102, %c0_103, %c0_104] : memref<2x32x32xbf16, #tpu.memory_space<vmem>>, vector<1x32x32xbf16>
    %249 = vector.shape_cast %248 : vector<1x32x32xbf16> to vector<32x32xbf16>
    %cst_105 = arith.constant 0.000000e+00 : f32
    %250 = vector.broadcast %cst_105 : f32 to vector<8x32xf32>
    %251 = vector.extract_strided_slice %245 {offsets = [0, 0], sizes = [8, 8], strides = [1, 1]} : vector<8x32xf32> to vector<8x8xf32>
    %252 = arith.truncf %251 : vector<8x8xf32> to vector<8x8xbf16>
    %253 = vector.extract_strided_slice %246 {offsets = [0, 0], sizes = [8, 8], strides = [1, 1]} : vector<8x32xf32> to vector<8x8xf32>
    %254 = arith.truncf %253 : vector<8x8xf32> to vector<8x8xbf16>
    %255 = vector.extract_strided_slice %247 {offsets = [0, 0], sizes = [8, 8], strides = [1, 1]} : vector<8x32xf32> to vector<8x8xf32>
    %256 = arith.truncf %255 : vector<8x8xf32> to vector<8x8xbf16>
    %cst_106 = arith.constant dense<0.000000e+00> : vector<8x8xf32>
    %257 = tpu.matmul %252, %254, %cst_106 {dimension_numbers = #tpu.dot_dimension_numbers<[1], [1], [0], [0], [0, 0, 1, 0], [], []>} : vector<8x8xbf16>, vector<8x8xbf16>, vector<8x8xf32> -> vector<8x8xf32>
    %cst_107 = arith.constant 0.353553385 : f32
    %258 = vector.broadcast %cst_107 : f32 to vector<8x8xf32>
    %259 = arith.mulf %257, %258 : vector<8x8xf32>
    %260 = arith.addf %259, %16 : vector<8x8xf32>
    %cst_108 = arith.constant dense<0xFF800000> : vector<8xf32>
    %261 = vector.multi_reduction <maximumf>, %260, %cst_108 [1] : vector<8x8xf32> to vector<8xf32>
    %262 = vector.shape_cast %261 : vector<8xf32> to vector<8x1xf32>
    %263 = vector.broadcast %262 : vector<8x1xf32> to vector<8x8xf32>
    %264 = arith.subf %260, %263 : vector<8x8xf32>
    %265 = math.exp %264 : vector<8x8xf32>
    %cst_109 = arith.constant dense<0.000000e+00> : vector<8xf32>
    %266 = vector.multi_reduction <add>, %265, %cst_109 [1] : vector<8x8xf32> to vector<8xf32>
    %267 = vector.shape_cast %266 : vector<8xf32> to vector<8x1xf32>
    %268 = tpu.reciprocal %267 {approx = true} : vector<8x1xf32> -> vector<8x1xf32>
    %269 = vector.broadcast %268 : vector<8x1xf32> to vector<8x8xf32>
    %270 = arith.mulf %265, %269 : vector<8x8xf32>
    %271 = arith.truncf %270 : vector<8x8xf32> to vector<8x8xbf16>
    %cst_110 = arith.constant dense<0.000000e+00> : vector<8x8xf32>
    %272 = tpu.matmul %271, %256, %cst_110 {dimension_numbers = #tpu.dot_dimension_numbers<[1], [0], [0], [1], [0, 0, 1, 1], [], []>} : vector<8x8xbf16>, vector<8x8xbf16>, vector<8x8xf32> -> vector<8x8xf32>
    %273 = arith.truncf %272 : vector<8x8xf32> to vector<8x8xbf16>
    %274 = vector.extract_strided_slice %249 {offsets = [0, 0], sizes = [8, 32], strides = [1, 1]} : vector<32x32xbf16> to vector<8x32xbf16>
    %cst_111 = arith.constant dense<0.000000e+00> : vector<8x32xf32>
    %275 = tpu.matmul %273, %274, %cst_111 {dimension_numbers = #tpu.dot_dimension_numbers<[1], [0], [0], [1], [0, 0, 1, 1], [], []>} : vector<8x8xbf16>, vector<8x32xbf16>, vector<8x32xf32> -> vector<8x32xf32>
    %276 = arith.addf %250, %275 : vector<8x32xf32>
    %277 = vector.extract_strided_slice %245 {offsets = [0, 8], sizes = [8, 8], strides = [1, 1]} : vector<8x32xf32> to vector<8x8xf32>
    %278 = arith.truncf %277 : vector<8x8xf32> to vector<8x8xbf16>
    %279 = vector.extract_strided_slice %246 {offsets = [0, 8], sizes = [8, 8], strides = [1, 1]} : vector<8x32xf32> to vector<8x8xf32>
    %280 = arith.truncf %279 : vector<8x8xf32> to vector<8x8xbf16>
    %281 = vector.extract_strided_slice %247 {offsets = [0, 8], sizes = [8, 8], strides = [1, 1]} : vector<8x32xf32> to vector<8x8xf32>
    %282 = arith.truncf %281 : vector<8x8xf32> to vector<8x8xbf16>
    %cst_112 = arith.constant dense<0.000000e+00> : vector<8x8xf32>
    %283 = tpu.matmul %278, %280, %cst_112 {dimension_numbers = #tpu.dot_dimension_numbers<[1], [1], [0], [0], [0, 0, 1, 0], [], []>} : vector<8x8xbf16>, vector<8x8xbf16>, vector<8x8xf32> -> vector<8x8xf32>
    %cst_113 = arith.constant 0.353553385 : f32
    %284 = vector.broadcast %cst_113 : f32 to vector<8x8xf32>
    %285 = arith.mulf %283, %284 : vector<8x8xf32>
    %286 = arith.addf %285, %16 : vector<8x8xf32>
    %cst_114 = arith.constant dense<0xFF800000> : vector<8xf32>
    %287 = vector.multi_reduction <maximumf>, %286, %cst_114 [1] : vector<8x8xf32> to vector<8xf32>
    %288 = vector.shape_cast %287 : vector<8xf32> to vector<8x1xf32>
    %289 = vector.broadcast %288 : vector<8x1xf32> to vector<8x8xf32>
    %290 = arith.subf %286, %289 : vector<8x8xf32>
    %291 = math.exp %290 : vector<8x8xf32>
    %cst_115 = arith.constant dense<0.000000e+00> : vector<8xf32>
    %292 = vector.multi_reduction <add>, %291, %cst_115 [1] : vector<8x8xf32> to vector<8xf32>
    %293 = vector.shape_cast %292 : vector<8xf32> to vector<8x1xf32>
    %294 = tpu.reciprocal %293 {approx = true} : vector<8x1xf32> -> vector<8x1xf32>
    %295 = vector.broadcast %294 : vector<8x1xf32> to vector<8x8xf32>
    %296 = arith.mulf %291, %295 : vector<8x8xf32>
    %297 = arith.truncf %296 : vector<8x8xf32> to vector<8x8xbf16>
    %cst_116 = arith.constant dense<0.000000e+00> : vector<8x8xf32>
    %298 = tpu.matmul %297, %282, %cst_116 {dimension_numbers = #tpu.dot_dimension_numbers<[1], [0], [0], [1], [0, 0, 1, 1], [], []>} : vector<8x8xbf16>, vector<8x8xbf16>, vector<8x8xf32> -> vector<8x8xf32>
    %299 = arith.truncf %298 : vector<8x8xf32> to vector<8x8xbf16>
    %300 = vector.extract_strided_slice %249 {offsets = [8, 0], sizes = [8, 32], strides = [1, 1]} : vector<32x32xbf16> to vector<8x32xbf16>
    %cst_117 = arith.constant dense<0.000000e+00> : vector<8x32xf32>
    %301 = tpu.matmul %299, %300, %cst_117 {dimension_numbers = #tpu.dot_dimension_numbers<[1], [0], [0], [1], [0, 0, 1, 1], [], []>} : vector<8x8xbf16>, vector<8x32xbf16>, vector<8x32xf32> -> vector<8x32xf32>
    %302 = arith.addf %276, %301 : vector<8x32xf32>
    %303 = vector.extract_strided_slice %245 {offsets = [0, 16], sizes = [8, 8], strides = [1, 1]} : vector<8x32xf32> to vector<8x8xf32>
    %304 = arith.truncf %303 : vector<8x8xf32> to vector<8x8xbf16>
    %305 = vector.extract_strided_slice %246 {offsets = [0, 16], sizes = [8, 8], strides = [1, 1]} : vector<8x32xf32> to vector<8x8xf32>
    %306 = arith.truncf %305 : vector<8x8xf32> to vector<8x8xbf16>
    %307 = vector.extract_strided_slice %247 {offsets = [0, 16], sizes = [8, 8], strides = [1, 1]} : vector<8x32xf32> to vector<8x8xf32>
    %308 = arith.truncf %307 : vector<8x8xf32> to vector<8x8xbf16>
    %cst_118 = arith.constant dense<0.000000e+00> : vector<8x8xf32>
    %309 = tpu.matmul %304, %306, %cst_118 {dimension_numbers = #tpu.dot_dimension_numbers<[1], [1], [0], [0], [0, 0, 1, 0], [], []>} : vector<8x8xbf16>, vector<8x8xbf16>, vector<8x8xf32> -> vector<8x8xf32>
    %cst_119 = arith.constant 0.353553385 : f32
    %310 = vector.broadcast %cst_119 : f32 to vector<8x8xf32>
    %311 = arith.mulf %309, %310 : vector<8x8xf32>
    %312 = arith.addf %311, %16 : vector<8x8xf32>
    %cst_120 = arith.constant dense<0xFF800000> : vector<8xf32>
    %313 = vector.multi_reduction <maximumf>, %312, %cst_120 [1] : vector<8x8xf32> to vector<8xf32>
    %314 = vector.shape_cast %313 : vector<8xf32> to vector<8x1xf32>
    %315 = vector.broadcast %314 : vector<8x1xf32> to vector<8x8xf32>
    %316 = arith.subf %312, %315 : vector<8x8xf32>
    %317 = math.exp %316 : vector<8x8xf32>
    %cst_121 = arith.constant dense<0.000000e+00> : vector<8xf32>
    %318 = vector.multi_reduction <add>, %317, %cst_121 [1] : vector<8x8xf32> to vector<8xf32>
    %319 = vector.shape_cast %318 : vector<8xf32> to vector<8x1xf32>
    %320 = tpu.reciprocal %319 {approx = true} : vector<8x1xf32> -> vector<8x1xf32>
    %321 = vector.broadcast %320 : vector<8x1xf32> to vector<8x8xf32>
    %322 = arith.mulf %317, %321 : vector<8x8xf32>
    %323 = arith.truncf %322 : vector<8x8xf32> to vector<8x8xbf16>
    %cst_122 = arith.constant dense<0.000000e+00> : vector<8x8xf32>
    %324 = tpu.matmul %323, %308, %cst_122 {dimension_numbers = #tpu.dot_dimension_numbers<[1], [0], [0], [1], [0, 0, 1, 1], [], []>} : vector<8x8xbf16>, vector<8x8xbf16>, vector<8x8xf32> -> vector<8x8xf32>
    %325 = arith.truncf %324 : vector<8x8xf32> to vector<8x8xbf16>
    %326 = vector.extract_strided_slice %249 {offsets = [16, 0], sizes = [8, 32], strides = [1, 1]} : vector<32x32xbf16> to vector<8x32xbf16>
    %cst_123 = arith.constant dense<0.000000e+00> : vector<8x32xf32>
    %327 = tpu.matmul %325, %326, %cst_123 {dimension_numbers = #tpu.dot_dimension_numbers<[1], [0], [0], [1], [0, 0, 1, 1], [], []>} : vector<8x8xbf16>, vector<8x32xbf16>, vector<8x32xf32> -> vector<8x32xf32>
    %328 = arith.addf %302, %327 : vector<8x32xf32>
    %329 = vector.extract_strided_slice %245 {offsets = [0, 24], sizes = [8, 8], strides = [1, 1]} : vector<8x32xf32> to vector<8x8xf32>
    %330 = arith.truncf %329 : vector<8x8xf32> to vector<8x8xbf16>
    %331 = vector.extract_strided_slice %246 {offsets = [0, 24], sizes = [8, 8], strides = [1, 1]} : vector<8x32xf32> to vector<8x8xf32>
    %332 = arith.truncf %331 : vector<8x8xf32> to vector<8x8xbf16>
    %333 = vector.extract_strided_slice %247 {offsets = [0, 24], sizes = [8, 8], strides = [1, 1]} : vector<8x32xf32> to vector<8x8xf32>
    %334 = arith.truncf %333 : vector<8x8xf32> to vector<8x8xbf16>
    %cst_124 = arith.constant dense<0.000000e+00> : vector<8x8xf32>
    %335 = tpu.matmul %330, %332, %cst_124 {dimension_numbers = #tpu.dot_dimension_numbers<[1], [1], [0], [0], [0, 0, 1, 0], [], []>} : vector<8x8xbf16>, vector<8x8xbf16>, vector<8x8xf32> -> vector<8x8xf32>
    %cst_125 = arith.constant 0.353553385 : f32
    %336 = vector.broadcast %cst_125 : f32 to vector<8x8xf32>
    %337 = arith.mulf %335, %336 : vector<8x8xf32>
    %338 = arith.addf %337, %16 : vector<8x8xf32>
    %cst_126 = arith.constant dense<0xFF800000> : vector<8xf32>
    %339 = vector.multi_reduction <maximumf>, %338, %cst_126 [1] : vector<8x8xf32> to vector<8xf32>
    %340 = vector.shape_cast %339 : vector<8xf32> to vector<8x1xf32>
    %341 = vector.broadcast %340 : vector<8x1xf32> to vector<8x8xf32>
    %342 = arith.subf %338, %341 : vector<8x8xf32>
    %343 = math.exp %342 : vector<8x8xf32>
    %cst_127 = arith.constant dense<0.000000e+00> : vector<8xf32>
    %344 = vector.multi_reduction <add>, %343, %cst_127 [1] : vector<8x8xf32> to vector<8xf32>
    %345 = vector.shape_cast %344 : vector<8xf32> to vector<8x1xf32>
    %346 = tpu.reciprocal %345 {approx = true} : vector<8x1xf32> -> vector<8x1xf32>
    %347 = vector.broadcast %346 : vector<8x1xf32> to vector<8x8xf32>
    %348 = arith.mulf %343, %347 : vector<8x8xf32>
    %349 = arith.truncf %348 : vector<8x8xf32> to vector<8x8xbf16>
    %cst_128 = arith.constant dense<0.000000e+00> : vector<8x8xf32>
    %350 = tpu.matmul %349, %334, %cst_128 {dimension_numbers = #tpu.dot_dimension_numbers<[1], [0], [0], [1], [0, 0, 1, 1], [], []>} : vector<8x8xbf16>, vector<8x8xbf16>, vector<8x8xf32> -> vector<8x8xf32>
    %351 = arith.truncf %350 : vector<8x8xf32> to vector<8x8xbf16>
    %352 = vector.extract_strided_slice %249 {offsets = [24, 0], sizes = [8, 32], strides = [1, 1]} : vector<32x32xbf16> to vector<8x32xbf16>
    %cst_129 = arith.constant dense<0.000000e+00> : vector<8x32xf32>
    %353 = tpu.matmul %351, %352, %cst_129 {dimension_numbers = #tpu.dot_dimension_numbers<[1], [0], [0], [1], [0, 0, 1, 1], [], []>} : vector<8x8xbf16>, vector<8x32xbf16>, vector<8x32xf32> -> vector<8x32xf32>
    %354 = arith.addf %328, %353 : vector<8x32xf32>
    %355 = arith.addf %212, %354 : vector<8x32xf32>
    %c1_130 = arith.constant 1 : index
    %c0_131 = arith.constant 0 : index
    %c0_132 = arith.constant 0 : index
    %356 = vector.load %arg9[%c1_130, %c0_131, %c0_132] : memref<2x1x32xf32, #tpu.memory_space<vmem>>, vector<1x1x32xf32>
    %357 = vector.shape_cast %356 : vector<1x1x32xf32> to vector<1x32xf32>
    %358 = vector.broadcast %357 : vector<1x32xf32> to vector<8x32xf32>
    %359 = arith.addf %355, %358 : vector<8x32xf32>
    %c1_133 = arith.constant 1 : index
    %c0_134 = arith.constant 0 : index
    %c0_135 = arith.constant 0 : index
    %360 = vector.load %arg10[%c1_133, %c0_134, %c0_135] : memref<2x1x32xf32, #tpu.memory_space<vmem>>, vector<1x1x32xf32>
    %361 = vector.shape_cast %360 : vector<1x1x32xf32> to vector<1x32xf32>
    %c1_136 = arith.constant 1 : index
    %c0_137 = arith.constant 0 : index
    %c0_138 = arith.constant 0 : index
    %362 = vector.load %arg11[%c1_136, %c0_137, %c0_138] : memref<2x1x32xf32, #tpu.memory_space<vmem>>, vector<1x1x32xf32>
    %363 = vector.shape_cast %362 : vector<1x1x32xf32> to vector<1x32xf32>
    %cst_139 = arith.constant dense<0.000000e+00> : vector<8xf32>
    %364 = vector.multi_reduction <add>, %359, %cst_139 [1] : vector<8x32xf32> to vector<8xf32>
    %365 = vector.shape_cast %364 : vector<8xf32> to vector<8x1xf32>
    %cst_140 = arith.constant 3.200000e+01 : f32
    %366 = vector.broadcast %cst_140 : f32 to vector<8x1xf32>
    %367 = arith.divf %365, %366 : vector<8x1xf32>
    %368 = vector.broadcast %367 : vector<8x1xf32> to vector<8x32xf32>
    %369 = arith.subf %359, %368 : vector<8x32xf32>
    %370 = arith.mulf %369, %369 : vector<8x32xf32>
    %cst_141 = arith.constant dense<0.000000e+00> : vector<8xf32>
    %371 = vector.multi_reduction <add>, %370, %cst_141 [1] : vector<8x32xf32> to vector<8xf32>
    %372 = vector.shape_cast %371 : vector<8xf32> to vector<8x1xf32>
    %cst_142 = arith.constant 3.200000e+01 : f32
    %373 = vector.broadcast %cst_142 : f32 to vector<8x1xf32>
    %374 = arith.divf %372, %373 : vector<8x1xf32>
    %cst_143 = arith.constant 9.99999974E-6 : f32
    %375 = vector.broadcast %cst_143 : f32 to vector<8x1xf32>
    %376 = arith.addf %374, %375 : vector<8x1xf32>
    %377 = math.rsqrt %376 : vector<8x1xf32>
    %378 = vector.broadcast %377 : vector<8x1xf32> to vector<8x32xf32>
    %379 = arith.mulf %369, %378 : vector<8x32xf32>
    %380 = vector.broadcast %361 : vector<1x32xf32> to vector<8x32xf32>
    %381 = arith.mulf %379, %380 : vector<8x32xf32>
    %382 = vector.broadcast %363 : vector<1x32xf32> to vector<8x32xf32>
    %383 = arith.addf %381, %382 : vector<8x32xf32>
    %384 = arith.truncf %383 : vector<8x32xf32> to vector<8x32xbf16>
    %c1_144 = arith.constant 1 : index
    %c0_145 = arith.constant 0 : index
    %c0_146 = arith.constant 0 : index
    %385 = vector.load %arg12[%c1_144, %c0_145, %c0_146] : memref<2x32x128xbf16, #tpu.memory_space<vmem>>, vector<1x32x128xbf16>
    %386 = vector.shape_cast %385 : vector<1x32x128xbf16> to vector<32x128xbf16>
    %cst_147 = arith.constant dense<0.000000e+00> : vector<8x128xf32>
    %387 = tpu.matmul %384, %386, %cst_147 {dimension_numbers = #tpu.dot_dimension_numbers<[1], [0], [0], [1], [0, 0, 1, 1], [], []>} : vector<8x32xbf16>, vector<32x128xbf16>, vector<8x128xf32> -> vector<8x128xf32>
    %c1_148 = arith.constant 1 : index
    %c0_149 = arith.constant 0 : index
    %c0_150 = arith.constant 0 : index
    %388 = vector.load %arg13[%c1_148, %c0_149, %c0_150] : memref<2x1x128xf32, #tpu.memory_space<vmem>>, vector<1x1x128xf32>
    %389 = vector.shape_cast %388 : vector<1x1x128xf32> to vector<1x128xf32>
    %390 = vector.broadcast %389 : vector<1x128xf32> to vector<8x128xf32>
    %391 = arith.addf %387, %390 : vector<8x128xf32>
    %cst_151 = arith.constant 1.702000e+00 : f32
    %392 = vector.broadcast %cst_151 : f32 to vector<8x128xf32>
    %393 = arith.mulf %392, %391 : vector<8x128xf32>
    %394 = arith.negf %393 : vector<8x128xf32>
    %395 = math.exp %394 : vector<8x128xf32>
    %cst_152 = arith.constant 1.000000e+00 : f32
    %396 = vector.broadcast %cst_152 : f32 to vector<8x128xf32>
    %397 = arith.addf %396, %395 : vector<8x128xf32>
    %398 = arith.divf %396, %397 : vector<8x128xf32>
    %399 = arith.mulf %391, %398 : vector<8x128xf32>
    %400 = arith.truncf %399 : vector<8x128xf32> to vector<8x128xbf16>
    %c1_153 = arith.constant 1 : index
    %c0_154 = arith.constant 0 : index
    %c0_155 = arith.constant 0 : index
    %401 = vector.load %arg14[%c1_153, %c0_154, %c0_155] : memref<2x128x32xbf16, #tpu.memory_space<vmem>>, vector<1x128x32xbf16>
    %402 = vector.shape_cast %401 : vector<1x128x32xbf16> to vector<128x32xbf16>
    %cst_156 = arith.constant dense<0.000000e+00> : vector<8x32xf32>
    %403 = tpu.matmul %400, %402, %cst_156 {dimension_numbers = #tpu.dot_dimension_numbers<[1], [0], [0], [1], [0, 0, 1, 1], [], []>} : vector<8x128xbf16>, vector<128x32xbf16>, vector<8x32xf32> -> vector<8x32xf32>
    %404 = arith.addf %359, %403 : vector<8x32xf32>
    %c1_157 = arith.constant 1 : index
    %c0_158 = arith.constant 0 : index
    %c0_159 = arith.constant 0 : index
    %405 = vector.load %arg15[%c1_157, %c0_158, %c0_159] : memref<2x1x32xf32, #tpu.memory_space<vmem>>, vector<1x1x32xf32>
    %406 = vector.shape_cast %405 : vector<1x1x32xf32> to vector<1x32xf32>
    %407 = vector.broadcast %406 : vector<1x32xf32> to vector<8x32xf32>
    %408 = arith.addf %404, %407 : vector<8x32xf32>
    %c0_160 = arith.constant 0 : index
    %c0_161 = arith.constant 0 : index
    %c0_162 = arith.constant 0 : index
    %409 = vector.load %arg3[%c0_160, %c0_161, %c0_162] : memref<1x1x8xf32, #tpu.memory_space<vmem>>, vector<1x1x8xf32>
    %410 = vector.shape_cast %409 : vector<1x1x8xf32> to vector<1x8xf32>
    %cst_163 = arith.constant dense<0.000000e+00> : vector<1x32xf32>
    %411 = tpu.matmul %410, %408, %cst_163 {dimension_numbers = #tpu.dot_dimension_numbers<[1], [0], [0], [1], [0, 0, 1, 1], [], []>} : vector<1x8xf32>, vector<8x32xf32>, vector<1x32xf32> -> vector<1x32xf32>
    %c0_164 = arith.constant 0 : index
    %c0_165 = arith.constant 0 : index
    %412 = vector.load %arg16[%c0_164, %c0_165] : memref<1x32xf32, #tpu.memory_space<vmem>>, vector<1x32xf32>
    %c0_166 = arith.constant 0 : index
    %c0_167 = arith.constant 0 : index
    %413 = vector.load %arg17[%c0_166, %c0_167] : memref<1x32xf32, #tpu.memory_space<vmem>>, vector<1x32xf32>
    %cst_168 = arith.constant dense<0.000000e+00> : vector<1xf32>
    %414 = vector.multi_reduction <add>, %411, %cst_168 [1] : vector<1x32xf32> to vector<1xf32>
    %415 = vector.shape_cast %414 : vector<1xf32> to vector<1x1xf32>
    %cst_169 = arith.constant 3.200000e+01 : f32
    %416 = vector.broadcast %cst_169 : f32 to vector<1x1xf32>
    %417 = arith.divf %415, %416 : vector<1x1xf32>
    %418 = vector.broadcast %417 : vector<1x1xf32> to vector<1x32xf32>
    %419 = arith.subf %411, %418 : vector<1x32xf32>
    %420 = arith.mulf %419, %419 : vector<1x32xf32>
    %cst_170 = arith.constant dense<0.000000e+00> : vector<1xf32>
    %421 = vector.multi_reduction <add>, %420, %cst_170 [1] : vector<1x32xf32> to vector<1xf32>
    %422 = vector.shape_cast %421 : vector<1xf32> to vector<1x1xf32>
    %cst_171 = arith.constant 3.200000e+01 : f32
    %423 = vector.broadcast %cst_171 : f32 to vector<1x1xf32>
    %424 = arith.divf %422, %423 : vector<1x1xf32>
    %cst_172 = arith.constant 9.99999974E-6 : f32
    %425 = vector.broadcast %cst_172 : f32 to vector<1x1xf32>
    %426 = arith.addf %424, %425 : vector<1x1xf32>
    %427 = math.rsqrt %426 : vector<1x1xf32>
    %428 = vector.broadcast %427 : vector<1x1xf32> to vector<1x32xf32>
    %429 = arith.mulf %419, %428 : vector<1x32xf32>
    %430 = arith.mulf %429, %412 : vector<1x32xf32>
    %431 = arith.addf %430, %413 : vector<1x32xf32>
    %432 = arith.truncf %431 : vector<1x32xf32> to vector<1x32xbf16>
    %c0_173 = arith.constant 0 : index
    %c0_174 = arith.constant 0 : index
    %433 = vector.load %arg18[%c0_173, %c0_174] : memref<32x32xbf16, #tpu.memory_space<vmem>>, vector<32x32xbf16>
    %cst_175 = arith.constant dense<0.000000e+00> : vector<1x32xf32>
    %434 = tpu.matmul %432, %433, %cst_175 {dimension_numbers = #tpu.dot_dimension_numbers<[1], [0], [0], [1], [0, 0, 1, 1], [], []>} : vector<1x32xbf16>, vector<32x32xbf16>, vector<1x32xf32> -> vector<1x32xf32>
    %435 = arith.mulf %434, %434 : vector<1x32xf32>
    %cst_176 = arith.constant dense<0.000000e+00> : vector<1xf32>
    %436 = vector.multi_reduction <add>, %435, %cst_176 [1] : vector<1x32xf32> to vector<1xf32>
    %437 = vector.shape_cast %436 : vector<1xf32> to vector<1x1xf32>
    %cst_177 = arith.constant 9.99999996E-13 : f32
    %438 = vector.broadcast %cst_177 : f32 to vector<1x1xf32>
    %439 = arith.addf %437, %438 : vector<1x1xf32>
    %440 = math.rsqrt %439 : vector<1x1xf32>
    %441 = vector.broadcast %440 : vector<1x1xf32> to vector<1x32xf32>
    %442 = arith.mulf %434, %441 : vector<1x32xf32>
    %c0_178 = arith.constant 0 : index
    %c0_179 = arith.constant 0 : index
    %c0_180 = arith.constant 0 : index
    %443 = vector.load %arg19[%c0_178, %c0_179, %c0_180] : memref<1x1x32xf32, #tpu.memory_space<vmem>>, vector<1x1x32xf32>
    %444 = vector.shape_cast %443 : vector<1x1x32xf32> to vector<1x32xf32>
    %445 = vector.shape_cast %442 : vector<1x32xf32> to vector<1x1x32xf32>
    tpu.vector_store %arg19[%c0_178, %c0_179, %c0_180], %445 {strides = array<i32>} : memref<1x1x32xf32, #tpu.memory_space<vmem>>, vector<1x1x32xf32>,
    return
  }
  func.func @transform_0(%arg0: i32) -> (i32, i32, i32) {
    %c0_i32 = arith.constant 0 : i32
    %c0_i32_0 = arith.constant 0 : i32
    %c0_i32_1 = arith.constant 0 : i32
    return %arg0, %c0_i32, %c0_i32_0 : i32, i32, i32
  }
  func.func @transform_1(%arg0: i32) -> (i32, i32, i32) {
    %c0_i32 = arith.constant 0 : i32
    %c0_i32_0 = arith.constant 0 : i32
    %c0_i32_1 = arith.constant 0 : i32
    return %arg0, %c0_i32, %c0_i32_0 : i32, i32, i32
  }
  func.func @transform_2(%arg0: i32) -> (i32, i32, i32) {
    %c0_i32 = arith.constant 0 : i32
    %c0_i32_0 = arith.constant 0 : i32
    %c0_i32_1 = arith.constant 0 : i32
    return %arg0, %c0_i32, %c0_i32_0 : i32, i32, i32
  }
  func.func @transform_3(%arg0: i32) -> (i32, i32, i32) {
    %c0_i32 = arith.constant 0 : i32
    %c0_i32_0 = arith.constant 0 : i32
    %c0_i32_1 = arith.constant 0 : i32
    %c0_i32_2 = arith.constant 0 : i32
    return %c0_i32, %c0_i32_0, %c0_i32_1 : i32, i32, i32
  }
  func.func @transform_4(%arg0: i32) -> (i32, i32, i32) {
    %c0_i32 = arith.constant 0 : i32
    %c0_i32_0 = arith.constant 0 : i32
    %c0_i32_1 = arith.constant 0 : i32
    %c0_i32_2 = arith.constant 0 : i32
    return %c0_i32, %c0_i32_0, %c0_i32_1 : i32, i32, i32
  }
  func.func @transform_5(%arg0: i32) -> (i32, i32, i32) {
    %c0_i32 = arith.constant 0 : i32
    %c0_i32_0 = arith.constant 0 : i32
    %c0_i32_1 = arith.constant 0 : i32
    %c0_i32_2 = arith.constant 0 : i32
    return %c0_i32, %c0_i32_0, %c0_i32_1 : i32, i32, i32
  }
  func.func @transform_6(%arg0: i32) -> (i32, i32, i32) {
    %c0_i32 = arith.constant 0 : i32
    %c0_i32_0 = arith.constant 0 : i32
    %c0_i32_1 = arith.constant 0 : i32
    %c0_i32_2 = arith.constant 0 : i32
    return %c0_i32, %c0_i32_0, %c0_i32_1 : i32, i32, i32
  }
  func.func @transform_7(%arg0: i32) -> (i32, i32, i32) {
    %c0_i32 = arith.constant 0 : i32
    %c0_i32_0 = arith.constant 0 : i32
    %c0_i32_1 = arith.constant 0 : i32
    %c0_i32_2 = arith.constant 0 : i32
    return %c0_i32, %c0_i32_0, %c0_i32_1 : i32, i32, i32
  }
  func.func @transform_8(%arg0: i32) -> (i32, i32, i32) {
    %c0_i32 = arith.constant 0 : i32
    %c0_i32_0 = arith.constant 0 : i32
    %c0_i32_1 = arith.constant 0 : i32
    %c0_i32_2 = arith.constant 0 : i32
    return %c0_i32, %c0_i32_0, %c0_i32_1 : i32, i32, i32
  }
  func.func @transform_9(%arg0: i32) -> (i32, i32, i32) {
    %c0_i32 = arith.constant 0 : i32
    %c0_i32_0 = arith.constant 0 : i32
    %c0_i32_1 = arith.constant 0 : i32
    %c0_i32_2 = arith.constant 0 : i32
    return %c0_i32, %c0_i32_0, %c0_i32_1 : i32, i32, i32
  }
  func.func @transform_10(%arg0: i32) -> (i32, i32, i32) {
    %c0_i32 = arith.constant 0 : i32
    %c0_i32_0 = arith.constant 0 : i32
    %c0_i32_1 = arith.constant 0 : i32
    %c0_i32_2 = arith.constant 0 : i32
    return %c0_i32, %c0_i32_0, %c0_i32_1 : i32, i32, i32
  }
  func.func @transform_11(%arg0: i32) -> (i32, i32, i32) {
    %c0_i32 = arith.constant 0 : i32
    %c0_i32_0 = arith.constant 0 : i32
    %c0_i32_1 = arith.constant 0 : i32
    %c0_i32_2 = arith.constant 0 : i32
    return %c0_i32, %c0_i32_0, %c0_i32_1 : i32, i32, i32
  }
  func.func @transform_12(%arg0: i32) -> (i32, i32, i32) {
    %c0_i32 = arith.constant 0 : i32
    %c0_i32_0 = arith.constant 0 : i32
    %c0_i32_1 = arith.constant 0 : i32
    %c0_i32_2 = arith.constant 0 : i32
    return %c0_i32, %c0_i32_0, %c0_i32_1 : i32, i32, i32
  }
  func.func @transform_13(%arg0: i32) -> (i32, i32, i32) {
    %c0_i32 = arith.constant 0 : i32
    %c0_i32_0 = arith.constant 0 : i32
    %c0_i32_1 = arith.constant 0 : i32
    %c0_i32_2 = arith.constant 0 : i32
    return %c0_i32, %c0_i32_0, %c0_i32_1 : i32, i32, i32
  }
  func.func @transform_14(%arg0: i32) -> (i32, i32, i32) {
    %c0_i32 = arith.constant 0 : i32
    %c0_i32_0 = arith.constant 0 : i32
    %c0_i32_1 = arith.constant 0 : i32
    %c0_i32_2 = arith.constant 0 : i32
    return %c0_i32, %c0_i32_0, %c0_i32_1 : i32, i32, i32
  }
  func.func @transform_15(%arg0: i32) -> (i32, i32) {
    %c0_i32 = arith.constant 0 : i32
    %c0_i32_0 = arith.constant 0 : i32
    %c0_i32_1 = arith.constant 0 : i32
    return %c0_i32, %c0_i32_0 : i32, i32
  }
  func.func @transform_16(%arg0: i32) -> (i32, i32) {
    %c0_i32 = arith.constant 0 : i32
    %c0_i32_0 = arith.constant 0 : i32
    %c0_i32_1 = arith.constant 0 : i32
    return %c0_i32, %c0_i32_0 : i32, i32
  }
  func.func @transform_17(%arg0: i32) -> (i32, i32) {
    %c0_i32 = arith.constant 0 : i32
    %c0_i32_0 = arith.constant 0 : i32
    %c0_i32_1 = arith.constant 0 : i32
    return %c0_i32, %c0_i32_0 : i32, i32
  }
  func.func @transform_18(%arg0: i32) -> (i32, i32, i32) {
    %c0_i32 = arith.constant 0 : i32
    %c0_i32_0 = arith.constant 0 : i32
    %c0_i32_1 = arith.constant 0 : i32
    return %arg0, %c0_i32, %c0_i32_0 : i32, i32, i32
  }
}

</mosaic_0001>

<bundles_post_ra>
// kernel: clip_baseline_forward.7
= control target key start
LH: loop header
LB: loop body
LE: loop exit
PB: predicated region body
PF: predicated region fallthrough
CT: control target
= control target key end

     0   :  { %vm11_vm0 = vcmask 257024   ;;  %s104_s0 = inlined_call_operand.vmem [shape: f32[2,4,32], index: 0, kind: input, shape index: {}]   ;;  %s105_s1 = inlined_call_operand.hbm [shape: f32[2,32], index: 1, kind: output, shape index: {}]  }
   0x1   :  { %v9_v0 = vld [vmem:[%s104_s0] sm:$0xf]  ;;  %v10_v1 = vld [vmem:[%s104_s0 + $0x4] sm:$0xf] }
   0x2   :  { %v12_v2 = vsel %vm11_vm0, %v9_v0, 0.0  ;;  %v19_v3 = vsel %vm11_vm0, %v10_v1, 0.0 }
   0x3   :  { %6 = vsyncpa [#allocation3], 0  ;;  %v13_v4 = vrot.slane %v12_v2, 4  ;;  %v20_v5 = vrot.slane %v19_v3, 4  ;;  %s75_s10 = smov [#allocation2]   ;;  %vm31_vm1 = vcmask 1041409  }
   0x4   :  { %s42_s11 = sshll.u32 %s75_s10, 4  ;;  %vm34_vm2 = vcmask 254976   ;;  %s43_s11 = int_to_ptr.vmem [resolvable:$true] %s42_s11 }
   0x5   :  { %v14_v6 = vadd.f32 %v13_v4, %v12_v2  ;;  %v21_v7 = vadd.f32 %v20_v5, %v19_v3  ;;  %s51_s0 = scalar_lea.vmem %s43_s11, 32  ;;  %p56_p1 = scmp.lt.s32.totalorder %s43_s11, %s43_s11 }
   0x6   :  { %p52_p0 = scmp.ne.s32.totalorder %s43_s11, %s51_s0  ;;  %p57_p2 = scmp.lt.s32.totalorder %s51_s0, %s51_s0 }
   0x7   :  { %v15_v8 = vrot.slane %v14_v6, 2  ;;  %v22_v9 = vrot.slane %v21_v7, 2 }
   0x8   :  { %p58_p3 = por %p57_p2, %p56_p1 }
   0x9   :  { %v16_v10 = vadd.f32 %v15_v8, %v14_v6  ;;  %v23_v11 = vadd.f32 %v22_v9, %v21_v7 }
   0xa   :  { %p59_p4 = pnand %p58_p3, %p52_p0 }
   0xb   :  { %v17_v12 = vrot.slane %v16_v10, 1  ;;  %v24_v13 = vrot.slane %v23_v11, 1 }
   0xd   :  { %v18_v14 = vadd.f32 %v17_v12, %v16_v10  ;;  %v25_v15 = vadd.f32 %v24_v13, %v23_v11 }
   0xf   :  { %v27_v16 = vmul.f32 0.25, %v18_v14  ;;  %v28_v17 = vmul.f32 0.25, %v25_v15 }
  0x11   :  { %v32_v18 = vsel %vm31_vm1, %v28_v17, %v27_v16 }
  0x12   :  { %35 = vst.msk [vmem:[#allocation2] sm:$0x3] %vm34_vm2, %v32_v18 }
  0x13   :  { %62 = shalt.err (!%p59_p4)
}
  0x14   :  { %s63_s14 = scalar_lea.hbm %s105_s1, 32 }
  0x15   :  { %p64_p5 = scmp.ne.s32.totalorder %s105_s1, %s63_s14  ;;  %p67_p6 = scmp.lt.u32.totalorder %s63_s14, %s105_s1 }
  0x17   :  { %p69_p7 = pnand %p67_p6, %p64_p5 }
  0x19   :  { %72 = shalt.err (!%p69_p7)
}
  0x1a   :  { %45 = dma.vmem_to_hbm [thread:$0]  %s43_s11, 32, %s105_s1, [#allocation3]  }
  0x1b   :  { %73 = dma.done.wait [#allocation3], 32  }
  0x1c   :  { %74 = vsyncadd [#allocation3], 4294967264 }
  0x1d   :  { %49 = vsyncpa [#allocation3], 1 }

// kernel: clip_baseline_forward.4
= control target key start
LH: loop header
LB: loop body
LE: loop exit
PB: predicated region body
PF: predicated region fallthrough
CT: control target
= control target key end

     0   :  { %s542_s18 = smov 0   ;;  %s615_s0 = inlined_call_operand.vmem [shape: f32[8,8,192], index: 0, kind: input, shape index: {}]   ;;  %s616_s1 = inlined_call_operand.vmem [shape: bf16[192,32], index: 1, kind: input, shape index: {}]   ;;  %s617_s2 = inlined_call_operand.vmem [shape: f32[8,32], index: 2, kind: input, shape index: {}]   ;;  %s618_s3 = inlined_call_operand.vmem [shape: f32[1,32], index: 3, kind: input, shape index: {}]   ;;  %s619_s4 = inlined_call_operand.vmem [shape: f32[1,32], index: 4, kind: input, shape index: {}]   ;;  %s620_s5 = inlined_call_operand.vmem [shape: f32[8,8,32], index: 5, kind: output, shape index: {}]  }
   0x1 LB: > { %s454_s19 = sadd.s32 4294967295, %s509_s18   ;;  %p458_p0 = scmp.ge.s32.totalorder %s509_s18, 1  ;;  %s509_s18 = sphi %s542_s18, %s15_s18  }
   0x2   : > { %p187_p1 = scmp.lt.s32.totalorder %s509_s18, 9 }
   0x4   : > { %p188_p2 = pnand %p458_p0, %p187_p1 }
   0x5   : > { %v489_v0 = vld [vmem:[%s616_s1] sm:$0xff] (!%p188_p2)   ;;  %v511_v1 = vmov (!%p188_p2), 0   ;;  %p214_p3 = scmp.lt.s32.totalorder (!%p188_p2), %s454_s19, 7  ;;  %v490_v2 = vld [vmem:[%s616_s1 + $0x8] sm:$0xff] (!%p188_p2)   ;;  %v491_v3 = vld [vmem:[%s616_s1 + $0x10] sm:$0xff] (!%p188_p2)   ;;  %vm325_vm0 = vcmask (!%p188_p2), 523264  }
   0x6   : > { %191 = sbr.rel (%p188_p2) target bundleno = 582 (0x246), region = 40  ;;  %329 = vmatprep.subr.bf16.mxu0 (!%p188_p2), %v511_v1  ;;  %v492_v4 = vld [vmem:[%s616_s1 + $0x18] sm:$0xff] (!%p188_p2)   ;;  %v493_v7 = vld [vmem:[%s616_s1 + $0x20] sm:$0xff] (!%p188_p2)   ;;  %v494_v8 = vld [vmem:[%s616_s1 + $0x28] sm:$0xff] (!%p188_p2)   ;;  %vm371_vm1 = vcmask (!%p188_p2), 261120  }
   0x7   : > { %330 = vmatpush1.bf16.msra.mxu0 (!%p188_p2), %v489_v0  ;;  %v495_v9 = vld [vmem:[%s616_s1 + $0x30] sm:$0xff] (!%p188_p2)   ;;  %v496_v10 = vld [vmem:[%s616_s1 + $0x38] sm:$0xff] (!%p188_p2)   ;;  %v497_v11 = vld [vmem:[%s616_s1 + $0x40] sm:$0xff] (!%p188_p2)  }
   0x8   : > { %331 = vmatprep.subr.bf16.mxu0 (!%p188_p2), %v511_v1  ;;  %v498_v12 = vld [vmem:[%s616_s1 + $0x48] sm:$0xff] (!%p188_p2)   ;;  %v499_v13 = vld [vmem:[%s616_s1 + $0x50] sm:$0xff] (!%p188_p2)   ;;  %v500_v14 = vld [vmem:[%s616_s1 + $0x58] sm:$0xff] (!%p188_p2)  }
   0x9   : > { %v252_v17 = vld [vmem:[%s617_s2] sm:$0xff] (!%p188_p2) }
   0xa   : > { %v475_v33 = vld [vmem:[%s618_s3] ss:$0 sm:$0xff] (!%p188_p2) }
   0xb   : > { %332 = vmatpush1.bf16.msra.mxu0 (!%p188_p2), %v490_v2  ;;  %v476_v35 = vld [vmem:[%s619_s4] ss:$0 sm:$0xff] (!%p188_p2) }
   0xc   : > { %333 = vmatprep.subr.bf16.mxu0 (!%p188_p2), %v511_v1 }
   0xd   : > { %s622_s19 = smov (!%p214_p3, %s454_s19), 7 }
   0xe   : > { %s479_s26 = sshll.u32 %s622_s19, 4 }
   0xf   : > { %s565_s29 = scalar_lea.vmem %s615_s0, %s479_s26  ;;  %334 = vmatpush1.bf16.msra.mxu0 %v491_v3 }
  0x10   : > { %335 = vmatprep.subr.bf16.mxu0 %v511_v1  ;;  %v225_v5 = vld [vmem:[%s565_s29 + $0x8] sm:$0xff]  ;;  %v224_v15 = vld [vmem:[%s565_s29] sm:$0xff]  ;;  %s461_s29 = sshll.u32 %s622_s19, 3 }
  0x11   : > { %v227_v6 = vpack.c.bf16 %v225_v5, %v225_v5  ;;  %v226_v16 = vpack.c.bf16 %v224_v15, %v224_v15  ;;  %s222_s9 = scalar_lea.vmem %s620_s5, %s461_s29 }
  0x13   : > { %336 = vmatpush1.bf16.msra.mxu0 %v492_v4  ;;  %474 = vmatprep.mubr.msk.bf16.mxu0 %vm325_vm0, %v227_v6 }
  0x14   : > { %337 = vmatprep.subr.bf16.mxu0 %v511_v1 }
  0x17   : > { %338 = vmatpush1.bf16.msra.mxu0 %v493_v7 }
  0x18   : > { %339 = vmatprep.subr.bf16.mxu0 %v511_v1 }
  0x1b   : > { %340 = vmatpush1.bf16.msra.mxu0 %v494_v8 }
  0x1c   : > { %341 = vmatprep.subr.bf16.mxu0 %v511_v1 }
  0x1f   : > { %342 = vmatpush1.bf16.msra.mxu0 %v495_v9 }
  0x20   : > { %343 = vmatprep.subr.bf16.mxu0 %v511_v1 }
  0x23   : > { %344 = vmatpush1.bf16.msra.mxu0 %v496_v10 }
  0x24   : > { %345 = vmatprep.subr.bf16.mxu0 %v511_v1 }
  0x27   : > { %346 = vmatpush1.bf16.msra.mxu0 %v497_v11 }
  0x28   : > { %347 = vmatprep.subr.bf16.mxu0 %v511_v1 }
  0x2b   : > { %348 = vmatpush1.bf16.msra.mxu0 %v498_v12 }
  0x2c   : > { %349 = vmatprep.subr.bf16.mxu0 %v511_v1 }
  0x2f   : > { %350 = vmatpush1.bf16.msra.mxu0 %v499_v13 }
  0x30   : > { %351 = vmatprep.subr.bf16.mxu0 %v511_v1 }
  0x33   : > { %352 = vmatpush1.bf16.msra.mxu0 %v500_v14 }
  0x36   : > { %362 = vmatmul.mubr.bf16.vlgmr.msra.gmra.mrb[0].mxu0 %v226_v16 }
 0x109   : > { %v363_v18 = vpop.f32.mrb[0].mxu0 }
 0x10a   : > { %v364_v19 = vadd.f32 %v363_v18, %v252_v17  ;;  %v365_v20 = vpop.f32.mrb[1].mxu0 }
 0x10b   : > { %v366_v21 = vpop.f32.mrb[2].mxu0 }
 0x10c   : > { %v367_v22 = vpop.f32.mrb[3].mxu0  ;;  %v372_v23 = vsel %vm371_vm1, %v364_v19, 0.0 }
 0x10d   : > { %373 = vadd.xlane.f32.xlu0 %v372_v23 }
 0x19a   : > { %v374_v24 = vpop.xlane.xlu0 %373 }
 0x19b   : > { %v376_v25 = vmul.f32 0.03125, %v374_v24 }
 0x19d   : > { %v377_v26 = vsub.f32 %v364_v19, %v376_v25 }
 0x19f   : > { %v378_v27 = vmul.f32 %v377_v26, %v377_v26 }
 0x1a1   : > { %v379_v28 = vsel %vm371_vm1, %v378_v27, 0.0 }
 0x1a2   : > { %380 = vadd.xlane.f32.xlu0 %v379_v28 }
 0x22f   : > { %v381_v29 = vpop.xlane.xlu0 %380 }
 0x230   : > { %v382_v30 = vmul.f32 0.03125, %v381_v29 }
 0x232   : > { %v383_v31 = vadd.f32 1e-05, %v382_v30 }
 0x234   : > { %501 = vrsqrt.f32 %v383_v31 }
 0x23e   : > { %v502_v32 = vpop.eup %501 }
 0x23f   : > { %v385_v34 = vmul.f32 %v502_v32, %v377_v26 }
 0x241   : > { %v392_v36 = vmul.f32 %v475_v33, %v385_v34 }
 0x243   : > { %v399_v37 = vadd.f32 %v476_v35, %v392_v36 }
 0x245   : > { %400 = vst.msk [vmem:[%s222_s9] sm:$0xff] %vm371_vm1, %v399_v37 }
 0x246 PF: > { %s15_s18 = sadd.s32 1, %s509_s18  }
 0x247   : > { %p12_p4 = scmp.ge.s32.totalorder %s15_s18, 10  }
 0x249   :  { %14 = sbr.rel (!%p12_p4) target bundleno = 1 (0x1), region = 70 }

// kernel: clip_baseline_forward.5
= control target key start
LH: loop header
LB: loop body
LE: loop exit
PB: predicated region body
PF: predicated region fallthrough
CT: control target
= control target key end

     0   :  { %s3426_s27 = smov 0   ;;  %s3894_s0 = inlined_call_operand.vmem [shape: f32[8,8,32], index: 0, kind: input, shape index: {}]   ;;  %s3895_s1 = inlined_call_operand.vmem [shape: f32[8,1,8], index: 1, kind: input, shape index: {}]   ;;  %s3896_s2 = inlined_call_operand.vmem [shape: f32[8,1,8], index: 2, kind: input, shape index: {}]   ;;  %s3897_s3 = inlined_call_operand.vmem [shape: f32[2,1,32], index: 3, kind: input, shape index: {}]   ;;  %s3898_s4 = inlined_call_operand.vmem [shape: f32[2,1,32], index: 4, kind: input, shape index: {}]   ;;  %s3899_s5 = inlined_call_operand.vmem [shape: bf16[2,32,96], index: 5, kind: input, shape index: {}]   ;;  %s3900_s6 = inlined_call_operand.vmem [shape: f32[2,1,96], index: 6, kind: input, shape index: {}]   ;;  %s3901_s7 = inlined_call_operand.vmem [shape: bf16[2,32,32], index: 7, kind: input, shape index: {}]   ;;  %s3902_s8 = inlined_call_operand.vmem [shape: f32[2,1,32], index: 8, kind: input, shape index: {}]   ;;  %s3903_s9 = inlined_call_operand.vmem [shape: f32[2,1,32], index: 9, kind: input, shape index: {}]   ;;  %s3904_s10 = inlined_call_operand.vmem [shape: f32[2,1,32], index: 10, kind: input, shape index: {}]   ;;  %s3905_s11 = inlined_call_operand.vmem [shape: bf16[2,32,128], index: 11, kind: input, shape index: {}]   ;;  %s3906_s12 = inlined_call_operand.vmem [shape: f32[2,1,128], index: 12, kind: input, shape index: {}]   ;;  %s3907_s13 = inlined_call_operand.vmem [shape: bf16[2,128,32], index: 13, kind: input, shape index: {}]   ;;  %s3908_s14 = inlined_call_operand.vmem [shape: f32[2,1,32], index: 14, kind: input, shape index: {}]   ;;  %s3909_s15 = inlined_call_operand.vmem [shape: f32[1,32], index: 15, kind: input, shape index: {}]   ;;  %s3910_s16 = inlined_call_operand.vmem [shape: f32[1,32], index: 16, kind: input, shape index: {}]   ;;  %s3911_s17 = inlined_call_operand.vmem [shape: bf16[32,32], index: 17, kind: input, shape index: {}]   ;;  %s3912_s18 = inlined_call_operand.vmem [shape: f32[8,1,32], index: 18, kind: output, shape index: {}]  }
   0x1   :  { %3918 = sst [smem:[#allocation2_spill]] %s3894_s0 }
   0x2   :  { %3919 = sst [smem:[#allocation3_spill]] %s3895_s1 }
   0x3   :  { %3920 = sst [smem:[#allocation4_spill]] %s3896_s2 }
   0x4 LB: > { %s2779_s28 = sadd.s32 4294967295, %s3315_s27   ;;  %p2783_p0 = scmp.ge.s32.totalorder %s3315_s27, 1  ;;  %s3315_s27 = sphi %s3426_s27, %s28_s27  }
   0x5   : > { %p527_p1 = scmp.lt.s32.totalorder %s3315_s27, 9 }
   0x7   : > { %p528_p2 = pnand %p2783_p0, %p527_p1 }
   0x8   : > { %p584_p3 = scmp.lt.s32.totalorder (!%p528_p2), %s2779_s28, 7  ;;  %vm604_vm0 = vcmask (!%p528_p2), 261120   ;;  %s3921_s19 = sld [smem:[#allocation2_spill]] (!%p528_p2)  ;;  %v3231_v7 = vld [vmem:[%s3899_s5] sm:$0xff] (!%p528_p2)   ;;  %v3317_v8 = vmov (!%p528_p2), 0.0   ;;  %vm3318_vm1 = vmmov (!%p528_p2), 0   ;;  %v757_v32 = vlaneseq (!%p528_p2) }
   0x9   : > { %531 = sbr.rel (%p528_p2) target bundleno = 8848 (0x2290), region = 92  ;;  %2980 = vmatprep.subr.bf16.mxu1 (!%p528_p2), %v3317_v8  ;;  %2984 = vmatprep.mubr.msk.bf16.mxu1 (!%p528_p2), %vm3318_vm1, %v3317_v8  ;;  %v3232_v9 = vld [vmem:[%s3899_s5 + $0x8] sm:$0xff] (!%p528_p2)   ;;  %v2785_v14 = vld [vmem:[%s3897_s3] ss:$0 sm:$0xff] (!%p528_p2)  ;;  %s3319_s0 = smov (!%p528_p2), 120   ;;  %vm708_vm2 = vcmask (!%p528_p2), 64512  }
   0xa   : > { %2981 = vmatpush3.bf16.msra.mxu1 (!%p528_p2), %v3231_v7  ;;  %2994 = vmatprep.subr.bf16.mxu0 (!%p528_p2), %v3317_v8  ;;  %v2786_v16 = vld [vmem:[%s3898_s4] ss:$0 sm:$0xff] (!%p528_p2)  ;;  %s3922_s22 = sld [smem:[#allocation3_spill]] (!%p528_p2)  ;;  %v758_v34 = vshrl.u32 (!%p528_p2), %v757_v32, 7  ;;  %v3322_v36 = vmov (!%p528_p2), -1e+09  }
   0xb   : > { %2982 = vmatprep.subr.bf16.mxu1 (!%p528_p2), %v3317_v8  ;;  %2996 = vmatprep.mubr.msk.bf16.mxu0 (!%p528_p2), %vm3318_vm1, %v3317_v8  ;;  %v2787_v20 = vld [vmem:[%s3900_s6] ss:$0 sm:$0xff] (!%p528_p2)  ;;  %s3323_s23 = smov (!%p528_p2), 56   ;;  %s3324_s24 = smov (!%p528_p2), 64   ;;  %vm780_vm4 = vcmask (!%p528_p2), 1043456   ;;  %vm2630_vm5 = vcmask (!%p528_p2), 253952  }
   0xc   : > { %v759_v35 = vsub.s32 (!%p528_p2), 0, %v758_v34  ;;  %s3917_s25 = smov (!%p528_p2), 80   ;;  %s3326_s26 = smov (!%p528_p2), 112  }
   0xd   : > { %s3913_s21 = smov (!%p528_p2), 40  }
   0xe   : > { %2983 = vmatpush3.bf16.msra.mxu1 (!%p528_p2), %v3232_v9 }
   0xf   : > { %2988 = vmatprep.subr.bf16.mxu1 (!%p528_p2), %v3317_v8 }
  0x10   : > { %s3930_s28 = smov (!%p584_p3, %s2779_s28), 7 }
  0x11   : > { %s2784_s29 = sshll.u32 %s3930_s28, 3  ;;  %s590_s2 = scalar_lea.vmem %s3922_s22, %s3930_s28 }
  0x12   : > { %s587_s1 = scalar_lea.vmem %s3921_s19, %s2784_s29  ;;  %s3320_s19 = smov 96   ;;  %v599_v33 = vld [vmem:[%s590_s2] sm:$0x1] }
  0x13   : > { %v3440_v0 = vld [vmem:[%s587_s1] sm:$0xff]  ;;  %s3321_s1 = smov 88   ;;  %vm600_vm3 = vcmp.gt.f32.partialorder %v599_v33, 0.5  ;;  %s3916_s22 = smov 48  }
  0x14   : > { %v605_v1 = vsel %vm604_vm0, %v3440_v0, 0.0  ;;  %v601_v37 = vsel %vm600_vm3, 0.0, %v3322_v36  ;;  %s3915_s2 = smov 104   ;;  %s3914_s29 = smov 72  }
  0x15   : > { %606 = vadd.xlane.f32.xlu0 %v605_v1  ;;  %v3495_v38 = vrot.slane %v601_v37, %v759_v35 }
  0xa2   : > { %v607_v2 = vpop.xlane.xlu0 %606 }
  0xa3   : > { %v609_v3 = vmul.f32 0.03125, %v607_v2 }
  0xa5   : > { %v610_v4 = vsub.f32 %v3440_v0, %v609_v3 }
  0xa7   : > { %v611_v5 = vmul.f32 %v610_v4, %v610_v4 }
  0xa9   : > { %v612_v6 = vsel %vm604_vm0, %v611_v5, 0.0 }
  0xaa   : > { %613 = vadd.xlane.f32.xlu0 %v612_v6 }
 0x137   : > { %v614_v10 = vpop.xlane.xlu0 %613 }
 0x138   : > { %v615_v11 = vmul.f32 0.03125, %v614_v10 }
 0x13a   : > { %v616_v12 = vadd.f32 1e-05, %v615_v11 }
 0x13c   : > { %3257 = vrsqrt.f32 %v616_v12 }
 0x146   : > { %v3258_v13 = vpop.eup %3257 }
 0x147   : > { %v618_v15 = vmul.f32 %v3258_v13, %v610_v4  ;;  %v700_v13 = vld [vmem:[%s3901_s7] sm:$0xf] }
 0x149   : > { %v625_v17 = vmul.f32 %v2785_v14, %v618_v15  ;;  %v988_v14 = vsel %vm780_vm4, %v700_v13, 0  ;;  %v701_v15 = vld [vmem:[%s3901_s7 + $0x4] sm:$0xf] }
 0x14b   : > { %v632_v18 = vadd.f32 %v2786_v16, %v625_v17  ;;  %v942_v16 = vsel %vm780_vm4, %v701_v15, 0 }
 0x14d   : > { %v633_v19 = vpack.c.bf16 %v632_v18, %v632_v18 }
 0x14f   : > { %2985 = vmatmul.mubr.msk.bf16.vlgmr.msra.gmra.mrb[0].mxu1 %vm604_vm0, %v633_v19 }
 0x150   : > { %2990 = vmatprep.mubr.msk.bf16.mxu1 %vm3318_vm1, %v3317_v8 }
 0x222   : > { %v694_v21 = vpop.f32.mrb[0].mxu1 }
 0x223   : > { %v695_v22 = vadd.f32 %v2787_v20, %v694_v21  ;;  %v2986_v23 = vpop.f32.mrb[1].mxu1 }
 0x224   : > { %v697_v24 = vpop.f32.mrb[2].mxu1 }
 0x225   : > { %v3472_v25 = vpack.c.bf16 %v695_v22, %v695_v22  ;;  %v2987_v26 = vpop.f32.mrb[3].mxu1 }
 0x227   : > { %825 = vrot.lane.b32.xlu0 %v3472_v25, %s3319_s0  ;;  %706 = vrot.lane.b32.xlu1 %v3472_v25, %s3320_s19 }
 0x22b   : > { %827 = vrot.lane.b32.xlu1 %v3472_v25, %s3321_s1 }
 0x299   : > { %v707_v27 = vpop.permute.xlu1 %706  ;;  %v826_v31 = vpop.permute.xlu0 %825 }
 0x29a   : > { %v713_v28 = vsel %vm708_vm2, %v707_v27, 0 }
 0x29b   : > { %2989 = vmatpush3.bf16.xpose.msra.mxu1 %v713_v28 }
 0x29c   : > { %3000 = vmatprep.subr.bf16.mxu1 %v3317_v8 }
 0x29d   : > { %v828_v29 = vpop.permute.xlu1 %827 }
 0x29e   : > { %v833_v30 = vsel %vm708_vm2, %v828_v29, 0 }
 0x2a2   : > { %2991 = vmatmul.mubr.msk.bf16.vlgmr.msra.gmra.mrb[4].mxu1 %vm708_vm2, %v3472_v25 }
 0x2a3   : > { %3001 = vmatpush3.bf16.xpose.msra.mxu1 %v833_v30  ;;  %3002 = vmatprep.mubr.msk.bf16.mxu1 %vm3318_vm1, %v3317_v8 }
 0x2a4   : > { %3012 = vmatprep.subr.bf16.mxu1 %v3317_v8 }
 0x2aa   : > { %3003 = vmatmul.mubr.msk.bf16.vlgmr.msra.gmra.mrb[8].mxu1 %vm708_vm2, %v826_v31 }
 0x2ab   : > { %3014 = vmatprep.mubr.msk.bf16.mxu1 %vm3318_vm1, %v3317_v8  ;;  %3013 = vmatpush3.bf16.msra.mxu1 %v942_v16 }
 0x2ac   : > { %3024 = vmatprep.subr.bf16.mxu1 %v3317_v8 }
 0x375   : > { %v749_v39 = vpop.f32.mrb[4].mxu1 }
 0x376   : > { %v755_v40 = vmul.f32 0.35355338, %v749_v39  ;;  %v2992_v41 = vpop.f32.mrb[5].mxu1 }
 0x377   : > { %v752_v42 = vpop.f32.mrb[6].mxu1 }
 0x378   : > { %v2993_v43 = vpop.f32.mrb[7].mxu1  ;;  %v762_v44 = vadd.f32 %v3495_v38, %v755_v40 }
 0x37a   : > { %v763_v45 = vsel %vm708_vm2, %v762_v44, -inf }
 0x37b   : > { %764 = vmax.xlane.f32.xlu1 %v763_v45 }
 0x37d   : > { %v869_v46 = vpop.f32.mrb[8].mxu1 }
 0x37e   : > { %v875_v47 = vmul.f32 0.35355338, %v869_v46  ;;  %v3004_v48 = vpop.f32.mrb[9].mxu1 }
 0x37f   : > { %v872_v49 = vpop.f32.mrb[10].mxu1 }
 0x380   : > { %v3005_v50 = vpop.f32.mrb[11].mxu1  ;;  %v876_v51 = vadd.f32 %v875_v47, %v3495_v38 }
 0x382   : > { %v877_v52 = vsel %vm708_vm2, %v876_v51, -inf }
 0x383   : > { %878 = vmax.xlane.f32.xlu0 %v877_v52 }
 0x399   : > { %889 = vrot.lane.b32.xlu0 %v3472_v25, %s3323_s23 }
 0x408   : > { %v765_v53 = vpop.xlane.xlu1 %764 }
 0x409   : > { %v766_v54 = vsub.f32 %v762_v44, %v765_v53 }
 0x40b   : > { %v767_v55 = vmul.f32 1.442695, %v766_v54 }
 0x40d   : > { %3259 = vpow2.f32 %v767_v55 }
 0x410   : > { %v879_v56 = vpop.xlane.xlu0 %878 }
 0x411   : > { %v880_v57 = vsub.f32 %v876_v51, %v879_v56 }
 0x413   : > { %v881_v58 = vmul.f32 1.442695, %v880_v57 }
 0x414   : > { %v890_v6 = vpop.permute.xlu0 %889 }
 0x415   : > { %3261 = vpow2.f32 %v881_v58  ;;  %v895_v9 = vsel %vm780_vm4, %v890_v6, 0 }
 0x417   : > { %v3260_v59 = vpop.eup %3259 }
 0x418   : > { %v769_v60 = vsel %vm708_vm2, %v3260_v59, 0.0 }
 0x419   : > { %770 = vadd.xlane.f32.xlu1 %v769_v60 }
 0x41f   : > { %v3262_v61 = vpop.eup %3261 }
 0x420   : > { %v883_v62 = vsel %vm708_vm2, %v3262_v61, 0.0 }
 0x421   : > { %884 = vadd.xlane.f32.xlu1 %v883_v62  ;;  %v702_v62 = vld [vmem:[%s3901_s7 + $0x8] sm:$0xf] }
 0x432   : > { %775 = vrot.lane.b32.xlu1 %v3472_v25, %s3324_s24 }
 0x436   : > { %1032 = vrot.lane.b32.xlu1 %v3472_v25, %s3917_s25  ;;  %s3927_s25 = smov 40  }
 0x43a   : > { %1030 = vrot.lane.b32.xlu1 %v3472_v25, %s3326_s26 }
 0x4a6   : > { %v771_v63 = vpop.xlane.xlu1 %770 }
 0x4a7   : > { %3263 = vrcp.f32 %v771_v63  ;;  %v1147_v63 = vsel %vm780_vm4, %v702_v62, 0 }
 0x4ae   : > { %v885_v1 = vpop.xlane.xlu1 %884 }
 0x4af   : > { %3265 = vrcp.f32 %v885_v1 }
 0x4b1   : > { %v3264_v2 = vpop.eup %3263 }
 0x4b2   : > { %v776_v3 = vpop.permute.xlu1 %775  ;;  %v773_v4 = vmul.f32 %v3264_v2, %v3260_v59 }
 0x4b3   : > { %v782_v5 = vsel %vm780_vm4, %v776_v3, 0 }
 0x4b4   : > { %2995 = vmatpush3.bf16.msra.mxu0 %v782_v5  ;;  %v774_v7 = vpack.c.bf16 %v773_v4, %v773_v4 }
 0x4b5   : > { %3006 = vmatprep.subr.bf16.mxu0 %v3317_v8 }
 0x4b6   : > { %v1033_v22 = vpop.permute.xlu1 %1032 }
 0x4b7   : > { %2997 = vmatmul.mubr.msk.bf16.vlgmr.msra.gmra.mrb[0].mxu0 %vm708_vm2, %v774_v7  ;;  %v1038_v28 = vsel %vm708_vm2, %v1033_v22, 0 }
 0x4b8   : > { %3007 = vmatpush3.bf16.msra.mxu0 %v895_v9  ;;  %3008 = vmatprep.mubr.msk.bf16.mxu0 %vm3318_vm1, %v3317_v8 }
 0x4b9   : > { %v3266_v10 = vpop.eup %3265  ;;  %3018 = vmatprep.subr.bf16.mxu0 %v3317_v8 }
 0x4ba   : > { %v887_v11 = vmul.f32 %v3266_v10, %v3262_v61  ;;  %v1031_v30 = vpop.permute.xlu1 %1030 }
 0x4bc   : > { %v888_v12 = vpack.c.bf16 %v887_v11, %v887_v11 }
 0x4bf   : > { %3009 = vmatmul.mubr.msk.bf16.vlgmr.msra.gmra.mrb[4].mxu0 %vm708_vm2, %v888_v12 }
 0x4c0   : > { %3020 = vmatprep.mubr.msk.bf16.mxu0 %vm3318_vm1, %v3317_v8  ;;  %3019 = vmatpush3.bf16.msra.mxu0 %v988_v14 }
 0x4c1   : > { %3030 = vmatprep.subr.bf16.mxu0 %v3317_v8 }
 0x58a   : > { %v818_v17 = vpop.f32.mrb[0].mxu0 }
 0x58b   : > { %v824_v18 = vpack.c.bf16 %v818_v17, %v818_v17  ;;  %v2998_v19 = vpop.f32.mrb[1].mxu0 }
 0x58c   : > { %v821_v20 = vpop.f32.mrb[2].mxu0 }
 0x58d   : > { %v2999_v21 = vpop.f32.mrb[3].mxu0  ;;  %3021 = vmatmul.mubr.msk.bf16.vlgmr.msra.gmra.mrb[8].mxu0 %vm708_vm2, %v824_v18 }
 0x58e   : > { %3032 = vmatprep.mubr.msk.bf16.mxu0 %vm3318_vm1, %v3317_v8 }
 0x592   : > { %v931_v23 = vpop.f32.mrb[4].mxu0 }
 0x593   : > { %v937_v24 = vpack.c.bf16 %v931_v23, %v931_v23  ;;  %v3010_v26 = vpop.f32.mrb[5].mxu0 }
 0x594   : > { %v934_v27 = vpop.f32.mrb[6].mxu0 }
 0x595   : > { %v3011_v29 = vpop.f32.mrb[7].mxu0  ;;  %3015 = vmatmul.mubr.msk.bf16.vlgmr.msra.gmra.mrb[12].mxu1 %vm708_vm2, %v937_v24 }
 0x596   : > { %3025 = vmatpush3.bf16.xpose.msra.mxu1 %v1038_v28  ;;  %3026 = vmatprep.mubr.msk.bf16.mxu1 %vm3318_vm1, %v3317_v8 }
 0x597   : > { %3036 = vmatprep.subr.bf16.mxu1 %v3317_v8 }
 0x59d   : > { %3027 = vmatmul.mubr.msk.bf16.vlgmr.msra.gmra.mrb[16].mxu1 %vm708_vm2, %v1031_v30 }
 0x59e   : > { %3038 = vmatprep.mubr.msk.bf16.mxu1 %vm3318_vm1, %v3317_v8  ;;  %3037 = vmatpush3.bf16.msra.mxu1 %v1147_v63  ;;  %v3235_v63 = vld [vmem:[%s3907_s13] sm:$0xff]  }
 0x59f   : > { %3048 = vmatprep.subr.bf16.mxu1 %v3317_v8 }
 0x660   : > { %v1024_v31 = vpop.f32.mrb[8].mxu0 }
 0x661   : > { %v3022_v32 = vpop.f32.mrb[9].mxu0 }
 0x662   : > { %v1027_v33 = vpop.f32.mrb[10].mxu0 }
 0x663   : > { %v3023_v34 = vpop.f32.mrb[11].mxu0 }
 0x668   : > { %v978_v35 = vpop.f32.mrb[12].mxu1 }
 0x669   : > { %v3542_v36 = vadd.f32 %v1024_v31, %v978_v35  ;;  %v3016_v37 = vpop.f32.mrb[13].mxu1 }
 0x66a   : > { %v981_v39 = vpop.f32.mrb[14].mxu1 }
 0x66b   : > { %v3017_v40 = vpop.f32.mrb[15].mxu1 }
 0x670   : > { %v1074_v41 = vpop.f32.mrb[16].mxu1 }
 0x671   : > { %v1080_v42 = vmul.f32 0.35355338, %v1074_v41  ;;  %v3028_v43 = vpop.f32.mrb[17].mxu1  ;;  %v2803_v41 = vld [vmem:[%s3902_s8] ss:$0 sm:$0xff] }
 0x672   : > { %v1077_v44 = vpop.f32.mrb[18].mxu1 }
 0x673   : > { %v3029_v45 = vpop.f32.mrb[19].mxu1  ;;  %v1081_v46 = vadd.f32 %v1080_v42, %v3495_v38 }
 0x675   : > { %v1082_v47 = vsel %vm708_vm2, %v1081_v46, -inf }
 0x676   : > { %1083 = vmax.xlane.f32.xlu1 %v1082_v47 }
 0x687   : > { %1094 = vrot.lane.b32.xlu1 %v3472_v25, %s3916_s22  ;;  %s3925_s22 = smov 104  }
 0x68b   : > { %1190 = vrot.lane.b32.xlu1 %v3472_v25, %s3915_s2  ;;  %s3926_s2 = smov 72  }
 0x703   : > { %v1084_v48 = vpop.xlane.xlu1 %1083 }
 0x704   : > { %v1085_v49 = vsub.f32 %v1081_v46, %v1084_v48 }
 0x706   : > { %v1086_v50 = vmul.f32 1.442695, %v1085_v49 }
 0x707   : > { %v1095_v51 = vpop.permute.xlu1 %1094 }
 0x708   : > { %3267 = vpow2.f32 %v1086_v50  ;;  %v1100_v52 = vsel %vm780_vm4, %v1095_v51, 0 }
 0x709   : > { %3031 = vmatpush3.bf16.msra.mxu0 %v1100_v52  ;;  %v3233_v52 = vld [vmem:[%s3905_s11] sm:$0xff]  }
 0x70a   : > { %3042 = vmatprep.subr.bf16.mxu0 %v3317_v8 }
 0x70b   : > { %v1191_v61 = vpop.permute.xlu1 %1190 }
 0x712   : > { %v3268_v53 = vpop.eup %3267 }
 0x713   : > { %v1088_v54 = vsel %vm708_vm2, %v3268_v53, 0.0 }
 0x714   : > { %1089 = vadd.xlane.f32.xlu0 %v1088_v54 }
 0x72a   : > { %1192 = vrot.lane.b32.xlu0 %v3472_v25, %s3914_s29 }
 0x7a1   : > { %v1090_v55 = vpop.xlane.xlu0 %1089 }
 0x7a2   : > { %3269 = vrcp.f32 %v1090_v55 }
 0x7a5   : > { %v1193_v58 = vpop.permute.xlu0 %1192 }
 0x7a6   : > { %v1198_v60 = vsel %vm708_vm2, %v1193_v58, 0 }
 0x7ac   : > { %v3270_v56 = vpop.eup %3269 }
 0x7ad   : > { %v1092_v57 = vmul.f32 %v3270_v56, %v3268_v53 }
 0x7af   : > { %v1093_v59 = vpack.c.bf16 %v1092_v57, %v1092_v57  ;;  %v2804_v57 = vld [vmem:[%s3903_s9] ss:$0 sm:$0xff] }
 0x7b1   : > { %3033 = vmatmul.mubr.msk.bf16.vlgmr.msra.gmra.mrb[12].mxu0 %vm708_vm2, %v1093_v59  ;;  %v2805_v59 = vld [vmem:[%s3904_s10] ss:$0 sm:$0xff] }
 0x7b2   : > { %3043 = vmatpush3.bf16.xpose.msra.mxu0 %v1198_v60  ;;  %3044 = vmatprep.mubr.msk.bf16.mxu0 %vm3318_vm1, %v3317_v8 }
 0x7b3   : > { %3054 = vmatprep.subr.bf16.mxu0 %v3317_v8 }
 0x7b9   : > { %3045 = vmatmul.mubr.msk.bf16.vlgmr.msra.gmra.mrb[16].mxu0 %vm708_vm2, %v1191_v61 }
 0x7ba   : > { %3056 = vmatprep.mubr.msk.bf16.mxu0 %vm3318_vm1, %v3317_v8 }
 0x884   : > { %v1136_v1 = vpop.f32.mrb[12].mxu0 }
 0x885   : > { %v1142_v2 = vpack.c.bf16 %v1136_v1, %v1136_v1  ;;  %v3034_v3 = vpop.f32.mrb[13].mxu0  ;;  %v3236_v1 = vld [vmem:[%s3907_s13 + $0x8] sm:$0xff]  }
 0x886   : > { %v1139_v4 = vpop.f32.mrb[14].mxu0  ;;  %v3238_v3 = vld [vmem:[%s3907_s13 + $0x18] sm:$0xff]  }
 0x887   : > { %v3035_v5 = vpop.f32.mrb[15].mxu0  ;;  %3039 = vmatmul.mubr.msk.bf16.vlgmr.msra.gmra.mrb[20].mxu1 %vm708_vm2, %v1142_v2  ;;  %v3237_v2 = vld [vmem:[%s3907_s13 + $0x10] sm:$0xff]   ;;  %v3239_v4 = vld [vmem:[%s3907_s13 + $0x20] sm:$0xff]  }
 0x888   : > { %3050 = vmatprep.mubr.msk.bf16.mxu1 %vm3318_vm1, %v3317_v8  ;;  %v3240_v5 = vld [vmem:[%s3907_s13 + $0x28] sm:$0xff]  }
 0x88c   : > { %v1234_v6 = vpop.f32.mrb[16].mxu0 }
 0x88d   : > { %v1240_v7 = vmul.f32 0.35355338, %v1234_v6  ;;  %v3046_v9 = vpop.f32.mrb[17].mxu0  ;;  %v3241_v6 = vld [vmem:[%s3907_s13 + $0x30] sm:$0xff]  }
 0x88e   : > { %v1237_v10 = vpop.f32.mrb[18].mxu0  ;;  %v2806_v9 = vld [vmem:[%s3906_s12] ss:$0 sm:$0xff] }
 0x88f   : > { %v3047_v11 = vpop.f32.mrb[19].mxu0  ;;  %v1241_v12 = vadd.f32 %v1240_v7, %v3495_v38  ;;  %v3242_v7 = vld [vmem:[%s3907_s13 + $0x38] sm:$0xff]  }
 0x891   : > { %v1242_v13 = vsel %vm708_vm2, %v1241_v12, -inf }
 0x892   : > { %1243 = vmax.xlane.f32.xlu1 %v1242_v13 }
 0x91f   : > { %v1244_v14 = vpop.xlane.xlu1 %1243 }
 0x920   : > { %v1245_v15 = vsub.f32 %v1241_v12, %v1244_v14 }
 0x922   : > { %v1246_v16 = vmul.f32 1.442695, %v1245_v15 }
 0x924   : > { %3271 = vpow2.f32 %v1246_v16 }
 0x92e   : > { %v3272_v17 = vpop.eup %3271 }
 0x92f   : > { %v1248_v18 = vsel %vm708_vm2, %v3272_v17, 0.0 }
 0x930   : > { %1249 = vadd.xlane.f32.xlu0 %v1248_v18 }
 0x946   : > { %1254 = vrot.lane.b32.xlu0 %v3472_v25, %s3913_s21  ;;  %v703_v25 = vld [vmem:[%s3901_s7 + $0xc] sm:$0xf] }
 0x947   : > { %v1307_v31 = vsel %vm780_vm4, %v703_v25, 0 }
 0x948   : > { %3055 = vmatpush3.bf16.msra.mxu0 %v1307_v31 }
 0x949   : > { %3068 = vmatprep.subr.bf16.mxu0 %v3317_v8 }
 0x95a   : > { %v1183_v19 = vpop.f32.mrb[20].mxu1 }
 0x95b   : > { %v1189_v20 = vadd.f32 %v1183_v19, %v3542_v36  ;;  %v3040_v21 = vpop.f32.mrb[21].mxu1 }
 0x95c   : > { %v1186_v22 = vpop.f32.mrb[22].mxu1 }
 0x95d   : > { %v3041_v23 = vpop.f32.mrb[23].mxu1 }
 0x95e   : > { %v2819_v23 = vld [vmem:[%s3908_s14] ss:$0 sm:$0xff] }
 0x9bd   : > { %v1250_v24 = vpop.xlane.xlu0 %1249 }
 0x9be   : > { %3273 = vrcp.f32 %v1250_v24 }
 0x9c1   : > { %v1255_v26 = vpop.permute.xlu0 %1254 }
 0x9c2   : > { %v1260_v27 = vsel %vm780_vm4, %v1255_v26, 0 }
 0x9c3   : > { %3049 = vmatpush3.bf16.msra.mxu1 %v1260_v27 }
 0x9c4   : > { %3060 = vmatprep.subr.bf16.mxu1 %v3317_v8 }
 0x9c8   : > { %v3274_v28 = vpop.eup %3273 }
 0x9c9   : > { %v1252_v29 = vmul.f32 %v3274_v28, %v3272_v17 }
 0x9cb   : > { %v1253_v30 = vpack.c.bf16 %v1252_v29, %v1252_v29 }
 0x9cd   : > { %3051 = vmatmul.mubr.msk.bf16.vlgmr.msra.gmra.mrb[24].mxu1 %vm708_vm2, %v1253_v30 }
 0x9ce   : > { %3064 = vmatprep.mubr.msk.bf16.mxu1 %vm3318_vm1, %v3317_v8  ;;  %3061 = vmatpush3.bf16.msra.mxu1 %v3233_v52 }
 0x9cf   : > { %3062 = vmatprep.subr.bf16.mxu1 %v3317_v8 }
 0xaa0   : > { %v1296_v32 = vpop.f32.mrb[24].mxu1 }
 0xaa1   : > { %v1302_v33 = vpack.c.bf16 %v1296_v32, %v1296_v32  ;;  %v3052_v34 = vpop.f32.mrb[25].mxu1 }
 0xaa2   : > { %v1299_v35 = vpop.f32.mrb[26].mxu1 }
 0xaa3   : > { %v3053_v36 = vpop.f32.mrb[27].mxu1  ;;  %3057 = vmatmul.mubr.msk.bf16.vlgmr.msra.gmra.mrb[20].mxu0 %vm708_vm2, %v1302_v33  ;;  %v3243_v35 = vld [vmem:[%s3899_s5 + $0x10] sm:$0xff]  }
 0xaa4   : > { %3084 = vmatprep.mubr.msk.bf16.mxu0 %vm3318_vm1, %v3317_v8  ;;  %3069 = vmatpush3.bf16.msra.mxu0 %v3235_v63  ;;  %v3244_v36 = vld [vmem:[%s3899_s5 + $0x18] sm:$0xff]  }
 0xaa5   : > { %3070 = vmatprep.subr.bf16.mxu0 %v3317_v8 }
 0xaa8   : > { %3071 = vmatpush3.bf16.msra.mxu0 %v3236_v1 }
 0xaa9   : > { %3072 = vmatprep.subr.bf16.mxu0 %v3317_v8 }
 0xaac   : > { %3073 = vmatpush3.bf16.msra.mxu0 %v3237_v2 }
 0xaad   : > { %3074 = vmatprep.subr.bf16.mxu0 %v3317_v8 }
 0xab0   : > { %3075 = vmatpush3.bf16.msra.mxu0 %v3238_v3 }
 0xab1   : > { %3076 = vmatprep.subr.bf16.mxu0 %v3317_v8 }
 0xab4   : > { %3077 = vmatpush3.bf16.msra.mxu0 %v3239_v4 }
 0xab5   : > { %3078 = vmatprep.subr.bf16.mxu0 %v3317_v8 }
 0xab8   : > { %3079 = vmatpush3.bf16.msra.mxu0 %v3240_v5 }
 0xab9   : > { %3080 = vmatprep.subr.bf16.mxu0 %v3317_v8 }
 0xabc   : > { %3081 = vmatpush3.bf16.msra.mxu0 %v3241_v6 }
 0xabd   : > { %3082 = vmatprep.subr.bf16.mxu0 %v3317_v8 }
 0xac0   : > { %3083 = vmatpush3.bf16.msra.mxu0 %v3242_v7 }
 0xac1   : > { %3114 = vmatprep.subr.bf16.mxu0 %v3317_v8 }
 0xb76   : > { %v1343_v37 = vpop.f32.mrb[20].mxu0 }
 0xb77   : > { %v1349_v39 = vadd.f32 %v1343_v37, %v1189_v20  ;;  %v3058_v40 = vpop.f32.mrb[21].mxu0 }
 0xb78   : > { %v1346_v42 = vpop.f32.mrb[22].mxu0 }
 0xb79   : > { %v1350_v43 = vadd.f32 %v1349_v39, %v3440_v0  ;;  %v3059_v44 = vpop.f32.mrb[23].mxu0  ;;  %v3234_v0 = vld [vmem:[%s3905_s11 + $0x8] sm:$0xff]   ;;  %v2822_v42 = vld [vmem:[%s3897_s3 + $0x1] ss:$0 sm:$0xff] }
 0xb7a   : > { %3063 = vmatpush3.bf16.msra.mxu1 %v3234_v0  ;;  %v2823_v44 = vld [vmem:[%s3898_s4 + $0x1] ss:$0 sm:$0xff] }
 0xb7b   : > { %v3594_v45 = vadd.f32 %v2803_v41, %v1350_v43  ;;  %3088 = vmatprep.subr.bf16.mxu1 %v3317_v8 }
 0xb7d   : > { %v1361_v46 = vsel %vm604_vm0, %v3594_v45, 0.0 }
 0xb7e   : > { %1362 = vadd.xlane.f32.xlu1 %v1361_v46 }
 0xc0b   : > { %v1363_v47 = vpop.xlane.xlu1 %1362 }
 0xc0c   : > { %v1364_v48 = vmul.f32 0.03125, %v1363_v47 }
 0xc0e   : > { %v1365_v49 = vsub.f32 %v3594_v45, %v1364_v48  ;;  %v2829_v48 = vld [vmem:[%s3900_s6 + $0x1] ss:$0 sm:$0xff] }
 0xc10   : > { %v1366_v50 = vmul.f32 %v1365_v49, %v1365_v49 }
 0xc12   : > { %v1367_v51 = vsel %vm604_vm0, %v1366_v50, 0.0 }
 0xc13   : > { %1368 = vadd.xlane.f32.xlu1 %v1367_v51 }
 0xca0   : > { %v1369_v53 = vpop.xlane.xlu1 %1368 }
 0xca1   : > { %v1370_v54 = vmul.f32 0.03125, %v1369_v53 }
 0xca3   : > { %v1371_v55 = vadd.f32 1e-05, %v1370_v54 }
 0xca5   : > { %3275 = vrsqrt.f32 %v1371_v55 }
 0xcaf   : > { %v3276_v56 = vpop.eup %3275 }
 0xcb0   : > { %v1373_v58 = vmul.f32 %v3276_v56, %v1365_v49 }
 0xcb2   : > { %v1380_v60 = vmul.f32 %v2804_v57, %v1373_v58 }
 0xcb4   : > { %v1387_v61 = vadd.f32 %v2805_v59, %v1380_v60 }
 0xcb6   : > { %v1388_v62 = vpack.c.bf16 %v1387_v61, %v1387_v61 }
 0xcb8   : > { %3065 = vmatmul.mubr.msk.bf16.vlgmr.msra.gmra.mrb[28].mxu1 %vm604_vm0, %v1388_v62 }
 0xcb9   : > { %3092 = vmatprep.mubr.msk.bf16.mxu1 %vm3318_vm1, %v3317_v8  ;;  %3089 = vmatpush3.bf16.msra.mxu1 %v3243_v35 }
 0xcba   : > { %3090 = vmatprep.subr.bf16.mxu1 %v3317_v8 }
 0xcbd   : > { %3091 = vmatpush3.bf16.msra.mxu1 %v3244_v36 }
 0xcbe   : > { %3096 = vmatprep.subr.bf16.mxu1 %v3317_v8 }
 0xd8b   : > { %v1449_v10 = vpop.f32.mrb[28].mxu1 }
 0xd8c   : > { %v1450_v11 = vadd.f32 %v2806_v9, %v1449_v10  ;;  %v3066_v12 = vpop.f32.mrb[29].mxu1 }
 0xd8d   : > { %v1452_v13 = vpop.f32.mrb[30].mxu1 }
 0xd8e   : > { %v2810_v14 = vmul.f32 -1.702, %v1450_v11  ;;  %v3067_v15 = vpop.f32.mrb[31].mxu1 }
 0xd90   : > { %v1457_v16 = vmul.f32 1.442695, %v2810_v14 }
 0xd92   : > { %3277 = vpow2.f32 %v1457_v16 }
 0xd9c   : > { %v3278_v17 = vpop.eup %3277 }
 0xd9d   : > { %v1459_v18 = vadd.f32 1.0, %v3278_v17 }
 0xd9f   : > { %3279 = vrcp.f32 %v1459_v18 }
 0xda9   : > { %v3280_v19 = vpop.eup %3279 }
 0xdaa   : > { %v1462_v20 = vmul.f32 %v3280_v19, %v1450_v11 }
 0xdac   : > { %v1463_v21 = vpack.c.bf16 %v1462_v20, %v1462_v20 }
 0xdae   : > { %3085 = vmatmul.mubr.bf16.vlgmr.msra.gmra.mrb[24].mxu0 %v1463_v21 }
 0xdaf   : > { %3116 = vmatprep.mubr.msk.bf16.mxu0 %vm3318_vm1, %v3317_v8 }
 0xe81   : > { %v1562_v22 = vpop.f32.mrb[24].mxu0 }
 0xe82   : > { %v1568_v24 = vadd.f32 %v1562_v22, %v3594_v45  ;;  %v3086_v26 = vpop.f32.mrb[25].mxu0 }
 0xe83   : > { %v1565_v27 = vpop.f32.mrb[26].mxu0 }
 0xe84   : > { %v3658_v28 = vadd.f32 %v2819_v23, %v1568_v24  ;;  %v3087_v29 = vpop.f32.mrb[27].mxu0 }
 0xe86   : > { %v1581_v30 = vsel %vm604_vm0, %v3658_v28, 0.0 }
 0xe87   : > { %1582 = vadd.xlane.f32.xlu1 %v1581_v30 }
 0xf14   : > { %v1583_v25 = vpop.xlane.xlu1 %1582 }
 0xf15   : > { %v1584_v31 = vmul.f32 0.03125, %v1583_v25 }
 0xf17   : > { %v1585_v32 = vsub.f32 %v3658_v28, %v1584_v31 }
 0xf19   : > { %v1586_v33 = vmul.f32 %v1585_v32, %v1585_v32 }
 0xf1b   : > { %v1587_v34 = vsel %vm604_vm0, %v1586_v33, 0.0 }
 0xf1c   : > { %1588 = vadd.xlane.f32.xlu1 %v1587_v34  ;;  %v2834_v34 = vld [vmem:[%s3901_s7 + $0x14] sm:$0xf] }
 0xf1d   : > { %v1912_v35 = vsel %vm780_vm4, %v2834_v34, 0 }
 0xfa9   : > { %v1589_v37 = vpop.xlane.xlu1 %1588 }
 0xfaa   : > { %v1590_v39 = vmul.f32 0.03125, %v1589_v37 }
 0xfac   : > { %v1591_v40 = vadd.f32 1e-05, %v1590_v39  ;;  %v2833_v39 = vld [vmem:[%s3901_s7 + $0x10] sm:$0xf] }
 0xfae   : > { %3281 = vrsqrt.f32 %v1591_v40 }
 0xfb8   : > { %v3282_v41 = vpop.eup %3281 }
 0xfb9   : > { %v1593_v43 = vmul.f32 %v3282_v41, %v1585_v32 }
 0xfbb   : > { %v1600_v45 = vmul.f32 %v2822_v42, %v1593_v43  ;;  %v1958_v42 = vsel %vm780_vm4, %v2833_v39, 0 }
 0xfbd   : > { %v1607_v46 = vadd.f32 %v2823_v44, %v1600_v45 }
 0xfbf   : > { %v1608_v47 = vpack.c.bf16 %v1607_v46, %v1607_v46 }
 0xfc1   : > { %3093 = vmatmul.mubr.msk.bf16.vlgmr.msra.gmra.mrb[32].mxu1 %vm604_vm0, %v1608_v47 }
 0xfc2   : > { %3098 = vmatprep.mubr.msk.bf16.mxu1 %vm3318_vm1, %v3317_v8 }
0x1094   : > { %v1671_v49 = vpop.f32.mrb[32].mxu1 }
0x1095   : > { %v1672_v50 = vadd.f32 %v2829_v48, %v1671_v49  ;;  %v3094_v51 = vpop.f32.mrb[33].mxu1 }
0x1096   : > { %v1674_v52 = vpop.f32.mrb[34].mxu1 }
0x1097   : > { %v3684_v0 = vpack.c.bf16 %v1672_v50, %v1672_v50  ;;  %v3095_v53 = vpop.f32.mrb[35].mxu1 }
0x1099   : > { %1684 = vrot.lane.b32.xlu1 %v3684_v0, %s3320_s19 }
0x110b   : > { %v1685_v54 = vpop.permute.xlu1 %1684 }
0x110c   : > { %v1690_v55 = vsel %vm708_vm2, %v1685_v54, 0 }
0x110d   : > { %3097 = vmatpush3.bf16.xpose.msra.mxu1 %v1690_v55 }
0x110e   : > { %3102 = vmatprep.subr.bf16.mxu1 %v3317_v8 }
0x1114   : > { %3099 = vmatmul.mubr.msk.bf16.vlgmr.msra.gmra.mrb[36].mxu1 %vm708_vm2, %v3684_v0 }
0x1115   : > { %3104 = vmatprep.mubr.msk.bf16.mxu1 %vm3318_vm1, %v3317_v8 }
0x11e7   : > { %v1726_v56 = vpop.f32.mrb[36].mxu1 }
0x11e8   : > { %v1732_v57 = vmul.f32 0.35355338, %v1726_v56  ;;  %v3100_v58 = vpop.f32.mrb[37].mxu1 }
0x11e9   : > { %v1729_v59 = vpop.f32.mrb[38].mxu1 }
0x11ea   : > { %v3101_v60 = vpop.f32.mrb[39].mxu1  ;;  %v1733_v61 = vadd.f32 %v1732_v57, %v3495_v38 }
0x11ec   : > { %v1734_v62 = vsel %vm708_vm2, %v1733_v61, -inf }
0x11ed   : > { %1735 = vmax.xlane.f32.xlu0 %v1734_v62 }
0x1203   : > { %1746 = vrot.lane.b32.xlu0 %v3684_v0, %s3324_s24 }
0x1207   : > { %1795 = vrot.lane.b32.xlu0 %v3684_v0, %s3319_s0  ;;  %s3923_s0 = smov 80  }
0x127a   : > { %v1736_v63 = vpop.xlane.xlu0 %1735 }
0x127b   : > { %v1737_v1 = vsub.f32 %v1733_v61, %v1736_v63 }
0x127d   : > { %v1738_v2 = vmul.f32 1.442695, %v1737_v1 }
0x127e   : > { %v1747_v3 = vpop.permute.xlu0 %1746 }
0x127f   : > { %3283 = vpow2.f32 %v1738_v2  ;;  %v1752_v4 = vsel %vm780_vm4, %v1747_v3, 0 }
0x1280   : > { %3103 = vmatpush3.bf16.msra.mxu1 %v1752_v4 }
0x1281   : > { %3108 = vmatprep.subr.bf16.mxu1 %v3317_v8 }
0x1282   : > { %v1796_v14 = vpop.permute.xlu0 %1795 }
0x1289   : > { %v3284_v5 = vpop.eup %3283 }
0x128a   : > { %v1740_v6 = vsel %vm708_vm2, %v3284_v5, 0.0 }
0x128b   : > { %1741 = vadd.xlane.f32.xlu1 %v1740_v6 }
0x129c   : > { %1797 = vrot.lane.b32.xlu1 %v3684_v0, %s3321_s1 }
0x1318   : > { %v1742_v7 = vpop.xlane.xlu1 %1741 }
0x1319   : > { %3285 = vrcp.f32 %v1742_v7 }
0x131c   : > { %v1798_v11 = vpop.permute.xlu1 %1797 }
0x131d   : > { %v1803_v13 = vsel %vm708_vm2, %v1798_v11, 0 }
0x1323   : > { %v3286_v9 = vpop.eup %3285 }
0x1324   : > { %v1744_v10 = vmul.f32 %v3286_v9, %v3284_v5 }
0x1326   : > { %v1745_v12 = vpack.c.bf16 %v1744_v10, %v1744_v10 }
0x1328   : > { %3105 = vmatmul.mubr.msk.bf16.vlgmr.msra.gmra.mrb[40].mxu1 %vm708_vm2, %v1745_v12 }
0x1329   : > { %3109 = vmatpush3.bf16.xpose.msra.mxu1 %v1803_v13  ;;  %3110 = vmatprep.mubr.msk.bf16.mxu1 %vm3318_vm1, %v3317_v8 }
0x132a   : > { %3120 = vmatprep.subr.bf16.mxu1 %v3317_v8 }
0x1330   : > { %3111 = vmatmul.mubr.msk.bf16.vlgmr.msra.gmra.mrb[44].mxu1 %vm708_vm2, %v1796_v14 }
0x1331   : > { %3122 = vmatprep.mubr.msk.bf16.mxu1 %vm3318_vm1, %v3317_v8  ;;  %3121 = vmatpush3.bf16.msra.mxu1 %v1912_v35 }
0x1332   : > { %3132 = vmatprep.subr.bf16.mxu1 %v3317_v8 }
0x13fb   : > { %v1788_v15 = vpop.f32.mrb[40].mxu1 }
0x13fc   : > { %v3106_v16 = vpop.f32.mrb[41].mxu1  ;;  %v1794_v43 = vpack.c.bf16 %v1788_v15, %v1788_v15 }
0x13fd   : > { %v1791_v17 = vpop.f32.mrb[42].mxu1 }
0x13fe   : > { %v3107_v18 = vpop.f32.mrb[43].mxu1 }
0x1403   : > { %v1839_v19 = vpop.f32.mrb[44].mxu1 }
0x1404   : > { %v1845_v20 = vmul.f32 0.35355338, %v1839_v19  ;;  %v3112_v21 = vpop.f32.mrb[45].mxu1 }
0x1405   : > { %v1842_v22 = vpop.f32.mrb[46].mxu1 }
0x1406   : > { %v3113_v23 = vpop.f32.mrb[47].mxu1  ;;  %v1846_v24 = vadd.f32 %v1845_v20, %v3495_v38  ;;  %v2835_v20 = vld [vmem:[%s3901_s7 + $0x18] sm:$0xf] }
0x1407   : > { %v2117_v21 = vsel %vm780_vm4, %v2835_v20, 0  ;;  %v3247_v20 = vld [vmem:[%s3907_s13 + $0x40] sm:$0xff]  }
0x1408   : > { %v1847_v26 = vsel %vm708_vm2, %v1846_v24, -inf }
0x1409   : > { %1848 = vmax.xlane.f32.xlu0 %v1847_v26 }
0x141f   : > { %1859 = vrot.lane.b32.xlu0 %v3684_v0, %s3323_s23 }
0x1423   : > { %2000 = vrot.lane.b32.xlu0 %v3684_v0, %s3326_s26  ;;  %s3924_s26 = smov 48  }
0x1496   : > { %v1849_v27 = vpop.xlane.xlu0 %1848 }
0x1497   : > { %v1850_v29 = vsub.f32 %v1846_v24, %v1849_v27 }
0x1499   : > { %v1851_v30 = vmul.f32 1.442695, %v1850_v29 }
0x149a   : > { %v1860_v25 = vpop.permute.xlu0 %1859 }
0x149b   : > { %3287 = vpow2.f32 %v1851_v30  ;;  %v1865_v31 = vsel %vm780_vm4, %v1860_v25, 0 }
0x149c   : > { %3115 = vmatpush3.bf16.msra.mxu0 %v1865_v31 }
0x149d   : > { %3126 = vmatprep.subr.bf16.mxu0 %v3317_v8 }
0x149e   : > { %v2001_v53 = vpop.permute.xlu0 %2000 }
0x14a5   : > { %v3288_v32 = vpop.eup %3287 }
0x14a6   : > { %v1853_v33 = vsel %vm708_vm2, %v3288_v32, 0.0 }
0x14a7   : > { %1854 = vadd.xlane.f32.xlu1 %v1853_v33 }
0x14b8   : > { %2002 = vrot.lane.b32.xlu1 %v3684_v0, %s3923_s0 }
0x1534   : > { %v1855_v36 = vpop.xlane.xlu1 %1854 }
0x1535   : > { %3289 = vrcp.f32 %v1855_v36 }
0x1538   : > { %v2003_v44 = vpop.permute.xlu1 %2002 }
0x1539   : > { %v2008_v49 = vsel %vm708_vm2, %v2003_v44, 0 }
0x153f   : > { %v3290_v37 = vpop.eup %3289 }
0x1540   : > { %v1857_v40 = vmul.f32 %v3290_v37, %v3288_v32 }
0x1542   : > { %v1858_v41 = vpack.c.bf16 %v1857_v40, %v1857_v40 }
0x1544   : > { %3117 = vmatmul.mubr.msk.bf16.vlgmr.msra.gmra.mrb[28].mxu0 %vm708_vm2, %v1858_v41 }
0x1545   : > { %3127 = vmatpush3.bf16.msra.mxu0 %v1958_v42  ;;  %3128 = vmatprep.mubr.msk.bf16.mxu0 %vm3318_vm1, %v3317_v8 }
0x1546   : > { %3138 = vmatprep.subr.bf16.mxu0 %v3317_v8 }
0x154c   : > { %3129 = vmatmul.mubr.msk.bf16.vlgmr.msra.gmra.mrb[32].mxu0 %vm708_vm2, %v1794_v43 }
0x154d   : > { %3140 = vmatprep.mubr.msk.bf16.mxu0 %vm3318_vm1, %v3317_v8 }
0x1617   : > { %v1901_v45 = vpop.f32.mrb[28].mxu0 }
0x1618   : > { %v1907_v46 = vpack.c.bf16 %v1901_v45, %v1901_v45  ;;  %v3118_v47 = vpop.f32.mrb[29].mxu0 }
0x1619   : > { %v1904_v48 = vpop.f32.mrb[30].mxu0 }
0x161a   : > { %v3119_v50 = vpop.f32.mrb[31].mxu0  ;;  %3123 = vmatmul.mubr.msk.bf16.vlgmr.msra.gmra.mrb[48].mxu1 %vm708_vm2, %v1907_v46 }
0x161b   : > { %3133 = vmatpush3.bf16.xpose.msra.mxu1 %v2008_v49  ;;  %3134 = vmatprep.mubr.msk.bf16.mxu1 %vm3318_vm1, %v3317_v8  ;;  %v2836_v50 = vld [vmem:[%s3901_s7 + $0x1c] sm:$0xf] }
0x161c   : > { %3144 = vmatprep.subr.bf16.mxu1 %v3317_v8 }
0x161f   : > { %v1994_v51 = vpop.f32.mrb[32].mxu0 }
0x1620   : > { %v3130_v52 = vpop.f32.mrb[33].mxu0 }
0x1621   : > { %v1997_v54 = vpop.f32.mrb[34].mxu0 }
0x1622   : > { %v3131_v55 = vpop.f32.mrb[35].mxu0  ;;  %3135 = vmatmul.mubr.msk.bf16.vlgmr.msra.gmra.mrb[52].mxu1 %vm708_vm2, %v2001_v53 }
0x1623   : > { %3146 = vmatprep.mubr.msk.bf16.mxu1 %vm3318_vm1, %v3317_v8  ;;  %3145 = vmatpush3.bf16.msra.mxu1 %v2117_v21  ;;  %v3248_v21 = vld [vmem:[%s3907_s13 + $0x48] sm:$0xff]  }
0x1624   : > { %3156 = vmatprep.subr.bf16.mxu1 %v3317_v8 }
0x16ed   : > { %v1948_v56 = vpop.f32.mrb[48].mxu1 }
0x16ee   : > { %v3748_v57 = vadd.f32 %v1994_v51, %v1948_v56  ;;  %v3124_v58 = vpop.f32.mrb[49].mxu1  ;;  %v2277_v51 = vsel %vm780_vm4, %v2836_v50, 0 }
0x16ef   : > { %v1951_v59 = vpop.f32.mrb[50].mxu1 }
0x16f0   : > { %v3125_v60 = vpop.f32.mrb[51].mxu1 }
0x16f1   : > { %v2850_v60 = vld [vmem:[%s3902_s8 + $0x1] ss:$0 sm:$0xff] }
0x16f5   : > { %v2044_v61 = vpop.f32.mrb[52].mxu1 }
0x16f6   : > { %v2050_v62 = vmul.f32 0.35355338, %v2044_v61  ;;  %v3136_v63 = vpop.f32.mrb[53].mxu1 }
0x16f7   : > { %v2047_v1 = vpop.f32.mrb[54].mxu1 }
0x16f8   : > { %v3137_v2 = vpop.f32.mrb[55].mxu1  ;;  %v2051_v3 = vadd.f32 %v2050_v62, %v3495_v38 }
0x16fa   : > { %v2052_v4 = vsel %vm708_vm2, %v2051_v3, -inf }
0x16fb   : > { %2053 = vmax.xlane.f32.xlu0 %v2052_v4 }
0x1711   : > { %2064 = vrot.lane.b32.xlu0 %v3684_v0, %s3924_s26  ;;  %s596_s26 = scalar_lea.vmem %s3912_s18, %s3930_s28 }
0x1715   : > { %2160 = vrot.lane.b32.xlu0 %v3684_v0, %s3925_s22  ;;  %s3928_s22 = sld [smem:[#allocation4_spill]] }
0x1788   : > { %v2054_v5 = vpop.xlane.xlu0 %2053 }
0x1789   : > { %v2055_v6 = vsub.f32 %v2051_v3, %v2054_v5 }
0x178b   : > { %v2056_v7 = vmul.f32 1.442695, %v2055_v6 }
0x178c   : > { %v2065_v9 = vpop.permute.xlu0 %2064 }
0x178d   : > { %3291 = vpow2.f32 %v2056_v7  ;;  %v2070_v10 = vsel %vm780_vm4, %v2065_v9, 0  ;;  %v3245_v9 = vld [vmem:[%s3905_s11 + $0x10] sm:$0xff]  }
0x178e   : > { %3139 = vmatpush3.bf16.msra.mxu0 %v2070_v10 }
0x178f   : > { %3150 = vmatprep.subr.bf16.mxu0 %v3317_v8 }
0x1790   : > { %v2161_v19 = vpop.permute.xlu0 %2160 }
0x1797   : > { %v3292_v11 = vpop.eup %3291 }
0x1798   : > { %v2058_v12 = vsel %vm708_vm2, %v3292_v11, 0.0 }
0x1799   : > { %2059 = vadd.xlane.f32.xlu1 %v2058_v12 }
0x17aa   : > { %2162 = vrot.lane.b32.xlu1 %v3684_v0, %s3926_s2  ;;  %s593_s2 = scalar_lea.vmem %s3928_s22, %s3930_s28 }
0x1826   : > { %v2060_v13 = vpop.xlane.xlu1 %2059 }
0x1827   : > { %3293 = vrcp.f32 %v2060_v13 }
0x182a   : > { %v2163_v16 = vpop.permute.xlu1 %2162 }
0x182b   : > { %v2168_v18 = vsel %vm708_vm2, %v2163_v16, 0  ;;  %v2854_v16 = vld [vmem:[%s3904_s10 + $0x1] ss:$0 sm:$0xff] }
0x1831   : > { %v3294_v14 = vpop.eup %3293 }
0x1832   : > { %v2062_v15 = vmul.f32 %v3294_v14, %v3292_v11  ;;  %v2853_v14 = vld [vmem:[%s3903_s9 + $0x1] ss:$0 sm:$0xff] }
0x1834   : > { %v2063_v17 = vpack.c.bf16 %v2062_v15, %v2062_v15 }
0x1836   : > { %3141 = vmatmul.mubr.msk.bf16.vlgmr.msra.gmra.mrb[36].mxu0 %vm708_vm2, %v2063_v17 }
0x1837   : > { %3151 = vmatpush3.bf16.xpose.msra.mxu0 %v2168_v18  ;;  %3152 = vmatprep.mubr.msk.bf16.mxu0 %vm3318_vm1, %v3317_v8 }
0x1838   : > { %3162 = vmatprep.subr.bf16.mxu0 %v3317_v8 }
0x183e   : > { %3153 = vmatmul.mubr.msk.bf16.vlgmr.msra.gmra.mrb[40].mxu0 %vm708_vm2, %v2161_v19 }
0x183f   : > { %3164 = vmatprep.mubr.msk.bf16.mxu0 %vm3318_vm1, %v3317_v8  ;;  %3163 = vmatpush3.bf16.msra.mxu0 %v2277_v51 }
0x1840   : > { %3176 = vmatprep.subr.bf16.mxu0 %v3317_v8 }
0x1909   : > { %v2106_v22 = vpop.f32.mrb[36].mxu0 }
0x190a   : > { %v2112_v23 = vpack.c.bf16 %v2106_v22, %v2106_v22  ;;  %v3142_v24 = vpop.f32.mrb[37].mxu0  ;;  %v3249_v22 = vld [vmem:[%s3907_s13 + $0x50] sm:$0xff]  }
0x190b   : > { %v2109_v26 = vpop.f32.mrb[38].mxu0  ;;  %v3251_v24 = vld [vmem:[%s3907_s13 + $0x60] sm:$0xff]  }
0x190c   : > { %v3143_v27 = vpop.f32.mrb[39].mxu0  ;;  %3147 = vmatmul.mubr.msk.bf16.vlgmr.msra.gmra.mrb[56].mxu1 %vm708_vm2, %v2112_v23  ;;  %v3250_v23 = vld [vmem:[%s3907_s13 + $0x58] sm:$0xff]   ;;  %v3252_v26 = vld [vmem:[%s3907_s13 + $0x68] sm:$0xff]  }
0x190d   : > { %3158 = vmatprep.mubr.msk.bf16.mxu1 %vm3318_vm1, %v3317_v8  ;;  %v3253_v27 = vld [vmem:[%s3907_s13 + $0x70] sm:$0xff]  }
0x1911   : > { %v2204_v29 = vpop.f32.mrb[40].mxu0 }
0x1912   : > { %v2210_v30 = vmul.f32 0.35355338, %v2204_v29  ;;  %v3154_v25 = vpop.f32.mrb[41].mxu0  ;;  %v3254_v29 = vld [vmem:[%s3907_s13 + $0x78] sm:$0xff]  }
0x1913   : > { %v2207_v31 = vpop.f32.mrb[42].mxu0 }
0x1914   : > { %v3155_v32 = vpop.f32.mrb[43].mxu0  ;;  %v2211_v33 = vadd.f32 %v2210_v30, %v3495_v38  ;;  %v2860_v30 = vld [vmem:[%s3906_s12 + $0x1] ss:$0 sm:$0xff] }
0x1916   : > { %v2212_v34 = vsel %vm708_vm2, %v2211_v33, -inf }
0x1917   : > { %2213 = vmax.xlane.f32.xlu0 %v2212_v34 }
0x192d   : > { %2224 = vrot.lane.b32.xlu0 %v3684_v0, %s3927_s25 }
0x19a4   : > { %v2214_v35 = vpop.xlane.xlu0 %2213 }
0x19a5   : > { %v2215_v36 = vsub.f32 %v2211_v33, %v2214_v35 }
0x19a7   : > { %v2216_v37 = vmul.f32 1.442695, %v2215_v36 }
0x19a8   : > { %v2225_v39 = vpop.permute.xlu0 %2224 }
0x19a9   : > { %3295 = vpow2.f32 %v2216_v37  ;;  %v2230_v40 = vsel %vm780_vm4, %v2225_v39, 0 }
0x19aa   : > { %3157 = vmatpush3.bf16.msra.mxu1 %v2230_v40 }
0x19ab   : > { %3168 = vmatprep.subr.bf16.mxu1 %v3317_v8 }
0x19b3   : > { %v3296_v41 = vpop.eup %3295 }
0x19b4   : > { %v2218_v42 = vsel %vm708_vm2, %v3296_v41, 0.0 }
0x19b5   : > { %2219 = vadd.xlane.f32.xlu1 %v2218_v42 }
0x19df   : > { %v2153_v38 = vpop.f32.mrb[56].mxu1 }
0x19e0   : > { %v2159_v43 = vadd.f32 %v2153_v38, %v3748_v57  ;;  %v3148_v44 = vpop.f32.mrb[57].mxu1 }
0x19e1   : > { %v2156_v45 = vpop.f32.mrb[58].mxu1 }
0x19e2   : > { %v3149_v0 = vpop.f32.mrb[59].mxu1 }
0x1a42   : > { %v2220_v46 = vpop.xlane.xlu1 %2219 }
0x1a43   : > { %3297 = vrcp.f32 %v2220_v46 }
0x1a4d   : > { %v3298_v47 = vpop.eup %3297 }
0x1a4e   : > { %v2222_v48 = vmul.f32 %v3298_v47, %v3296_v41 }
0x1a50   : > { %v2223_v49 = vpack.c.bf16 %v2222_v48, %v2222_v48  ;;  %v2554_v48 = vld [vmem:[%s593_s2] sm:$0x1] }
0x1a52   : > { %3159 = vmatmul.mubr.msk.bf16.vlgmr.msra.gmra.mrb[60].mxu1 %vm708_vm2, %v2223_v49 }
0x1a53   : > { %3172 = vmatprep.mubr.msk.bf16.mxu1 %vm3318_vm1, %v3317_v8  ;;  %3169 = vmatpush3.bf16.msra.mxu1 %v3245_v9 }
0x1a54   : > { %3170 = vmatprep.subr.bf16.mxu1 %v3317_v8 }
0x1b25   : > { %v2266_v52 = vpop.f32.mrb[60].mxu1 }
0x1b26   : > { %v2272_v53 = vpack.c.bf16 %v2266_v52, %v2266_v52  ;;  %v3160_v54 = vpop.f32.mrb[61].mxu1 }
0x1b27   : > { %v2269_v55 = vpop.f32.mrb[62].mxu1 }
0x1b28   : > { %v3161_v56 = vpop.f32.mrb[63].mxu1  ;;  %3165 = vmatmul.mubr.msk.bf16.vlgmr.msra.gmra.mrb[44].mxu0 %vm708_vm2, %v2272_v53 }
0x1b29   : > { %3192 = vmatprep.mubr.msk.bf16.mxu0 %vm3318_vm1, %v3317_v8  ;;  %3177 = vmatpush3.bf16.msra.mxu0 %v3247_v20 }
0x1b2a   : > { %3178 = vmatprep.subr.bf16.mxu0 %v3317_v8 }
0x1b2d   : > { %3179 = vmatpush3.bf16.msra.mxu0 %v3248_v21 }
0x1b2e   : > { %3180 = vmatprep.subr.bf16.mxu0 %v3317_v8 }
0x1b31   : > { %3181 = vmatpush3.bf16.msra.mxu0 %v3249_v22 }
0x1b32   : > { %3182 = vmatprep.subr.bf16.mxu0 %v3317_v8 }
0x1b35   : > { %3183 = vmatpush3.bf16.msra.mxu0 %v3250_v23 }
0x1b36   : > { %3184 = vmatprep.subr.bf16.mxu0 %v3317_v8 }
0x1b39   : > { %3185 = vmatpush3.bf16.msra.mxu0 %v3251_v24 }
0x1b3a   : > { %3186 = vmatprep.subr.bf16.mxu0 %v3317_v8 }
0x1b3d   : > { %3187 = vmatpush3.bf16.msra.mxu0 %v3252_v26 }
0x1b3e   : > { %3188 = vmatprep.subr.bf16.mxu0 %v3317_v8 }
0x1b41   : > { %3189 = vmatpush3.bf16.msra.mxu0 %v3253_v27 }
0x1b42   : > { %3190 = vmatprep.subr.bf16.mxu0 %v3317_v8 }
0x1b45   : > { %3191 = vmatpush3.bf16.msra.mxu0 %v3254_v29 }
0x1bfb   : > { %v2313_v57 = vpop.f32.mrb[44].mxu0 }
0x1bfc   : > { %v2319_v58 = vadd.f32 %v2313_v57, %v2159_v43  ;;  %v3166_v59 = vpop.f32.mrb[45].mxu0  ;;  %v2890_v43 = vld [vmem:[%s3908_s14 + $0x1] ss:$0 sm:$0xff] }
0x1bfd   : > { %v2316_v61 = vpop.f32.mrb[46].mxu0  ;;  %v3255_v57 = vld [vmem:[%s3911_s17] sm:$0xff]  }
0x1bfe   : > { %v2320_v62 = vadd.f32 %v2319_v58, %v3658_v28  ;;  %v3167_v63 = vpop.f32.mrb[47].mxu0  ;;  %v3246_v28 = vld [vmem:[%s3905_s11 + $0x18] sm:$0xff]   ;;  %v3256_v58 = vld [vmem:[%s3911_s17 + $0x8] sm:$0xff]  }
0x1bff   : > { %3171 = vmatpush3.bf16.msra.mxu1 %v3246_v28  ;;  %v2628_v63 = vld [vmem:[%s3909_s15] sm:$0x1] }
0x1c00   : > { %v3800_v1 = vadd.f32 %v2850_v60, %v2320_v62  ;;  %3196 = vmatprep.subr.mxu1 %v3317_v8 }
0x1c02   : > { %v2334_v2 = vsel %vm604_vm0, %v3800_v1, 0.0 }
0x1c03   : > { %2335 = vadd.xlane.f32.xlu1 %v2334_v2  ;;  %v2629_v2 = vld [vmem:[%s3910_s16] sm:$0x1] }
0x1c90   : > { %v2336_v3 = vpop.xlane.xlu1 %2335 }
0x1c91   : > { %v2337_v4 = vmul.f32 0.03125, %v2336_v3 }
0x1c93   : > { %v2338_v5 = vsub.f32 %v3800_v1, %v2337_v4 }
0x1c95   : > { %v2339_v6 = vmul.f32 %v2338_v5, %v2338_v5 }
0x1c97   : > { %v2340_v7 = vsel %vm604_vm0, %v2339_v6, 0.0 }
0x1c98   : > { %2341 = vadd.xlane.f32.xlu1 %v2340_v7 }
0x1d25   : > { %v2342_v10 = vpop.xlane.xlu1 %2341 }
0x1d26   : > { %v2343_v11 = vmul.f32 0.03125, %v2342_v10 }
0x1d28   : > { %v2344_v12 = vadd.f32 1e-05, %v2343_v11 }
0x1d2a   : > { %3299 = vrsqrt.f32 %v2344_v12 }
0x1d34   : > { %v3300_v13 = vpop.eup %3299 }
0x1d35   : > { %v2346_v15 = vmul.f32 %v3300_v13, %v2338_v5 }
0x1d37   : > { %v2353_v17 = vmul.f32 %v2853_v14, %v2346_v15 }
0x1d39   : > { %v2360_v18 = vadd.f32 %v2854_v16, %v2353_v17 }
0x1d3b   : > { %v2361_v19 = vpack.c.bf16 %v2360_v18, %v2360_v18 }
0x1d3d   : > { %3173 = vmatmul.mubr.msk.bf16.vlgmr.msra.gmra.mrb[64].mxu1 %vm604_vm0, %v2361_v19 }
0x1d3e   : > { %3198 = vmatprep.mubr.msk.f32.mxu1 %vm3318_vm1, %v3317_v8 }
0x1e10   : > { %v2424_v25 = vpop.f32.mrb[64].mxu1 }
0x1e11   : > { %v2425_v31 = vadd.f32 %v2860_v30, %v2424_v25  ;;  %v3174_v32 = vpop.f32.mrb[65].mxu1 }
0x1e12   : > { %v2427_v33 = vpop.f32.mrb[66].mxu1 }
0x1e13   : > { %v2864_v34 = vmul.f32 -1.702, %v2425_v31  ;;  %v3175_v35 = vpop.f32.mrb[67].mxu1 }
0x1e15   : > { %v2432_v36 = vmul.f32 1.442695, %v2864_v34 }
0x1e17   : > { %3301 = vpow2.f32 %v2432_v36 }
0x1e21   : > { %v3302_v37 = vpop.eup %3301 }
0x1e22   : > { %v2434_v39 = vadd.f32 1.0, %v3302_v37 }
0x1e24   : > { %3303 = vrcp.f32 %v2434_v39 }
0x1e2e   : > { %v3304_v40 = vpop.eup %3303 }
0x1e2f   : > { %v2437_v41 = vmul.f32 %v3304_v40, %v2425_v31 }
0x1e31   : > { %v2438_v42 = vpack.c.bf16 %v2437_v41, %v2437_v41 }
0x1e33   : > { %3193 = vmatmul.mubr.bf16.vlgmr.msra.gmra.mrb[48].mxu0 %v2438_v42 }
0x1f06   : > { %v2538_v38 = vpop.f32.mrb[48].mxu0 }
0x1f07   : > { %v2544_v44 = vadd.f32 %v2538_v38, %v3800_v1  ;;  %v3194_v45 = vpop.f32.mrb[49].mxu0 }
0x1f08   : > { %v2541_v0 = vpop.f32.mrb[50].mxu0 }
0x1f09   : > { %v2553_v46 = vadd.f32 %v2890_v43, %v2544_v44  ;;  %v3195_v47 = vpop.f32.mrb[51].mxu0 }
0x1f0b   : > { %3197 = vmatpush3.msra.mxu1 %v2553_v46 }
0x1f0c   : > { %3199 = vmatmul.mubr.msk.f32.vlgmr.msra.gmra.mrb[68].mxu1 %vm708_vm2, %v2554_v48  ;;  %3201 = vmatprep.subr.bf16.mxu1 %v3317_v8 }
0x1f0d   : > { %3205 = vmatprep.mubr.msk.bf16.mxu1 %vm3318_vm1, %v3317_v8  ;;  %3202 = vmatpush3.bf16.msra.mxu1 %v3255_v57 }
0x1f0e   : > { %3203 = vmatprep.subr.bf16.mxu1 %v3317_v8 }
0x1f11   : > { %3204 = vmatpush3.bf16.msra.mxu1 %v3256_v58 }
0x1fdf   : > { %v2624_v49 = vpop.f32.mrb[68].mxu1 }
0x1fe0   : > { %v2631_v50 = vsel %vm2630_vm5, %v2624_v49, 0.0  ;;  %v3200_v51 = vpop.f32.mrb[69].mxu1 }
0x1fe1   : > { %2632 = vadd.xlane.f32.xlu1 %v2631_v50 }
0x206e   : > { %v2633_v52 = vpop.xlane.xlu1 %2632 }
0x206f   : > { %v2634_v53 = vmul.f32 0.03125, %v2633_v52 }
0x2071   : > { %v2635_v54 = vsub.f32 %v2624_v49, %v2634_v53 }
0x2073   : > { %v2636_v55 = vmul.f32 %v2635_v54, %v2635_v54 }
0x2075   : > { %v2637_v56 = vsel %vm2630_vm5, %v2636_v55, 0.0 }
0x2076   : > { %2638 = vadd.xlane.f32.xlu1 %v2637_v56 }
0x2103   : > { %v2639_v59 = vpop.xlane.xlu1 %2638 }
0x2104   : > { %v2640_v60 = vmul.f32 0.03125, %v2639_v59 }
0x2106   : > { %v2641_v61 = vadd.f32 1e-05, %v2640_v60 }
0x2108   : > { %3305 = vrsqrt.f32 %v2641_v61 }
0x2112   : > { %v3306_v62 = vpop.eup %3305 }
0x2113   : > { %v2643_v1 = vmul.f32 %v3306_v62, %v2635_v54 }
0x2115   : > { %v2644_v3 = vmul.f32 %v2643_v1, %v2628_v63 }
0x2117   : > { %v2645_v4 = vadd.f32 %v2644_v3, %v2629_v2 }
0x2119   : > { %v2646_v5 = vpack.c.bf16 %v2645_v4, %v2645_v4 }
0x211b   : > { %3206 = vmatmul.mubr.msk.bf16.vlgmr.msra.gmra.mrb[72].mxu1 %vm604_vm0, %v2646_v5 }
0x21ee   : > { %v2700_v8 = vpop.f32.mrb[72].mxu1 }
0x21ef   : > { %v2706_v6 = vmul.f32 %v2700_v8, %v2700_v8  ;;  %v3207_v7 = vpop.f32.mrb[73].mxu1 }
0x21f0   : > { %v2703_v9 = vpop.f32.mrb[74].mxu1 }
0x21f1   : > { %v3208_v28 = vpop.f32.mrb[75].mxu1  ;;  %v2707_v10 = vsel %vm2630_vm5, %v2706_v6, 0.0 }
0x21f2   : > { %2708 = vadd.xlane.f32.xlu0 %v2707_v10 }
0x227f   : > { %v2709_v11 = vpop.xlane.xlu0 %2708 }
0x2280   : > { %v2710_v12 = vadd.f32 1e-12, %v2709_v11 }
0x2282   : > { %3307 = vrsqrt.f32 %v2710_v12 }
0x228c   : > { %v3308_v13 = vpop.eup %3307 }
0x228d   : > { %v2712_v14 = vmul.f32 %v3308_v13, %v2700_v8 }
0x228f   : > { %2713 = vst.msk [vmem:[%s596_s26] sm:$0x1] %vm2630_vm5, %v2712_v14 }
0x2290 PF: > { %s28_s27 = sadd.s32 1, %s3315_s27  }
0x2291   : > { %p25_p4 = scmp.ge.s32.totalorder %s28_s27, 10  }
0x2293   :  { %27 = sbr.rel (!%p25_p4) target bundleno = 4 (0x4), region = 140 }

// kernel: clip_baseline_forward.6
= control target key start
LH: loop header
LB: loop body
LE: loop exit
PB: predicated region body
PF: predicated region fallthrough
CT: control target
= control target key end

     0   :  { %s4094_s0 = inlined_call_operand.vmem [shape: f32[2,8,32], index: 0, kind: input, shape index: {}]   ;;  %s4095_s1 = inlined_call_operand.vmem [shape: f32[2,1,8], index: 1, kind: input, shape index: {}]   ;;  %s4096_s2 = inlined_call_operand.vmem [shape: f32[2,1,8], index: 2, kind: input, shape index: {}]   ;;  %s4097_s3 = inlined_call_operand.vmem [shape: f32[2,1,32], index: 3, kind: input, shape index: {}]   ;;  %s4098_s4 = inlined_call_operand.vmem [shape: f32[2,1,32], index: 4, kind: input, shape index: {}]   ;;  %s4099_s5 = inlined_call_operand.vmem [shape: bf16[2,32,96], index: 5, kind: input, shape index: {}]   ;;  %s4100_s6 = inlined_call_operand.vmem [shape: f32[2,1,96], index: 6, kind: input, shape index: {}]   ;;  %s4101_s7 = inlined_call_operand.vmem [shape: bf16[2,32,32], index: 7, kind: input, shape index: {}]   ;;  %s4102_s8 = inlined_call_operand.vmem [shape: f32[2,1,32], index: 8, kind: input, shape index: {}]   ;;  %s4103_s9 = inlined_call_operand.vmem [shape: f32[2,1,32], index: 9, kind: input, shape index: {}]   ;;  %s4104_s10 = inlined_call_operand.vmem [shape: f32[2,1,32], index: 10, kind: input, shape index: {}]   ;;  %s4105_s11 = inlined_call_operand.vmem [shape: bf16[2,32,128], index: 11, kind: input, shape index: {}]   ;;  %s4106_s12 = inlined_call_operand.vmem [shape: f32[2,1,128], index: 12, kind: input, shape index: {}]   ;;  %s4107_s13 = inlined_call_operand.vmem [shape: bf16[2,128,32], index: 13, kind: input, shape index: {}]   ;;  %s4108_s14 = inlined_call_operand.vmem [shape: f32[2,1,32], index: 14, kind: input, shape index: {}]   ;;  %s4109_s15 = inlined_call_operand.vmem [shape: f32[1,32], index: 15, kind: input, shape index: {}]   ;;  %s4110_s16 = inlined_call_operand.vmem [shape: f32[1,32], index: 16, kind: input, shape index: {}]   ;;  %s4111_s17 = inlined_call_operand.vmem [shape: bf16[32,32], index: 17, kind: input, shape index: {}]   ;;  %s4112_s18 = inlined_call_operand.hbm [shape: f32[2,1,32], index: 18, kind: output, shape index: {}]  }
   0x1   :  { %4125 = sst [smem:[#allocation7_spill]] %s4094_s0 }
   0x2   :  { %4126 = sst [smem:[#allocation8_spill]] %s4095_s1 }
   0x3   :  { %4127 = sst [smem:[#allocation9_spill]] %s4096_s2 }
   0x4   :  { %4128 = sst [smem:[#allocation10_spill]] %s4097_s3 }
   0x5   :  { %4129 = sst [smem:[#allocation11_spill]] %s4098_s4 }
   0x6   :  { %4130 = sst [smem:[#allocation12_spill]] %s4099_s5 }
   0x7   :  { %23 = vsyncpa [#allocation3], 0 }
   0x8   :  { %25 = vsyncpa [#allocation3 + $0x1], 0  ;;  %s3543_s27 = smov 0   ;;  %s3545_s28 = smov 0  }
   0x9   :  { %s3547_s29 = smov 0   ;;  %s3549_s30 = smov 0  }
   0xa LB: > { %4131 = sst [smem:[#allocation5_spill]] %s3427_s29  ;;  %s3564_s0 = sadd.s32 4294967295, %s3431_s30   ;;  %s3431_s30 = sphi %s3549_s30, %s4156_s30   ;;  %s3427_s29 = sphi %s3547_s29, %s4153_s29   ;;  %s3423_s28 = sphi %s3545_s28, %s4155_s28   ;;  %s3419_s27 = sphi %s3543_s27, %s4154_s27  }
   0xb   : > { %s2808_s19 = sadd.s32 4294967294, %s3431_s30   ;;  %s3568_s1 = sadd.s32 1, %s3431_s30  }
   0xc   : > { %s431_s20 = sadd.s32 1, %s3427_s29  ;;  %s428_s21 = ssub.s32 %s3431_s30, %s3568_s1 }
   0xd   : > { %p441_p0 = scmp.ne.s32.totalorder %s3427_s29, %s3423_s28  ;;  %p429_p1 = scmp.eq.s32.totalorder %s428_s21, 0 }
   0xe   : > { %p442_p2 = scmp.eq.s32.totalorder %s3564_s0, 1  ;;  %p447_p3 = scmp.ne.s32.totalorder %s3423_s28, %s3419_s27 }
   0xf   : > { %p448_p4 = scmp.eq.s32.totalorder %s2808_s19, 1  ;;  %p2811_p7 = scmp.ge.s32.totalorder %s3431_s30, 1 }
  0x10   : > { %s3579_s22 = scalar_select %p429_p1, %s3427_s29, %s431_s20  }
  0x11   : > { %p3581_p5 = por %p442_p2, %p441_p0  ;;  %p3585_p6 = por %p448_p4, %p447_p3 }
  0x12   : > { %4132 = sst [smem:[#allocation6_spill]] %s3579_s22  ;;  %p530_p8 = scmp.lt.s32.totalorder %s3431_s30, 3 }
  0x14   : > { %p531_p9 = pnand %p2811_p7, %p530_p8 }
  0x15   : > { %p588_p10 = scmp.lt.s32.totalorder (!%p531_p9), %s3564_s0, 1  ;;  %v3433_v0 = vmov (!%p531_p9), 0.0   ;;  %vm618_vm0 = vcmask (!%p531_p9), 261120   ;;  %s4135_s20 = sld [smem:[#allocation7_spill]] (!%p531_p9)  ;;  %vm3434_vm1 = vmmov (!%p531_p9), 0   ;;  %vm722_vm2 = vcmask (!%p531_p9), 64512  }
  0x16   : > { %534 = sbr.rel (%p531_p9) target bundleno = 8875 (0x22ab), region = 92  ;;  %3009 = vmatprep.subr.bf16.mxu1 (!%p531_p9), %v3433_v0  ;;  %3023 = vmatprep.subr.bf16.mxu0 (!%p531_p9), %v3433_v0  ;;  %s4136_s5 = sld [smem:[#allocation12_spill]] (!%p531_p9)  ;;  %v2815_v20 = vld [vmem:[%s4100_s6] ss:$0 sm:$0xff] (!%p531_p9)  ;;  %v603_v32 = vlaneseq (!%p531_p9)  ;;  %v3438_v37 = vmov (!%p531_p9), -1e+09  }
  0x17   : > { %3013 = vmatprep.mubr.msk.bf16.mxu1 (!%p531_p9), %vm3434_vm1, %v3433_v0  ;;  %3025 = vmatprep.mubr.msk.bf16.mxu0 (!%p531_p9), %vm3434_vm1, %v3433_v0  ;;  %s4137_s3 = sld [smem:[#allocation10_spill]] (!%p531_p9)  ;;  %s4138_s4 = sld [smem:[#allocation11_spill]] (!%p531_p9)  ;;  %vm788_vm5 = vcmask (!%p531_p9), 1043456   ;;  %vm2638_vm6 = vcmask (!%p531_p9), 253952  }
  0x18   : > { %s4122_s26 = smov (!%p531_p9), 120   ;;  %s4124_s29 = smov (!%p531_p9), 96   ;;  %v604_v34 = vshrl.u32 (!%p531_p9), %v603_v32, 7  ;;  %v606_v35 = vand.u32 (!%p531_p9), 127, %v603_v32 }
  0x19   : > { %s4117_s22 = smov (!%p531_p9), 88   ;;  %s4116_s19 = smov (!%p531_p9), 56  }
  0x1a   : > { %v612_v36 = vsub.s32 (!%p531_p9), 0, %v604_v34  ;;  %vm607_vm4 = vcmp.gt.s32.totalorder (!%p531_p9), %v606_v35, %v604_v34 }
  0x1b   : > { %v608_v40 = vsel (!%p531_p9), %vm607_vm4, -1e+09, %v3433_v0 }
  0x1c   : > { %v3291_v8 = vld [vmem:[%s4136_s5] sm:$0xff] (!%p531_p9)   ;;  %v3292_v9 = vld [vmem:[%s4136_s5 + $0x8] sm:$0xff] (!%p531_p9)  }
  0x1d   : > { %s3595_s24 = scalar_select %p588_p10, %s3564_s0, 1  ;;  %3010 = vmatpush3.bf16.msra.mxu1 %v3291_v8  ;;  %v2813_v14 = vld [vmem:[%s4137_s3] ss:$0 sm:$0xff] }
  0x1e   : > { %3011 = vmatprep.subr.bf16.mxu1 %v3433_v0  ;;  %v2814_v16 = vld [vmem:[%s4138_s4] ss:$0 sm:$0xff] }
  0x1f   : > { %s2812_s25 = sshll.u32 %s3595_s24, 3 }
  0x20   : > { %s591_s21 = scalar_lea.vmem %s4135_s20, %s2812_s25  ;;  %s4123_s20 = smov 64  }
  0x21   : > { %v3601_v1 = vld [vmem:[%s591_s21] sm:$0xff]  ;;  %3012 = vmatpush3.bf16.msra.mxu1 %v3292_v9  ;;  %s4139_s21 = sld [smem:[#allocation8_spill]] }
  0x22   : > { %v619_v2 = vsel %vm618_vm0, %v3601_v1, 0.0  ;;  %3017 = vmatprep.subr.bf16.mxu1 %v3433_v0 }
  0x23   : > { %620 = vadd.xlane.f32.xlu0 %v619_v2 }
  0x27   : > { %s594_s25 = scalar_lea.vmem %s4139_s21, %s3595_s24  ;;  %s4114_s21 = smov 80  }
  0x28   : > { %v600_v33 = vld [vmem:[%s594_s25] sm:$0x1]  ;;  %s4115_s25 = smov 112  }
  0x29   : > { %vm601_vm3 = vcmp.gt.f32.partialorder %v600_v33, 0.5 }
  0x2a   : > { %v602_v38 = vsel %vm601_vm3, 0.0, %v3438_v37 }
  0x2b   : > { %v613_v39 = vrot.slane %v602_v38, %v612_v36 }
  0x2d   : > { %v3655_v41 = vadd.f32 %v613_v39, %v608_v40 }
  0xb0   : > { %v621_v3 = vpop.xlane.xlu0 %620 }
  0xb1   : > { %v623_v4 = vmul.f32 0.03125, %v621_v3 }
  0xb3   : > { %v624_v5 = vsub.f32 %v3601_v1, %v623_v4 }
  0xb5   : > { %v625_v6 = vmul.f32 %v624_v5, %v624_v5 }
  0xb7   : > { %v626_v7 = vsel %vm618_vm0, %v625_v6, 0.0 }
  0xb8   : > { %627 = vadd.xlane.f32.xlu0 %v626_v7 }
 0x145   : > { %v628_v10 = vpop.xlane.xlu0 %627 }
 0x146   : > { %v629_v11 = vmul.f32 0.03125, %v628_v10 }
 0x148   : > { %v630_v12 = vadd.f32 1e-05, %v629_v11 }
 0x14a   : > { %3317 = vrsqrt.f32 %v630_v12 }
 0x154   : > { %v3318_v13 = vpop.eup %3317 }
 0x155   : > { %v632_v15 = vmul.f32 %v3318_v13, %v624_v5 }
 0x157   : > { %v639_v17 = vmul.f32 %v2813_v14, %v632_v15 }
 0x159   : > { %v646_v18 = vadd.f32 %v2814_v16, %v639_v17  ;;  %v714_v16 = vld [vmem:[%s4101_s7] sm:$0xf] }
 0x15a   : > { %v996_v17 = vsel %vm788_vm5, %v714_v16, 0 }
 0x15b   : > { %v647_v19 = vpack.c.bf16 %v646_v18, %v646_v18  ;;  %v715_v18 = vld [vmem:[%s4101_s7 + $0x4] sm:$0xf] }
 0x15d   : > { %3014 = vmatmul.mubr.msk.bf16.vlgmr.msra.gmra.mrb[0].mxu1 %vm618_vm0, %v647_v19  ;;  %v950_v19 = vsel %vm788_vm5, %v715_v18, 0 }
 0x15e   : > { %3019 = vmatprep.mubr.msk.bf16.mxu1 %vm3434_vm1, %v3433_v0 }
 0x230   : > { %v708_v21 = vpop.f32.mrb[0].mxu1 }
 0x231   : > { %v709_v22 = vadd.f32 %v2815_v20, %v708_v21  ;;  %v3015_v23 = vpop.f32.mrb[1].mxu1 }
 0x232   : > { %v711_v24 = vpop.f32.mrb[2].mxu1 }
 0x233   : > { %v3631_v25 = vpack.c.bf16 %v709_v22, %v709_v22  ;;  %v3016_v26 = vpop.f32.mrb[3].mxu1 }
 0x235   : > { %833 = vrot.lane.b32.xlu0 %v3631_v25, %s4122_s26  ;;  %720 = vrot.lane.b32.xlu1 %v3631_v25, %s4124_s29  ;;  %s4140_s26 = smov 96   ;;  %s4144_s29 = smov 56  }
 0x239   : > { %835 = vrot.lane.b32.xlu1 %v3631_v25, %s4117_s22  ;;  %s4121_s22 = smov 48  }
 0x2a7   : > { %v721_v27 = vpop.permute.xlu1 %720  ;;  %v834_v31 = vpop.permute.xlu0 %833 }
 0x2a8   : > { %v727_v28 = vsel %vm722_vm2, %v721_v27, 0 }
 0x2a9   : > { %3018 = vmatpush3.bf16.xpose.msra.mxu1 %v727_v28 }
 0x2aa   : > { %3029 = vmatprep.subr.bf16.mxu1 %v3433_v0 }
 0x2ab   : > { %v836_v29 = vpop.permute.xlu1 %835 }
 0x2ac   : > { %v841_v30 = vsel %vm722_vm2, %v836_v29, 0 }
 0x2b0   : > { %3020 = vmatmul.mubr.msk.bf16.vlgmr.msra.gmra.mrb[4].mxu1 %vm722_vm2, %v3631_v25 }
 0x2b1   : > { %3030 = vmatpush3.bf16.xpose.msra.mxu1 %v841_v30  ;;  %3031 = vmatprep.mubr.msk.bf16.mxu1 %vm3434_vm1, %v3433_v0 }
 0x2b2   : > { %3041 = vmatprep.subr.bf16.mxu1 %v3433_v0 }
 0x2b8   : > { %3032 = vmatmul.mubr.msk.bf16.vlgmr.msra.gmra.mrb[8].mxu1 %vm722_vm2, %v834_v31 }
 0x2b9   : > { %3043 = vmatprep.mubr.msk.bf16.mxu1 %vm3434_vm1, %v3433_v0  ;;  %3042 = vmatpush3.bf16.msra.mxu1 %v950_v19 }
 0x2ba   : > { %3053 = vmatprep.subr.bf16.mxu1 %v3433_v0 }
 0x383   : > { %v763_v42 = vpop.f32.mrb[4].mxu1 }
 0x384   : > { %v769_v43 = vmul.f32 0.35355338, %v763_v42  ;;  %v3021_v44 = vpop.f32.mrb[5].mxu1 }
 0x385   : > { %v766_v45 = vpop.f32.mrb[6].mxu1 }
 0x386   : > { %v3022_v46 = vpop.f32.mrb[7].mxu1  ;;  %v770_v47 = vadd.f32 %v769_v43, %v3655_v41 }
 0x388   : > { %v771_v48 = vsel %vm722_vm2, %v770_v47, -inf }
 0x389   : > { %772 = vmax.xlane.f32.xlu1 %v771_v48 }
 0x38b   : > { %v877_v49 = vpop.f32.mrb[8].mxu1 }
 0x38c   : > { %v883_v50 = vmul.f32 0.35355338, %v877_v49  ;;  %v3033_v51 = vpop.f32.mrb[9].mxu1 }
 0x38d   : > { %v880_v52 = vpop.f32.mrb[10].mxu1 }
 0x38e   : > { %v3034_v53 = vpop.f32.mrb[11].mxu1  ;;  %v884_v54 = vadd.f32 %v883_v50, %v3655_v41 }
 0x390   : > { %v885_v55 = vsel %vm722_vm2, %v884_v54, -inf }
 0x391   : > { %886 = vmax.xlane.f32.xlu0 %v885_v55 }
 0x3a7   : > { %897 = vrot.lane.b32.xlu0 %v3631_v25, %s4116_s19  ;;  %s4120_s19 = smov 104  }
 0x416   : > { %v773_v56 = vpop.xlane.xlu1 %772 }
 0x417   : > { %v774_v57 = vsub.f32 %v770_v47, %v773_v56 }
 0x419   : > { %v775_v58 = vmul.f32 1.442695, %v774_v57 }
 0x41b   : > { %3319 = vpow2.f32 %v775_v58 }
 0x41e   : > { %v887_v59 = vpop.xlane.xlu0 %886 }
 0x41f   : > { %v888_v60 = vsub.f32 %v884_v54, %v887_v59 }
 0x421   : > { %v889_v61 = vmul.f32 1.442695, %v888_v60 }
 0x422   : > { %v898_v10 = vpop.permute.xlu0 %897 }
 0x423   : > { %3321 = vpow2.f32 %v889_v61  ;;  %v903_v12 = vsel %vm788_vm5, %v898_v10, 0 }
 0x425   : > { %v3320_v62 = vpop.eup %3319 }
 0x426   : > { %v777_v63 = vsel %vm722_vm2, %v3320_v62, 0.0 }
 0x427   : > { %778 = vadd.xlane.f32.xlu1 %v777_v63 }
 0x42d   : > { %v3322_v2 = vpop.eup %3321 }
 0x42e   : > { %v891_v3 = vsel %vm722_vm2, %v3322_v2, 0.0 }
 0x42f   : > { %892 = vadd.xlane.f32.xlu1 %v891_v3  ;;  %v716_v3 = vld [vmem:[%s4101_s7 + $0x8] sm:$0xf] }
 0x440   : > { %783 = vrot.lane.b32.xlu1 %v3631_v25, %s4123_s20  ;;  %s4141_s20 = smov 64  }
 0x444   : > { %1040 = vrot.lane.b32.xlu1 %v3631_v25, %s4114_s21  ;;  %s4118_s21 = smov 72  }
 0x448   : > { %1038 = vrot.lane.b32.xlu1 %v3631_v25, %s4115_s25  ;;  %s4143_s25 = smov 88  }
 0x4b4   : > { %v779_v4 = vpop.xlane.xlu1 %778 }
 0x4b5   : > { %3323 = vrcp.f32 %v779_v4  ;;  %v1155_v4 = vsel %vm788_vm5, %v716_v3, 0 }
 0x4bc   : > { %v893_v5 = vpop.xlane.xlu1 %892 }
 0x4bd   : > { %3325 = vrcp.f32 %v893_v5 }
 0x4bf   : > { %v3324_v6 = vpop.eup %3323 }
 0x4c0   : > { %v784_v7 = vpop.permute.xlu1 %783  ;;  %v781_v8 = vmul.f32 %v3324_v6, %v3320_v62 }
 0x4c1   : > { %v790_v9 = vsel %vm788_vm5, %v784_v7, 0 }
 0x4c2   : > { %3024 = vmatpush3.bf16.msra.mxu0 %v790_v9  ;;  %v782_v11 = vpack.c.bf16 %v781_v8, %v781_v8 }
 0x4c3   : > { %3035 = vmatprep.subr.bf16.mxu0 %v3433_v0 }
 0x4c4   : > { %v1041_v26 = vpop.permute.xlu1 %1040 }
 0x4c5   : > { %3026 = vmatmul.mubr.msk.bf16.vlgmr.msra.gmra.mrb[0].mxu0 %vm722_vm2, %v782_v11  ;;  %v1046_v31 = vsel %vm722_vm2, %v1041_v26, 0 }
 0x4c6   : > { %3036 = vmatpush3.bf16.msra.mxu0 %v903_v12  ;;  %3037 = vmatprep.mubr.msk.bf16.mxu0 %vm3434_vm1, %v3433_v0 }
 0x4c7   : > { %v3326_v13 = vpop.eup %3325  ;;  %3047 = vmatprep.subr.bf16.mxu0 %v3433_v0 }
 0x4c8   : > { %v895_v14 = vmul.f32 %v3326_v13, %v3322_v2  ;;  %v1039_v33 = vpop.permute.xlu1 %1038 }
 0x4ca   : > { %v896_v15 = vpack.c.bf16 %v895_v14, %v895_v14 }
 0x4cd   : > { %3038 = vmatmul.mubr.msk.bf16.vlgmr.msra.gmra.mrb[4].mxu0 %vm722_vm2, %v896_v15 }
 0x4ce   : > { %3049 = vmatprep.mubr.msk.bf16.mxu0 %vm3434_vm1, %v3433_v0  ;;  %3048 = vmatpush3.bf16.msra.mxu0 %v996_v17 }
 0x4cf   : > { %3059 = vmatprep.subr.bf16.mxu0 %v3433_v0 }
 0x598   : > { %v826_v20 = vpop.f32.mrb[0].mxu0 }
 0x599   : > { %v832_v21 = vpack.c.bf16 %v826_v20, %v826_v20  ;;  %v3027_v22 = vpop.f32.mrb[1].mxu0 }
 0x59a   : > { %v829_v23 = vpop.f32.mrb[2].mxu0 }
 0x59b   : > { %v3028_v24 = vpop.f32.mrb[3].mxu0  ;;  %3050 = vmatmul.mubr.msk.bf16.vlgmr.msra.gmra.mrb[8].mxu0 %vm722_vm2, %v832_v21 }
 0x59c   : > { %3061 = vmatprep.mubr.msk.bf16.mxu0 %vm3434_vm1, %v3433_v0 }
 0x5a0   : > { %v939_v27 = vpop.f32.mrb[4].mxu0 }
 0x5a1   : > { %v945_v28 = vpack.c.bf16 %v939_v27, %v939_v27  ;;  %v3039_v29 = vpop.f32.mrb[5].mxu0 }
 0x5a2   : > { %v942_v30 = vpop.f32.mrb[6].mxu0 }
 0x5a3   : > { %v3040_v32 = vpop.f32.mrb[7].mxu0  ;;  %3044 = vmatmul.mubr.msk.bf16.vlgmr.msra.gmra.mrb[12].mxu1 %vm722_vm2, %v945_v28 }
 0x5a4   : > { %3054 = vmatpush3.bf16.xpose.msra.mxu1 %v1046_v31  ;;  %3055 = vmatprep.mubr.msk.bf16.mxu1 %vm3434_vm1, %v3433_v0 }
 0x5a5   : > { %3065 = vmatprep.subr.bf16.mxu1 %v3433_v0 }
 0x5ab   : > { %3056 = vmatmul.mubr.msk.bf16.vlgmr.msra.gmra.mrb[16].mxu1 %vm722_vm2, %v1039_v33 }
 0x5ac   : > { %3067 = vmatprep.mubr.msk.bf16.mxu1 %vm3434_vm1, %v3433_v0  ;;  %3066 = vmatpush3.bf16.msra.mxu1 %v1155_v4  ;;  %v3295_v4 = vld [vmem:[%s4107_s13] sm:$0xff]  }
 0x5ad   : > { %3077 = vmatprep.subr.bf16.mxu1 %v3433_v0 }
 0x66e   : > { %v1032_v34 = vpop.f32.mrb[8].mxu0 }
 0x66f   : > { %v3051_v35 = vpop.f32.mrb[9].mxu0 }
 0x670   : > { %v1035_v36 = vpop.f32.mrb[10].mxu0 }
 0x671   : > { %v3052_v37 = vpop.f32.mrb[11].mxu0 }
 0x676   : > { %v986_v38 = vpop.f32.mrb[12].mxu1 }
 0x677   : > { %v3702_v39 = vadd.f32 %v1032_v34, %v986_v38  ;;  %v3045_v40 = vpop.f32.mrb[13].mxu1 }
 0x678   : > { %v989_v42 = vpop.f32.mrb[14].mxu1 }
 0x679   : > { %v3046_v43 = vpop.f32.mrb[15].mxu1 }
 0x67e   : > { %v1082_v44 = vpop.f32.mrb[16].mxu1 }
 0x67f   : > { %v1088_v45 = vmul.f32 0.35355338, %v1082_v44  ;;  %v3057_v46 = vpop.f32.mrb[17].mxu1  ;;  %v2831_v44 = vld [vmem:[%s4102_s8] ss:$0 sm:$0xff] }
 0x680   : > { %v1085_v47 = vpop.f32.mrb[18].mxu1 }
 0x681   : > { %v3058_v48 = vpop.f32.mrb[19].mxu1  ;;  %v1089_v49 = vadd.f32 %v1088_v45, %v3655_v41 }
 0x683   : > { %v1090_v50 = vsel %vm722_vm2, %v1089_v49, -inf }
 0x684   : > { %1091 = vmax.xlane.f32.xlu1 %v1090_v50 }
 0x695   : > { %1102 = vrot.lane.b32.xlu1 %v3631_v25, %s4121_s22  ;;  %s4145_s22 = smov 112  }
 0x699   : > { %1198 = vrot.lane.b32.xlu1 %v3631_v25, %s4120_s19  ;;  %s4146_s19 = smov 80  }
 0x711   : > { %v1092_v51 = vpop.xlane.xlu1 %1091 }
 0x712   : > { %v1093_v52 = vsub.f32 %v1089_v49, %v1092_v51 }
 0x714   : > { %v1094_v53 = vmul.f32 1.442695, %v1093_v52 }
 0x715   : > { %v1103_v54 = vpop.permute.xlu1 %1102 }
 0x716   : > { %3327 = vpow2.f32 %v1094_v53  ;;  %v1108_v55 = vsel %vm788_vm5, %v1103_v54, 0 }
 0x717   : > { %3060 = vmatpush3.bf16.msra.mxu0 %v1108_v55  ;;  %v3293_v55 = vld [vmem:[%s4105_s11] sm:$0xff]  }
 0x718   : > { %3071 = vmatprep.subr.bf16.mxu0 %v3433_v0 }
 0x719   : > { %v1199_v2 = vpop.permute.xlu1 %1198 }
 0x720   : > { %v3328_v56 = vpop.eup %3327 }
 0x721   : > { %v1096_v57 = vsel %vm722_vm2, %v3328_v56, 0.0 }
 0x722   : > { %1097 = vadd.xlane.f32.xlu0 %v1096_v57 }
 0x738   : > { %1200 = vrot.lane.b32.xlu0 %v3631_v25, %s4118_s21  ;;  %s4119_s21 = smov 40  }
 0x7af   : > { %v1098_v58 = vpop.xlane.xlu0 %1097 }
 0x7b0   : > { %3329 = vrcp.f32 %v1098_v58 }
 0x7b3   : > { %v1201_v61 = vpop.permute.xlu0 %1200 }
 0x7b4   : > { %v1206_v63 = vsel %vm722_vm2, %v1201_v61, 0 }
 0x7ba   : > { %v3330_v59 = vpop.eup %3329 }
 0x7bb   : > { %v1100_v60 = vmul.f32 %v3330_v59, %v3328_v56 }
 0x7bd   : > { %v1101_v62 = vpack.c.bf16 %v1100_v60, %v1100_v60  ;;  %v2832_v60 = vld [vmem:[%s4103_s9] ss:$0 sm:$0xff] }
 0x7bf   : > { %3062 = vmatmul.mubr.msk.bf16.vlgmr.msra.gmra.mrb[12].mxu0 %vm722_vm2, %v1101_v62  ;;  %v2833_v62 = vld [vmem:[%s4104_s10] ss:$0 sm:$0xff] }
 0x7c0   : > { %3072 = vmatpush3.bf16.xpose.msra.mxu0 %v1206_v63  ;;  %3073 = vmatprep.mubr.msk.bf16.mxu0 %vm3434_vm1, %v3433_v0 }
 0x7c1   : > { %3083 = vmatprep.subr.bf16.mxu0 %v3433_v0 }
 0x7c7   : > { %3074 = vmatmul.mubr.msk.bf16.vlgmr.msra.gmra.mrb[16].mxu0 %vm722_vm2, %v1199_v2 }
 0x7c8   : > { %3085 = vmatprep.mubr.msk.bf16.mxu0 %vm3434_vm1, %v3433_v0 }
 0x892   : > { %v1144_v5 = vpop.f32.mrb[12].mxu0 }
 0x893   : > { %v1150_v6 = vpack.c.bf16 %v1144_v5, %v1144_v5  ;;  %v3063_v7 = vpop.f32.mrb[13].mxu0  ;;  %v3296_v5 = vld [vmem:[%s4107_s13 + $0x8] sm:$0xff]  }
 0x894   : > { %v1147_v8 = vpop.f32.mrb[14].mxu0  ;;  %v3298_v7 = vld [vmem:[%s4107_s13 + $0x18] sm:$0xff]  }
 0x895   : > { %v3064_v9 = vpop.f32.mrb[15].mxu0  ;;  %3068 = vmatmul.mubr.msk.bf16.vlgmr.msra.gmra.mrb[20].mxu1 %vm722_vm2, %v1150_v6  ;;  %v3297_v6 = vld [vmem:[%s4107_s13 + $0x10] sm:$0xff]   ;;  %v3299_v8 = vld [vmem:[%s4107_s13 + $0x20] sm:$0xff]  }
 0x896   : > { %3079 = vmatprep.mubr.msk.bf16.mxu1 %vm3434_vm1, %v3433_v0  ;;  %v3300_v9 = vld [vmem:[%s4107_s13 + $0x28] sm:$0xff]  }
 0x89a   : > { %v1242_v10 = vpop.f32.mrb[16].mxu0 }
 0x89b   : > { %v1248_v11 = vmul.f32 0.35355338, %v1242_v10  ;;  %v3075_v12 = vpop.f32.mrb[17].mxu0  ;;  %v3301_v10 = vld [vmem:[%s4107_s13 + $0x30] sm:$0xff]  }
 0x89c   : > { %v1245_v13 = vpop.f32.mrb[18].mxu0  ;;  %v2834_v12 = vld [vmem:[%s4106_s12] ss:$0 sm:$0xff] }
 0x89d   : > { %v3076_v14 = vpop.f32.mrb[19].mxu0  ;;  %v1249_v15 = vadd.f32 %v1248_v11, %v3655_v41  ;;  %v3302_v11 = vld [vmem:[%s4107_s13 + $0x38] sm:$0xff]  }
 0x89f   : > { %v1250_v16 = vsel %vm722_vm2, %v1249_v15, -inf }
 0x8a0   : > { %1251 = vmax.xlane.f32.xlu1 %v1250_v16 }
 0x92d   : > { %v1252_v17 = vpop.xlane.xlu1 %1251 }
 0x92e   : > { %v1253_v18 = vsub.f32 %v1249_v15, %v1252_v17 }
 0x930   : > { %v1254_v19 = vmul.f32 1.442695, %v1253_v18 }
 0x932   : > { %3331 = vpow2.f32 %v1254_v19 }
 0x93c   : > { %v3332_v20 = vpop.eup %3331 }
 0x93d   : > { %v1256_v21 = vsel %vm722_vm2, %v3332_v20, 0.0 }
 0x93e   : > { %1257 = vadd.xlane.f32.xlu0 %v1256_v21 }
 0x954   : > { %1262 = vrot.lane.b32.xlu0 %v3631_v25, %s4119_s21  ;;  %v717_v25 = vld [vmem:[%s4101_s7 + $0xc] sm:$0xf]  ;;  %s4142_s21 = smov 120  }
 0x955   : > { %v1315_v34 = vsel %vm788_vm5, %v717_v25, 0 }
 0x956   : > { %3084 = vmatpush3.bf16.msra.mxu0 %v1315_v34 }
 0x957   : > { %3097 = vmatprep.subr.bf16.mxu0 %v3433_v0 }
 0x968   : > { %v1191_v22 = vpop.f32.mrb[20].mxu1 }
 0x969   : > { %v1197_v23 = vadd.f32 %v1191_v22, %v3702_v39  ;;  %v3069_v24 = vpop.f32.mrb[21].mxu1 }
 0x96a   : > { %v1194_v26 = vpop.f32.mrb[22].mxu1 }
 0x96b   : > { %v3070_v27 = vpop.f32.mrb[23].mxu1 }
 0x96c   : > { %v2847_v27 = vld [vmem:[%s4108_s14] ss:$0 sm:$0xff] }
 0x9cb   : > { %v1258_v28 = vpop.xlane.xlu0 %1257 }
 0x9cc   : > { %3333 = vrcp.f32 %v1258_v28 }
 0x9cf   : > { %v1263_v29 = vpop.permute.xlu0 %1262 }
 0x9d0   : > { %v1268_v30 = vsel %vm788_vm5, %v1263_v29, 0 }
 0x9d1   : > { %3078 = vmatpush3.bf16.msra.mxu1 %v1268_v30 }
 0x9d2   : > { %3089 = vmatprep.subr.bf16.mxu1 %v3433_v0 }
 0x9d6   : > { %v3334_v31 = vpop.eup %3333 }
 0x9d7   : > { %v1260_v32 = vmul.f32 %v3334_v31, %v3332_v20 }
 0x9d9   : > { %v1261_v33 = vpack.c.bf16 %v1260_v32, %v1260_v32 }
 0x9db   : > { %3080 = vmatmul.mubr.msk.bf16.vlgmr.msra.gmra.mrb[24].mxu1 %vm722_vm2, %v1261_v33 }
 0x9dc   : > { %3093 = vmatprep.mubr.msk.bf16.mxu1 %vm3434_vm1, %v3433_v0  ;;  %3090 = vmatpush3.bf16.msra.mxu1 %v3293_v55 }
 0x9dd   : > { %3091 = vmatprep.subr.bf16.mxu1 %v3433_v0 }
 0xaae   : > { %v1304_v35 = vpop.f32.mrb[24].mxu1 }
 0xaaf   : > { %v1310_v36 = vpack.c.bf16 %v1304_v35, %v1304_v35  ;;  %v3081_v37 = vpop.f32.mrb[25].mxu1 }
 0xab0   : > { %v1307_v38 = vpop.f32.mrb[26].mxu1 }
 0xab1   : > { %v3082_v39 = vpop.f32.mrb[27].mxu1  ;;  %3086 = vmatmul.mubr.msk.bf16.vlgmr.msra.gmra.mrb[20].mxu0 %vm722_vm2, %v1310_v36  ;;  %v3303_v38 = vld [vmem:[%s4136_s5 + $0x10] sm:$0xff]  }
 0xab2   : > { %3113 = vmatprep.mubr.msk.bf16.mxu0 %vm3434_vm1, %v3433_v0  ;;  %3098 = vmatpush3.bf16.msra.mxu0 %v3295_v4  ;;  %v3304_v39 = vld [vmem:[%s4136_s5 + $0x18] sm:$0xff]  }
 0xab3   : > { %3099 = vmatprep.subr.bf16.mxu0 %v3433_v0 }
 0xab6   : > { %3100 = vmatpush3.bf16.msra.mxu0 %v3296_v5 }
 0xab7   : > { %3101 = vmatprep.subr.bf16.mxu0 %v3433_v0 }
 0xaba   : > { %3102 = vmatpush3.bf16.msra.mxu0 %v3297_v6 }
 0xabb   : > { %3103 = vmatprep.subr.bf16.mxu0 %v3433_v0 }
 0xabe   : > { %3104 = vmatpush3.bf16.msra.mxu0 %v3298_v7 }
 0xabf   : > { %3105 = vmatprep.subr.bf16.mxu0 %v3433_v0 }
 0xac2   : > { %3106 = vmatpush3.bf16.msra.mxu0 %v3299_v8 }
 0xac3   : > { %3107 = vmatprep.subr.bf16.mxu0 %v3433_v0 }
 0xac6   : > { %3108 = vmatpush3.bf16.msra.mxu0 %v3300_v9 }
 0xac7   : > { %3109 = vmatprep.subr.bf16.mxu0 %v3433_v0 }
 0xaca   : > { %3110 = vmatpush3.bf16.msra.mxu0 %v3301_v10 }
 0xacb   : > { %3111 = vmatprep.subr.bf16.mxu0 %v3433_v0 }
 0xace   : > { %3112 = vmatpush3.bf16.msra.mxu0 %v3302_v11 }
 0xacf   : > { %3143 = vmatprep.subr.bf16.mxu0 %v3433_v0 }
 0xb84   : > { %v1351_v40 = vpop.f32.mrb[20].mxu0 }
 0xb85   : > { %v1357_v42 = vadd.f32 %v1351_v40, %v1197_v23  ;;  %v3087_v43 = vpop.f32.mrb[21].mxu0 }
 0xb86   : > { %v1354_v45 = vpop.f32.mrb[22].mxu0 }
 0xb87   : > { %v1358_v46 = vadd.f32 %v1357_v42, %v3601_v1  ;;  %v3088_v47 = vpop.f32.mrb[23].mxu0  ;;  %v3294_v1 = vld [vmem:[%s4105_s11 + $0x8] sm:$0xff]   ;;  %v2850_v45 = vld [vmem:[%s4137_s3 + $0x1] ss:$0 sm:$0xff] }
 0xb88   : > { %3092 = vmatpush3.bf16.msra.mxu1 %v3294_v1  ;;  %v2851_v47 = vld [vmem:[%s4138_s4 + $0x1] ss:$0 sm:$0xff] }
 0xb89   : > { %v3754_v48 = vadd.f32 %v2831_v44, %v1358_v46  ;;  %3117 = vmatprep.subr.bf16.mxu1 %v3433_v0 }
 0xb8b   : > { %v1369_v49 = vsel %vm618_vm0, %v3754_v48, 0.0 }
 0xb8c   : > { %1370 = vadd.xlane.f32.xlu1 %v1369_v49 }
 0xc19   : > { %v1371_v50 = vpop.xlane.xlu1 %1370 }
 0xc1a   : > { %v1372_v51 = vmul.f32 0.03125, %v1371_v50 }
 0xc1c   : > { %v1373_v52 = vsub.f32 %v3754_v48, %v1372_v51  ;;  %v2857_v51 = vld [vmem:[%s4100_s6 + $0x1] ss:$0 sm:$0xff] }
 0xc1e   : > { %v1374_v53 = vmul.f32 %v1373_v52, %v1373_v52 }
 0xc20   : > { %v1375_v54 = vsel %vm618_vm0, %v1374_v53, 0.0 }
 0xc21   : > { %1376 = vadd.xlane.f32.xlu1 %v1375_v54 }
 0xcae   : > { %v1377_v56 = vpop.xlane.xlu1 %1376 }
 0xcaf   : > { %v1378_v57 = vmul.f32 0.03125, %v1377_v56 }
 0xcb1   : > { %v1379_v58 = vadd.f32 1e-05, %v1378_v57 }
 0xcb3   : > { %3335 = vrsqrt.f32 %v1379_v58 }
 0xcbd   : > { %v3336_v59 = vpop.eup %3335 }
 0xcbe   : > { %v1381_v61 = vmul.f32 %v3336_v59, %v1373_v52 }
 0xcc0   : > { %v1388_v63 = vmul.f32 %v2832_v60, %v1381_v61 }
 0xcc2   : > { %v1395_v2 = vadd.f32 %v2833_v62, %v1388_v63 }
 0xcc4   : > { %v1396_v3 = vpack.c.bf16 %v1395_v2, %v1395_v2 }
 0xcc6   : > { %3094 = vmatmul.mubr.msk.bf16.vlgmr.msra.gmra.mrb[28].mxu1 %vm618_vm0, %v1396_v3 }
 0xcc7   : > { %3121 = vmatprep.mubr.msk.bf16.mxu1 %vm3434_vm1, %v3433_v0  ;;  %3118 = vmatpush3.bf16.msra.mxu1 %v3303_v38 }
 0xcc8   : > { %3119 = vmatprep.subr.bf16.mxu1 %v3433_v0 }
 0xccb   : > { %3120 = vmatpush3.bf16.msra.mxu1 %v3304_v39 }
 0xccc   : > { %3125 = vmatprep.subr.bf16.mxu1 %v3433_v0 }
 0xd99   : > { %v1457_v13 = vpop.f32.mrb[28].mxu1 }
 0xd9a   : > { %v1458_v14 = vadd.f32 %v2834_v12, %v1457_v13  ;;  %v3095_v15 = vpop.f32.mrb[29].mxu1 }
 0xd9b   : > { %v1460_v16 = vpop.f32.mrb[30].mxu1 }
 0xd9c   : > { %v2838_v17 = vmul.f32 -1.702, %v1458_v14  ;;  %v3096_v18 = vpop.f32.mrb[31].mxu1 }
 0xd9e   : > { %v1465_v19 = vmul.f32 1.442695, %v2838_v17 }
 0xda0   : > { %3337 = vpow2.f32 %v1465_v19 }
 0xdaa   : > { %v3338_v20 = vpop.eup %3337 }
 0xdab   : > { %v1467_v21 = vadd.f32 1.0, %v3338_v20 }
 0xdad   : > { %3339 = vrcp.f32 %v1467_v21 }
 0xdb7   : > { %v3340_v22 = vpop.eup %3339 }
 0xdb8   : > { %v1470_v23 = vmul.f32 %v3340_v22, %v1458_v14 }
 0xdba   : > { %v1471_v24 = vpack.c.bf16 %v1470_v23, %v1470_v23 }
 0xdbc   : > { %3114 = vmatmul.mubr.bf16.vlgmr.msra.gmra.mrb[24].mxu0 %v1471_v24 }
 0xdbd   : > { %3145 = vmatprep.mubr.msk.bf16.mxu0 %vm3434_vm1, %v3433_v0 }
 0xe8f   : > { %v1570_v26 = vpop.f32.mrb[24].mxu0 }
 0xe90   : > { %v1576_v28 = vadd.f32 %v1570_v26, %v3754_v48  ;;  %v3115_v29 = vpop.f32.mrb[25].mxu0 }
 0xe91   : > { %v1573_v30 = vpop.f32.mrb[26].mxu0 }
 0xe92   : > { %v3818_v31 = vadd.f32 %v2847_v27, %v1576_v28  ;;  %v3116_v32 = vpop.f32.mrb[27].mxu0 }
 0xe94   : > { %v1589_v33 = vsel %vm618_vm0, %v3818_v31, 0.0 }
 0xe95   : > { %1590 = vadd.xlane.f32.xlu1 %v1589_v33 }
 0xf22   : > { %v1591_v25 = vpop.xlane.xlu1 %1590 }
 0xf23   : > { %v1592_v34 = vmul.f32 0.03125, %v1591_v25 }
 0xf25   : > { %v1593_v35 = vsub.f32 %v3818_v31, %v1592_v34 }
 0xf27   : > { %v1594_v36 = vmul.f32 %v1593_v35, %v1593_v35 }
 0xf29   : > { %v1595_v37 = vsel %vm618_vm0, %v1594_v36, 0.0 }
 0xf2a   : > { %1596 = vadd.xlane.f32.xlu1 %v1595_v37  ;;  %v2862_v37 = vld [vmem:[%s4101_s7 + $0x14] sm:$0xf] }
 0xf2b   : > { %v1920_v38 = vsel %vm788_vm5, %v2862_v37, 0 }
 0xfb7   : > { %v1597_v40 = vpop.xlane.xlu1 %1596 }
 0xfb8   : > { %v1598_v42 = vmul.f32 0.03125, %v1597_v40 }
 0xfba   : > { %v1599_v43 = vadd.f32 1e-05, %v1598_v42  ;;  %v2861_v42 = vld [vmem:[%s4101_s7 + $0x10] sm:$0xf] }
 0xfbc   : > { %3341 = vrsqrt.f32 %v1599_v43 }
 0xfc6   : > { %v3342_v44 = vpop.eup %3341 }
 0xfc7   : > { %v1601_v46 = vmul.f32 %v3342_v44, %v1593_v35 }
 0xfc9   : > { %v1608_v48 = vmul.f32 %v2850_v45, %v1601_v46  ;;  %v1966_v45 = vsel %vm788_vm5, %v2861_v42, 0 }
 0xfcb   : > { %v1615_v49 = vadd.f32 %v2851_v47, %v1608_v48 }
 0xfcd   : > { %v1616_v50 = vpack.c.bf16 %v1615_v49, %v1615_v49 }
 0xfcf   : > { %3122 = vmatmul.mubr.msk.bf16.vlgmr.msra.gmra.mrb[32].mxu1 %vm618_vm0, %v1616_v50 }
 0xfd0   : > { %3127 = vmatprep.mubr.msk.bf16.mxu1 %vm3434_vm1, %v3433_v0 }
0x10a2   : > { %v1679_v52 = vpop.f32.mrb[32].mxu1 }
0x10a3   : > { %v1680_v53 = vadd.f32 %v2857_v51, %v1679_v52  ;;  %v3123_v54 = vpop.f32.mrb[33].mxu1 }
0x10a4   : > { %v1682_v55 = vpop.f32.mrb[34].mxu1 }
0x10a5   : > { %v3844_v1 = vpack.c.bf16 %v1680_v53, %v1680_v53  ;;  %v3124_v56 = vpop.f32.mrb[35].mxu1 }
0x10a7   : > { %1692 = vrot.lane.b32.xlu1 %v3844_v1, %s4140_s26  ;;  %s4151_s26 = sld [smem:[#allocation9_spill]] }
0x1119   : > { %v1693_v57 = vpop.permute.xlu1 %1692 }
0x111a   : > { %v1698_v58 = vsel %vm722_vm2, %v1693_v57, 0 }
0x111b   : > { %3126 = vmatpush3.bf16.xpose.msra.mxu1 %v1698_v58 }
0x111c   : > { %3131 = vmatprep.subr.bf16.mxu1 %v3433_v0 }
0x1122   : > { %3128 = vmatmul.mubr.msk.bf16.vlgmr.msra.gmra.mrb[36].mxu1 %vm722_vm2, %v3844_v1 }
0x1123   : > { %3133 = vmatprep.mubr.msk.bf16.mxu1 %vm3434_vm1, %v3433_v0 }
0x11f5   : > { %v1734_v59 = vpop.f32.mrb[36].mxu1 }
0x11f6   : > { %v1740_v60 = vmul.f32 0.35355338, %v1734_v59  ;;  %v3129_v61 = vpop.f32.mrb[37].mxu1 }
0x11f7   : > { %v1737_v62 = vpop.f32.mrb[38].mxu1 }
0x11f8   : > { %v3130_v63 = vpop.f32.mrb[39].mxu1  ;;  %v1741_v2 = vadd.f32 %v1740_v60, %v3655_v41 }
0x11fa   : > { %v1742_v3 = vsel %vm722_vm2, %v1741_v2, -inf }
0x11fb   : > { %1743 = vmax.xlane.f32.xlu0 %v1742_v3 }
0x1211   : > { %1754 = vrot.lane.b32.xlu0 %v3844_v1, %s4141_s20  ;;  %s597_s20 = scalar_lea.vmem %s4151_s26, %s3595_s24  ;;  %s2923_s24 = sshll.u32 %s3564_s0, 4 }
0x1212   : > { %s3447_s0 = smov [#allocation2]  }
0x1213   : > { %s3373_s4 = sshll.u32 %s3447_s0, 4  ;;  %s3374_s4 = int_to_ptr.vmem [resolvable:$false] %s3373_s4 }
0x1214   : > { %s3375_s5 = scalar_lea.vmem %s3374_s4, 32 }
0x1215   : > { %1803 = vrot.lane.b32.xlu0 %v3844_v1, %s4142_s21  ;;  %s4150_s21 = smov 40  }
0x1288   : > { %v1744_v4 = vpop.xlane.xlu0 %1743 }
0x1289   : > { %v1745_v5 = vsub.f32 %v1741_v2, %v1744_v4 }
0x128b   : > { %v1746_v6 = vmul.f32 1.442695, %v1745_v5 }
0x128c   : > { %v1755_v7 = vpop.permute.xlu0 %1754 }
0x128d   : > { %3343 = vpow2.f32 %v1746_v6  ;;  %v1760_v8 = vsel %vm788_vm5, %v1755_v7, 0 }
0x128e   : > { %3132 = vmatpush3.bf16.msra.mxu1 %v1760_v8 }
0x128f   : > { %3137 = vmatprep.subr.bf16.mxu1 %v3433_v0 }
0x1290   : > { %v1804_v17 = vpop.permute.xlu0 %1803 }
0x1297   : > { %v3344_v9 = vpop.eup %3343 }
0x1298   : > { %v1748_v10 = vsel %vm722_vm2, %v3344_v9, 0.0 }
0x1299   : > { %1749 = vadd.xlane.f32.xlu1 %v1748_v10 }
0x12aa   : > { %1805 = vrot.lane.b32.xlu1 %v3844_v1, %s4143_s25 }
0x1326   : > { %v1750_v11 = vpop.xlane.xlu1 %1749 }
0x1327   : > { %3345 = vrcp.f32 %v1750_v11 }
0x132a   : > { %v1806_v14 = vpop.permute.xlu1 %1805 }
0x132b   : > { %v1811_v16 = vsel %vm722_vm2, %v1806_v14, 0 }
0x1331   : > { %v3346_v12 = vpop.eup %3345 }
0x1332   : > { %v1752_v13 = vmul.f32 %v3346_v12, %v3344_v9 }
0x1334   : > { %v1753_v15 = vpack.c.bf16 %v1752_v13, %v1752_v13 }
0x1336   : > { %3134 = vmatmul.mubr.msk.bf16.vlgmr.msra.gmra.mrb[40].mxu1 %vm722_vm2, %v1753_v15 }
0x1337   : > { %3138 = vmatpush3.bf16.xpose.msra.mxu1 %v1811_v16  ;;  %3139 = vmatprep.mubr.msk.bf16.mxu1 %vm3434_vm1, %v3433_v0 }
0x1338   : > { %3149 = vmatprep.subr.bf16.mxu1 %v3433_v0 }
0x133e   : > { %3140 = vmatmul.mubr.msk.bf16.vlgmr.msra.gmra.mrb[44].mxu1 %vm722_vm2, %v1804_v17 }
0x133f   : > { %3151 = vmatprep.mubr.msk.bf16.mxu1 %vm3434_vm1, %v3433_v0  ;;  %3150 = vmatpush3.bf16.msra.mxu1 %v1920_v38 }
0x1340   : > { %3161 = vmatprep.subr.bf16.mxu1 %v3433_v0 }
0x1409   : > { %v1796_v18 = vpop.f32.mrb[40].mxu1 }
0x140a   : > { %v3135_v19 = vpop.f32.mrb[41].mxu1  ;;  %v1802_v46 = vpack.c.bf16 %v1796_v18, %v1796_v18 }
0x140b   : > { %v1799_v20 = vpop.f32.mrb[42].mxu1 }
0x140c   : > { %v3136_v21 = vpop.f32.mrb[43].mxu1 }
0x1411   : > { %v1847_v22 = vpop.f32.mrb[44].mxu1 }
0x1412   : > { %v1853_v23 = vmul.f32 0.35355338, %v1847_v22  ;;  %v3141_v24 = vpop.f32.mrb[45].mxu1 }
0x1413   : > { %v1850_v26 = vpop.f32.mrb[46].mxu1 }
0x1414   : > { %v3142_v27 = vpop.f32.mrb[47].mxu1  ;;  %v1854_v28 = vadd.f32 %v1853_v23, %v3655_v41  ;;  %v2863_v23 = vld [vmem:[%s4101_s7 + $0x18] sm:$0xf] }
0x1415   : > { %v2125_v24 = vsel %vm788_vm5, %v2863_v23, 0  ;;  %v3307_v23 = vld [vmem:[%s4107_s13 + $0x40] sm:$0xff]  }
0x1416   : > { %v1855_v29 = vsel %vm722_vm2, %v1854_v28, -inf }
0x1417   : > { %1856 = vmax.xlane.f32.xlu0 %v1855_v29 }
0x142d   : > { %1867 = vrot.lane.b32.xlu0 %v3844_v1, %s4144_s29  ;;  %s4147_s29 = smov 48  }
0x1431   : > { %2008 = vrot.lane.b32.xlu0 %v3844_v1, %s4145_s22  ;;  %s4148_s22 = smov 104  }
0x14a4   : > { %v1857_v30 = vpop.xlane.xlu0 %1856 }
0x14a5   : > { %v1858_v32 = vsub.f32 %v1854_v28, %v1857_v30 }
0x14a7   : > { %v1859_v33 = vmul.f32 1.442695, %v1858_v32 }
0x14a8   : > { %v1868_v25 = vpop.permute.xlu0 %1867 }
0x14a9   : > { %3347 = vpow2.f32 %v1859_v33  ;;  %v1873_v34 = vsel %vm788_vm5, %v1868_v25, 0 }
0x14aa   : > { %3144 = vmatpush3.bf16.msra.mxu0 %v1873_v34 }
0x14ab   : > { %3155 = vmatprep.subr.bf16.mxu0 %v3433_v0 }
0x14ac   : > { %v2009_v56 = vpop.permute.xlu0 %2008 }
0x14b3   : > { %v3348_v35 = vpop.eup %3347 }
0x14b4   : > { %v1861_v36 = vsel %vm722_vm2, %v3348_v35, 0.0 }
0x14b5   : > { %1862 = vadd.xlane.f32.xlu1 %v1861_v36 }
0x14c6   : > { %2010 = vrot.lane.b32.xlu1 %v3844_v1, %s4146_s19  ;;  %s4149_s19 = smov 72  }
0x1542   : > { %v1863_v39 = vpop.xlane.xlu1 %1862 }
0x1543   : > { %3349 = vrcp.f32 %v1863_v39 }
0x1546   : > { %v2011_v47 = vpop.permute.xlu1 %2010 }
0x1547   : > { %v2016_v52 = vsel %vm722_vm2, %v2011_v47, 0 }
0x154d   : > { %v3350_v40 = vpop.eup %3349 }
0x154e   : > { %v1865_v43 = vmul.f32 %v3350_v40, %v3348_v35 }
0x1550   : > { %v1866_v44 = vpack.c.bf16 %v1865_v43, %v1865_v43 }
0x1552   : > { %3146 = vmatmul.mubr.msk.bf16.vlgmr.msra.gmra.mrb[28].mxu0 %vm722_vm2, %v1866_v44 }
0x1553   : > { %3156 = vmatpush3.bf16.msra.mxu0 %v1966_v45  ;;  %3157 = vmatprep.mubr.msk.bf16.mxu0 %vm3434_vm1, %v3433_v0 }
0x1554   : > { %3167 = vmatprep.subr.bf16.mxu0 %v3433_v0 }
0x155a   : > { %3158 = vmatmul.mubr.msk.bf16.vlgmr.msra.gmra.mrb[32].mxu0 %vm722_vm2, %v1802_v46 }
0x155b   : > { %3169 = vmatprep.mubr.msk.bf16.mxu0 %vm3434_vm1, %v3433_v0 }
0x1625   : > { %v1909_v48 = vpop.f32.mrb[28].mxu0 }
0x1626   : > { %v1915_v49 = vpack.c.bf16 %v1909_v48, %v1909_v48  ;;  %v3147_v50 = vpop.f32.mrb[29].mxu0 }
0x1627   : > { %v1912_v51 = vpop.f32.mrb[30].mxu0 }
0x1628   : > { %v3148_v53 = vpop.f32.mrb[31].mxu0  ;;  %3152 = vmatmul.mubr.msk.bf16.vlgmr.msra.gmra.mrb[48].mxu1 %vm722_vm2, %v1915_v49 }
0x1629   : > { %3162 = vmatpush3.bf16.xpose.msra.mxu1 %v2016_v52  ;;  %3163 = vmatprep.mubr.msk.bf16.mxu1 %vm3434_vm1, %v3433_v0  ;;  %v2864_v53 = vld [vmem:[%s4101_s7 + $0x1c] sm:$0xf] }
0x162a   : > { %3173 = vmatprep.subr.bf16.mxu1 %v3433_v0 }
0x162d   : > { %v2002_v54 = vpop.f32.mrb[32].mxu0 }
0x162e   : > { %v3159_v55 = vpop.f32.mrb[33].mxu0 }
0x162f   : > { %v2005_v57 = vpop.f32.mrb[34].mxu0 }
0x1630   : > { %v3160_v58 = vpop.f32.mrb[35].mxu0  ;;  %3164 = vmatmul.mubr.msk.bf16.vlgmr.msra.gmra.mrb[52].mxu1 %vm722_vm2, %v2009_v56 }
0x1631   : > { %3175 = vmatprep.mubr.msk.bf16.mxu1 %vm3434_vm1, %v3433_v0  ;;  %3174 = vmatpush3.bf16.msra.mxu1 %v2125_v24  ;;  %v3308_v24 = vld [vmem:[%s4107_s13 + $0x48] sm:$0xff]  }
0x1632   : > { %3185 = vmatprep.subr.bf16.mxu1 %v3433_v0 }
0x16fb   : > { %v1956_v59 = vpop.f32.mrb[48].mxu1 }
0x16fc   : > { %v3908_v60 = vadd.f32 %v2002_v54, %v1956_v59  ;;  %v3153_v61 = vpop.f32.mrb[49].mxu1  ;;  %v2285_v54 = vsel %vm788_vm5, %v2864_v53, 0 }
0x16fd   : > { %v1959_v62 = vpop.f32.mrb[50].mxu1 }
0x16fe   : > { %v3154_v63 = vpop.f32.mrb[51].mxu1 }
0x16ff   : > { %v2878_v63 = vld [vmem:[%s4102_s8 + $0x1] ss:$0 sm:$0xff] }
0x1703   : > { %v2052_v2 = vpop.f32.mrb[52].mxu1 }
0x1704   : > { %v2058_v3 = vmul.f32 0.35355338, %v2052_v2  ;;  %v3165_v4 = vpop.f32.mrb[53].mxu1 }
0x1705   : > { %v2055_v5 = vpop.f32.mrb[54].mxu1 }
0x1706   : > { %v3166_v6 = vpop.f32.mrb[55].mxu1  ;;  %v2059_v7 = vadd.f32 %v2058_v3, %v3655_v41 }
0x1708   : > { %v2060_v8 = vsel %vm722_vm2, %v2059_v7, -inf }
0x1709   : > { %2061 = vmax.xlane.f32.xlu0 %v2060_v8 }
0x171f   : > { %2072 = vrot.lane.b32.xlu0 %v3844_v1, %s4147_s29 }
0x1723   : > { %2168 = vrot.lane.b32.xlu0 %v3844_v1, %s4148_s22  ;;  %s4051_s22 = scalar_lea.hbm %s4112_s18, %s2923_s24 }
0x1796   : > { %v2062_v9 = vpop.xlane.xlu0 %2061 }
0x1797   : > { %v2063_v10 = vsub.f32 %v2059_v7, %v2062_v9 }
0x1799   : > { %v2064_v11 = vmul.f32 1.442695, %v2063_v10 }
0x179a   : > { %v2073_v12 = vpop.permute.xlu0 %2072 }
0x179b   : > { %3351 = vpow2.f32 %v2064_v11  ;;  %v2078_v13 = vsel %vm788_vm5, %v2073_v12, 0  ;;  %v3305_v12 = vld [vmem:[%s4105_s11 + $0x10] sm:$0xff]  }
0x179c   : > { %3168 = vmatpush3.bf16.msra.mxu0 %v2078_v13 }
0x179d   : > { %3179 = vmatprep.subr.bf16.mxu0 %v3433_v0 }
0x179e   : > { %v2169_v22 = vpop.permute.xlu0 %2168 }
0x17a5   : > { %v3352_v14 = vpop.eup %3351 }
0x17a6   : > { %v2066_v15 = vsel %vm722_vm2, %v3352_v14, 0.0 }
0x17a7   : > { %2067 = vadd.xlane.f32.xlu1 %v2066_v15 }
0x17b8   : > { %2170 = vrot.lane.b32.xlu1 %v3844_v1, %s4149_s19 }
0x1834   : > { %v2068_v16 = vpop.xlane.xlu1 %2067 }
0x1835   : > { %3353 = vrcp.f32 %v2068_v16 }
0x1838   : > { %v2171_v19 = vpop.permute.xlu1 %2170 }
0x1839   : > { %v2176_v21 = vsel %vm722_vm2, %v2171_v19, 0  ;;  %v2882_v19 = vld [vmem:[%s4104_s10 + $0x1] ss:$0 sm:$0xff] }
0x183f   : > { %v3354_v17 = vpop.eup %3353 }
0x1840   : > { %v2070_v18 = vmul.f32 %v3354_v17, %v3352_v14  ;;  %v2881_v17 = vld [vmem:[%s4103_s9 + $0x1] ss:$0 sm:$0xff] }
0x1842   : > { %v2071_v20 = vpack.c.bf16 %v2070_v18, %v2070_v18 }
0x1844   : > { %3170 = vmatmul.mubr.msk.bf16.vlgmr.msra.gmra.mrb[36].mxu0 %vm722_vm2, %v2071_v20 }
0x1845   : > { %3180 = vmatpush3.bf16.xpose.msra.mxu0 %v2176_v21  ;;  %3181 = vmatprep.mubr.msk.bf16.mxu0 %vm3434_vm1, %v3433_v0 }
0x1846   : > { %3191 = vmatprep.subr.bf16.mxu0 %v3433_v0 }
0x184c   : > { %3182 = vmatmul.mubr.msk.bf16.vlgmr.msra.gmra.mrb[40].mxu0 %vm722_vm2, %v2169_v22 }
0x184d   : > { %3193 = vmatprep.mubr.msk.bf16.mxu0 %vm3434_vm1, %v3433_v0  ;;  %3192 = vmatpush3.bf16.msra.mxu0 %v2285_v54 }
0x184e   : > { %3205 = vmatprep.subr.bf16.mxu0 %v3433_v0 }
0x1917   : > { %v2114_v26 = vpop.f32.mrb[36].mxu0 }
0x1918   : > { %v2120_v27 = vpack.c.bf16 %v2114_v26, %v2114_v26  ;;  %v3171_v28 = vpop.f32.mrb[37].mxu0  ;;  %v3309_v26 = vld [vmem:[%s4107_s13 + $0x50] sm:$0xff]  }
0x1919   : > { %v2117_v29 = vpop.f32.mrb[38].mxu0  ;;  %v3311_v28 = vld [vmem:[%s4107_s13 + $0x60] sm:$0xff]  }
0x191a   : > { %v3172_v30 = vpop.f32.mrb[39].mxu0  ;;  %3176 = vmatmul.mubr.msk.bf16.vlgmr.msra.gmra.mrb[56].mxu1 %vm722_vm2, %v2120_v27  ;;  %v3310_v27 = vld [vmem:[%s4107_s13 + $0x58] sm:$0xff]   ;;  %v3312_v29 = vld [vmem:[%s4107_s13 + $0x68] sm:$0xff]  }
0x191b   : > { %3187 = vmatprep.mubr.msk.bf16.mxu1 %vm3434_vm1, %v3433_v0  ;;  %v3313_v30 = vld [vmem:[%s4107_s13 + $0x70] sm:$0xff]  }
0x191f   : > { %v2212_v32 = vpop.f32.mrb[40].mxu0 }
0x1920   : > { %v2218_v33 = vmul.f32 0.35355338, %v2212_v32  ;;  %v3183_v25 = vpop.f32.mrb[41].mxu0  ;;  %v3314_v32 = vld [vmem:[%s4107_s13 + $0x78] sm:$0xff]  }
0x1921   : > { %v2215_v34 = vpop.f32.mrb[42].mxu0 }
0x1922   : > { %v3184_v35 = vpop.f32.mrb[43].mxu0  ;;  %v2219_v36 = vadd.f32 %v2218_v33, %v3655_v41  ;;  %v2888_v33 = vld [vmem:[%s4106_s12 + $0x1] ss:$0 sm:$0xff] }
0x1924   : > { %v2220_v37 = vsel %vm722_vm2, %v2219_v36, -inf }
0x1925   : > { %2221 = vmax.xlane.f32.xlu0 %v2220_v37 }
0x193b   : > { %2232 = vrot.lane.b32.xlu0 %v3844_v1, %s4150_s21 }
0x19b2   : > { %v2222_v38 = vpop.xlane.xlu0 %2221 }
0x19b3   : > { %v2223_v39 = vsub.f32 %v2219_v36, %v2222_v38 }
0x19b5   : > { %v2224_v40 = vmul.f32 1.442695, %v2223_v39 }
0x19b6   : > { %v2233_v42 = vpop.permute.xlu0 %2232 }
0x19b7   : > { %3355 = vpow2.f32 %v2224_v40  ;;  %v2238_v43 = vsel %vm788_vm5, %v2233_v42, 0 }
0x19b8   : > { %3186 = vmatpush3.bf16.msra.mxu1 %v2238_v43 }
0x19b9   : > { %3197 = vmatprep.subr.bf16.mxu1 %v3433_v0 }
0x19c1   : > { %v3356_v44 = vpop.eup %3355 }
0x19c2   : > { %v2226_v45 = vsel %vm722_vm2, %v3356_v44, 0.0 }
0x19c3   : > { %2227 = vadd.xlane.f32.xlu1 %v2226_v45 }
0x19ed   : > { %v2161_v41 = vpop.f32.mrb[56].mxu1 }
0x19ee   : > { %v2167_v46 = vadd.f32 %v2161_v41, %v3908_v60  ;;  %v3177_v47 = vpop.f32.mrb[57].mxu1 }
0x19ef   : > { %v2164_v48 = vpop.f32.mrb[58].mxu1 }
0x19f0   : > { %v3178_v1 = vpop.f32.mrb[59].mxu1 }
0x1a50   : > { %v2228_v49 = vpop.xlane.xlu1 %2227 }
0x1a51   : > { %3357 = vrcp.f32 %v2228_v49 }
0x1a5b   : > { %v3358_v50 = vpop.eup %3357 }
0x1a5c   : > { %v2230_v51 = vmul.f32 %v3358_v50, %v3356_v44 }
0x1a5e   : > { %v2231_v52 = vpack.c.bf16 %v2230_v51, %v2230_v51  ;;  %v2562_v51 = vld [vmem:[%s597_s20] sm:$0x1]  ;;  %s586_s20 = sand.u32 1, %s3423_s28  }
0x1a5f   : > { %s587_s21 = scalar_lea.vmem [#allocation2], %s586_s20  ;;  %s2723_s19 = scalar_lea.sflag [#allocation3], %s586_s20 }
0x1a60   : > { %3188 = vmatmul.mubr.msk.bf16.vlgmr.msra.gmra.mrb[60].mxu1 %vm722_vm2, %v2231_v52  ;;  %s2735_s25 = sshll.u32 %s587_s21, 4  ;;  %s4053_s25 = int_to_ptr.vmem [resolvable:$true] %s2735_s25 }
0x1a61   : > { %3201 = vmatprep.mubr.msk.bf16.mxu1 %vm3434_vm1, %v3433_v0  ;;  %3198 = vmatpush3.bf16.msra.mxu1 %v3305_v12  ;;  %s3369_s26 = scalar_lea.vmem %s4053_s25, 16  ;;  %p3376_p0 = scmp.lt.s32.totalorder %s4053_s25, %s3374_s4 }
0x1a62   : > { %3199 = vmatprep.subr.bf16.mxu1 %v3433_v0  ;;  %p3370_p11 = scmp.ne.s32.totalorder %s4053_s25, %s3369_s26  ;;  %p3377_p1 = scmp.lt.s32.totalorder %s3375_s5, %s3369_s26 }
0x1a64   : > { %p3371_p12 = pnand %p3370_p11, %p3581_p5  ;;  %p3378_p2 = por %p3377_p1, %p3376_p0 }
0x1a66   : > { %p3372_p13 = pneg %p3371_p12 }
0x1a68   : > { %p3379_p3 = pnand %p3378_p2, %p3372_p13 }
0x1b33   : > { %v2274_v55 = vpop.f32.mrb[60].mxu1 }
0x1b34   : > { %v2280_v56 = vpack.c.bf16 %v2274_v55, %v2274_v55  ;;  %v3189_v57 = vpop.f32.mrb[61].mxu1 }
0x1b35   : > { %v2277_v58 = vpop.f32.mrb[62].mxu1 }
0x1b36   : > { %v3190_v59 = vpop.f32.mrb[63].mxu1  ;;  %3194 = vmatmul.mubr.msk.bf16.vlgmr.msra.gmra.mrb[44].mxu0 %vm722_vm2, %v2280_v56 }
0x1b37   : > { %3221 = vmatprep.mubr.msk.bf16.mxu0 %vm3434_vm1, %v3433_v0  ;;  %3206 = vmatpush3.bf16.msra.mxu0 %v3307_v23 }
0x1b38   : > { %3207 = vmatprep.subr.bf16.mxu0 %v3433_v0 }
0x1b3b   : > { %3208 = vmatpush3.bf16.msra.mxu0 %v3308_v24 }
0x1b3c   : > { %3209 = vmatprep.subr.bf16.mxu0 %v3433_v0 }
0x1b3f   : > { %3210 = vmatpush3.bf16.msra.mxu0 %v3309_v26 }
0x1b40   : > { %3211 = vmatprep.subr.bf16.mxu0 %v3433_v0 }
0x1b43   : > { %3212 = vmatpush3.bf16.msra.mxu0 %v3310_v27 }
0x1b44   : > { %3213 = vmatprep.subr.bf16.mxu0 %v3433_v0 }
0x1b47   : > { %3214 = vmatpush3.bf16.msra.mxu0 %v3311_v28 }
0x1b48   : > { %3215 = vmatprep.subr.bf16.mxu0 %v3433_v0 }
0x1b4b   : > { %3216 = vmatpush3.bf16.msra.mxu0 %v3312_v29 }
0x1b4c   : > { %3217 = vmatprep.subr.bf16.mxu0 %v3433_v0 }
0x1b4f   : > { %3218 = vmatpush3.bf16.msra.mxu0 %v3313_v30 }
0x1b50   : > { %3219 = vmatprep.subr.bf16.mxu0 %v3433_v0 }
0x1b53   : > { %3220 = vmatpush3.bf16.msra.mxu0 %v3314_v32 }
0x1c09   : > { %v2321_v60 = vpop.f32.mrb[44].mxu0 }
0x1c0a   : > { %v2327_v61 = vadd.f32 %v2321_v60, %v2167_v46  ;;  %v3195_v62 = vpop.f32.mrb[45].mxu0  ;;  %v2918_v46 = vld [vmem:[%s4108_s14 + $0x1] ss:$0 sm:$0xff] }
0x1c0b   : > { %v2324_v2 = vpop.f32.mrb[46].mxu0  ;;  %v3315_v60 = vld [vmem:[%s4111_s17] sm:$0xff]  }
0x1c0c   : > { %v2328_v3 = vadd.f32 %v2327_v61, %v3818_v31  ;;  %v3196_v4 = vpop.f32.mrb[47].mxu0  ;;  %v3306_v31 = vld [vmem:[%s4105_s11 + $0x18] sm:$0xff]   ;;  %v3316_v61 = vld [vmem:[%s4111_s17 + $0x8] sm:$0xff]  }
0x1c0d   : > { %3200 = vmatpush3.bf16.msra.mxu1 %v3306_v31  ;;  %v2636_v4 = vld [vmem:[%s4109_s15] sm:$0x1] }
0x1c0e   : > { %v3960_v5 = vadd.f32 %v2878_v63, %v2328_v3  ;;  %3225 = vmatprep.subr.mxu1 %v3433_v0 }
0x1c10   : > { %v2342_v6 = vsel %vm618_vm0, %v3960_v5, 0.0 }
0x1c11   : > { %2343 = vadd.xlane.f32.xlu1 %v2342_v6  ;;  %v2637_v6 = vld [vmem:[%s4110_s16] sm:$0x1] }
0x1c9e   : > { %v2344_v7 = vpop.xlane.xlu1 %2343 }
0x1c9f   : > { %v2345_v8 = vmul.f32 0.03125, %v2344_v7 }
0x1ca1   : > { %v2346_v9 = vsub.f32 %v3960_v5, %v2345_v8 }
0x1ca3   : > { %v2347_v10 = vmul.f32 %v2346_v9, %v2346_v9 }
0x1ca5   : > { %v2348_v11 = vsel %vm618_vm0, %v2347_v10, 0.0 }
0x1ca6   : > { %2349 = vadd.xlane.f32.xlu1 %v2348_v11 }
0x1d33   : > { %v2350_v13 = vpop.xlane.xlu1 %2349 }
0x1d34   : > { %v2351_v14 = vmul.f32 0.03125, %v2350_v13 }
0x1d36   : > { %v2352_v15 = vadd.f32 1e-05, %v2351_v14 }
0x1d38   : > { %3359 = vrsqrt.f32 %v2352_v15 }
0x1d42   : > { %v3360_v16 = vpop.eup %3359 }
0x1d43   : > { %v2354_v18 = vmul.f32 %v3360_v16, %v2346_v9 }
0x1d45   : > { %v2361_v20 = vmul.f32 %v2881_v17, %v2354_v18 }
0x1d47   : > { %v2368_v21 = vadd.f32 %v2882_v19, %v2361_v20 }
0x1d49   : > { %v2369_v22 = vpack.c.bf16 %v2368_v21, %v2368_v21 }
0x1d4b   : > { %3202 = vmatmul.mubr.msk.bf16.vlgmr.msra.gmra.mrb[64].mxu1 %vm618_vm0, %v2369_v22 }
0x1d4c   : > { %3227 = vmatprep.mubr.msk.f32.mxu1 %vm3434_vm1, %v3433_v0 }
0x1e1e   : > { %v2432_v25 = vpop.f32.mrb[64].mxu1 }
0x1e1f   : > { %v2433_v34 = vadd.f32 %v2888_v33, %v2432_v25  ;;  %v3203_v35 = vpop.f32.mrb[65].mxu1 }
0x1e20   : > { %v2435_v36 = vpop.f32.mrb[66].mxu1 }
0x1e21   : > { %v2892_v37 = vmul.f32 -1.702, %v2433_v34  ;;  %v3204_v38 = vpop.f32.mrb[67].mxu1 }
0x1e23   : > { %v2440_v39 = vmul.f32 1.442695, %v2892_v37 }
0x1e25   : > { %3361 = vpow2.f32 %v2440_v39 }
0x1e2f   : > { %v3362_v40 = vpop.eup %3361 }
0x1e30   : > { %v2442_v42 = vadd.f32 1.0, %v3362_v40 }
0x1e32   : > { %3363 = vrcp.f32 %v2442_v42 }
0x1e3c   : > { %v3364_v43 = vpop.eup %3363 }
0x1e3d   : > { %v2445_v44 = vmul.f32 %v3364_v43, %v2433_v34 }
0x1e3f   : > { %v2446_v45 = vpack.c.bf16 %v2445_v44, %v2445_v44 }
0x1e41   : > { %3222 = vmatmul.mubr.bf16.vlgmr.msra.gmra.mrb[48].mxu0 %v2446_v45 }
0x1f14   : > { %v2546_v41 = vpop.f32.mrb[48].mxu0 }
0x1f15   : > { %v2552_v47 = vadd.f32 %v2546_v41, %v3960_v5  ;;  %v3223_v48 = vpop.f32.mrb[49].mxu0 }
0x1f16   : > { %v2549_v1 = vpop.f32.mrb[50].mxu0 }
0x1f17   : > { %v2561_v49 = vadd.f32 %v2918_v46, %v2552_v47  ;;  %v3224_v50 = vpop.f32.mrb[51].mxu0 }
0x1f19   : > { %3226 = vmatpush3.msra.mxu1 %v2561_v49 }
0x1f1a   : > { %3228 = vmatmul.mubr.msk.f32.vlgmr.msra.gmra.mrb[68].mxu1 %vm722_vm2, %v2562_v51  ;;  %3230 = vmatprep.subr.bf16.mxu1 %v3433_v0 }
0x1f1b   : > { %3234 = vmatprep.mubr.msk.bf16.mxu1 %vm3434_vm1, %v3433_v0  ;;  %3231 = vmatpush3.bf16.msra.mxu1 %v3315_v60 }
0x1f1c   : > { %3232 = vmatprep.subr.bf16.mxu1 %v3433_v0 }
0x1f1f   : > { %3233 = vmatpush3.bf16.msra.mxu1 %v3316_v61 }
0x1fed   : > { %v2632_v52 = vpop.f32.mrb[68].mxu1 }
0x1fee   : > { %v2639_v53 = vsel %vm2638_vm6, %v2632_v52, 0.0  ;;  %v3229_v54 = vpop.f32.mrb[69].mxu1 }
0x1fef   : > { %2640 = vadd.xlane.f32.xlu1 %v2639_v53 }
0x207c   : > { %v2641_v55 = vpop.xlane.xlu1 %2640 }
0x207d   : > { %v2642_v56 = vmul.f32 0.03125, %v2641_v55 }
0x207f   : > { %v2643_v57 = vsub.f32 %v2632_v52, %v2642_v56 }
0x2081   : > { %v2644_v58 = vmul.f32 %v2643_v57, %v2643_v57 }
0x2083   : > { %v2645_v59 = vsel %vm2638_vm6, %v2644_v58, 0.0 }
0x2084   : > { %2646 = vadd.xlane.f32.xlu1 %v2645_v59 }
0x2111   : > { %v2647_v62 = vpop.xlane.xlu1 %2646 }
0x2112   : > { %v2648_v63 = vmul.f32 0.03125, %v2647_v62 }
0x2114   : > { %v2649_v2 = vadd.f32 1e-05, %v2648_v63 }
0x2116   : > { %3365 = vrsqrt.f32 %v2649_v2 }
0x2120   : > { %v3366_v3 = vpop.eup %3365 }
0x2121   : > { %v2651_v5 = vmul.f32 %v3366_v3, %v2643_v57 }
0x2123   : > { %v2652_v7 = vmul.f32 %v2651_v5, %v2636_v4 }
0x2125   : > { %v2653_v8 = vadd.f32 %v2652_v7, %v2637_v6 }
0x2127   : > { %v2654_v0 = vpack.c.bf16 %v2653_v8, %v2653_v8 }
0x2129   : > { %3235 = vmatmul.mubr.msk.bf16.vlgmr.msra.gmra.mrb[72].mxu1 %vm618_vm0, %v2654_v0 }
0x21fc   : > { %v2708_v9 = vpop.f32.mrb[72].mxu1 }
0x21fd   : > { %v2714_v10 = vmul.f32 %v2708_v9, %v2708_v9  ;;  %v3236_v11 = vpop.f32.mrb[73].mxu1 }
0x21fe   : > { %v2711_v12 = vpop.f32.mrb[74].mxu1 }
0x21ff   : > { %v3237_v31 = vpop.f32.mrb[75].mxu1  ;;  %v2715_v13 = vsel %vm2638_vm6, %v2714_v10, 0.0 }
0x2200   : > { %2716 = vadd.xlane.f32.xlu0 %v2715_v13 }
0x228d   : > { %v2717_v14 = vpop.xlane.xlu0 %2716 }
0x228e   : > { %v2718_v15 = vadd.f32 1e-12, %v2717_v14 }
0x2290   : > { %3367 = vrsqrt.f32 %v2718_v15 }
0x229a   : > { %v3368_v16 = vpop.eup %3367 }
0x229b   : > { %v2720_v17 = vmul.f32 %v3368_v16, %v2708_v9 }
0x229d   : > { %2721 = vst.msk [vmem:[%s587_s21] sm:$0x1] %vm2638_vm6, %v2720_v17 }
0x229e   : > { %3382 = shalt.err (!%p3379_p3)
}
0x229f   : > { %s3383_s20 = scalar_lea.hbm %s4051_s22, 16  ;;  %s3387_s29 = scalar_lea.hbm %s4112_s18, 32 }
0x22a0   : > { %p3384_p4 = scmp.ne.s32.totalorder %s4051_s22, %s3383_s20  ;;  %p3388_p9 = scmp.lt.u32.totalorder %s4051_s22, %s4112_s18 }
0x22a1   : > { %p3389_p10 = scmp.lt.u32.totalorder %s3387_s29, %s3383_s20  ;;  %p3391_p12 = scmp.lt.u32.totalorder %s3383_s20, %s4051_s22 }
0x22a2   : > { %p3385_p7 = pnand %p3384_p4, %p3581_p5 }
0x22a3   : > { %p3390_p11 = por %p3389_p10, %p3388_p9 }
0x22a4   : > { %p3386_p8 = pneg %p3385_p7 }
0x22a5   : > { %p3392_p13 = por %p3391_p12, %p3390_p11 }
0x22a7   : > { %p3393_p0 = pnand %p3392_p13, %p3386_p8 }
0x22a9   : > { %3396 = shalt.err (!%p3393_p0)
}
0x22aa   : > { %3238 = dma.vmem_to_hbm [thread:$0]  (%p3581_p5), %s4053_s25, 16, %s4051_s22, %s2723_s19  }
0x22ab PF: > { %p3244_p1 = scmp.ge.s32.totalorder %s3431_s30, 2  ;;  %s2747_s5 = sand.u32 1, %s3419_s27  }
0x22ac   : > { %s2748_s26 = scalar_lea.sflag [#allocation3], %s2747_s5 }
0x22ad   : > { %p3241_p2 = pnand %p3244_p1, %p3585_p6 }
0x22af   : > { %3414 = dma.done.wait (!%p3241_p2), %s2748_s26, 16  }
0x22b0   : > { %3416 = vsyncadd (!%p3241_p2), %s2748_s26, 4294967280  ;;  %s4152_s0 = sld [smem:[#allocation5_spill]]  ;;  %s4153_s29 = sld [smem:[#allocation6_spill]] }
0x22b1   : > { %p28_p3 = scmp.ge.s32.totalorder %s3568_s1, 4   ;;  %s4154_s27 = smov %s3423_s28 }
0x22b2   : > { %s4156_s30 = smov %s3568_s1 }
0x22b3   :  { %30 = sbr.rel (!%p28_p3) target bundleno = 10 (0xa), region = 145 }
0x22b6   : > { %s4155_s28 = smov %s4152_s0 }
0x22ba   :  { %2752 = vsyncpa [#allocation3], 1 }
0x22bb   :  { %2754 = vsyncpa [#allocation3 + $0x1], 1 }

</bundles_post_ra>
